<compile_context>
chip_gen: v7x
topology: tpu7x:2x2x1
jax: 0.10.0
libtpu: 0.0.40
codegen_flags: <defaults>
</compile_context>

<pallas_src>
import numpy as np
import jax
import jax.numpy as jnp
from jax.experimental import pallas as pl
from jax.experimental.pallas import tpu as pltpu

DENSE_CHANNEL = 16      # h.dense_channel
PRIME_KMAX = 11         # largest prime kernel in the GPFCA grouped conv
LN_EPS = 1e-5


# ----------------------------------------------------------------------------
# Fused TF-gate kernel: LayerNorm + chunk pooling (== AdaptiveAvgPool2d((1,1))
# of the reinterpreted (b,c,t,f) view) + ConvKAN-style per-channel gate.
# Single grid step over the whole batch (work is far below step overhead).
# ----------------------------------------------------------------------------
def _make_gate_kernel(B, N, C):
    def kern(x_ref, sel_ref, lnw_ref, lnb_ref, wb_ref, ws_ref, bb_ref, o_ref):
        x = x_ref[...]                                          # (B, N, C) f32
        mu = jnp.mean(x, axis=-1, keepdims=True)
        d = x - mu
        var = jnp.mean(d * d, axis=-1, keepdims=True)
        ln = d * jax.lax.rsqrt(var + LN_EPS) * lnw_ref[...] + lnb_ref[...]
        # AdaptiveAvgPool2d((1,1)) of the (b,c,t,f) flat reinterpretation ==
        # mean over contiguous flat chunks of N elements.  Row-sum (lane
        # reduce) then a chunk-selector matmul on the otherwise idle MXU
        # (no narrow-tile reshapes / relayouts).
        rowsum = jnp.sum(ln, axis=-1)                           # (B, N)
        s = jnp.dot(rowsum, sel_ref[...],
                    preferred_element_type=jnp.float32) / float(N)   # (B, C)
        # ConvKAN reconstruction (groups == channels, 1x1 pooled spatial).
        o_ref[...] = (wb_ref[...] * (s * jax.nn.sigmoid(s))
                      + ws_ref[...] * s + bb_ref[...])
    return kern


def tf_gate(x_rows, lnw, lnb, kan):
    """x_rows: (B, N, C) channels-last rows -> (B, C) channel gate."""
    B, N, C = x_rows.shape
    if N % C != 0:
        # TODO(synk): rare-shape fallback (same math, un-fused plain JAX).
        mu = jnp.mean(x_rows, axis=-1, keepdims=True)
        d = x_rows - mu
        var = jnp.mean(d * d, axis=-1, keepdims=True)
        ln = (d * jax.lax.rsqrt(var + LN_EPS) * lnw.reshape(1, 1, C)
              + lnb.reshape(1, 1, C))
        s = jnp.mean(ln.reshape(B, C, N), axis=-1)
        return kan['wb'] * (s * jax.nn.sigmoid(s)) + kan['ws'] * s + kan['bb']

    R = N // C
    sel = jnp.repeat(jnp.eye(C, dtype=jnp.float32), R, axis=0)   # (N, C)
    return pl.pallas_call(
        _make_gate_kernel(B, N, C),
        out_shape=jax.ShapeDtypeStruct((B, C), jnp.float32),
        grid=(1,),
        in_specs=[pl.BlockSpec((B, N, C), lambda i: (0, 0, 0)),
                  pl.BlockSpec((N, C), lambda i: (0, 0)),
                  pl.BlockSpec((1, C), lambda i: (0, 0)),
                  pl.BlockSpec((1, C), lambda i: (0, 0)),
                  pl.BlockSpec((1, C), lambda i: (0, 0)),
                  pl.BlockSpec((1, C), lambda i: (0, 0)),
                  pl.BlockSpec((1, C), lambda i: (0, 0))],
        out_specs=pl.BlockSpec((B, C), lambda i: (0, 0)),
        compiler_params=pltpu.CompilerParams(
            dimension_semantics=("arbitrary",)),
    )(x_rows, sel, lnw, lnb, kan['wb'], kan['ws'], kan['bb'])


# ----------------------------------------------------------------------------
# Fused, lane-packed GPFCA + TS residual kernel:  out = GPFCA(x) + x * scale
# P = 128 // C sequences share one 128-lane row; weights are block-diagonal.
# ----------------------------------------------------------------------------
def _make_gpfca_kernel(G, L, CP, K):
    half = K // 2
    C2P = 2 * CP
    M = G * L
    bf = jnp.bfloat16

    def kern(x_ref, mavg_ref, ln1w, ln1b, w1, b1, wd, bd, wsca, bsca,
             w2, b2, ln2w, ln2b, w3, b3, w4, b4, scale, o_ref):
        x3 = x_ref[...]                               # (G, L, CP) f32
        x = x3.reshape(M, CP)
        mavg = mavg_ref[...]                          # (CP, CP) block-diag 1/C

        def layer_norm(v, w_r, b_r):
            # Per-channel-group stats via block-diagonal matmul: keeps the
            # 128-lane packed layout (no lane-group reshapes), uses idle MXU.
            mu = jnp.dot(v, mavg, preferred_element_type=jnp.float32)
            d = v - mu
            var = jnp.dot(d * d, mavg, preferred_element_type=jnp.float32)
            return d * jax.lax.rsqrt(var + LN_EPS) * w_r[...] + b_r[...]

        # ---- LayerNorm -> pointwise expand ([a-half | g-half] lane layout) --
        h = layer_norm(x, ln1w, ln1b)
        u = (jnp.dot(h.astype(bf), w1[...], preferred_element_type=jnp.float32)
             + b1[...])
        u3 = u.reshape(G, L, C2P)

        # ---- grouped prime-kernel depthwise conv along the sequence --------
        # Taps are static sublane rotations + edge masks (XLU slot): no padded
        # scratch round trip, no misaligned-slice relayouts, no wasted zeroing.
        wdv = wd[...]                                 # (K, C2P), hoisted
        l_iota = jax.lax.broadcasted_iota(jnp.int32, (L, C2P), 0)
        acc = jnp.zeros((G, L, C2P), jnp.float32) + bd[...]
        for k in range(K):                            # static unroll
            s = half - k                              # tap reads u[l - s]
            sh = s % L
            if sh == 0:
                shifted = u3
            elif L % 8 == 0:
                shifted = pltpu.roll(u3, shift=sh, axis=1)
            else:
                # TODO(synk): non-8-aligned L -> concat-based circular shift.
                shifted = jnp.concatenate(
                    [u3[:, L - sh:, :], u3[:, :L - sh, :]], axis=1)
            if s != 0:
                valid = (l_iota >= s) & (l_iota < L + s)
                shifted = jnp.where(valid, shifted, 0.0)
            acc = acc + shifted * wdv[k]

        # ---- SwiGLU gate ----------------------------------------------------
        a = acc[:, :, :CP]
        g = acc[:, :, CP:]
        gated = a * (g * jax.nn.sigmoid(g))           # (G, L, CP)

        # ---- SE channel attention (pooled per sequence) ----------------------
        sm = jnp.mean(gated, axis=1)                  # (G, CP)
        att = jax.nn.sigmoid(
            jnp.dot(sm.astype(bf), wsca[...],
                    preferred_element_type=jnp.float32) + bsca[...])
        gm = (gated * att[:, None, :]).reshape(M, CP)
        y1 = (jnp.dot(gm.astype(bf), w2[...],
                      preferred_element_type=jnp.float32) + b2[...])
        x1 = x + y1

        # ---- gated FFN --------------------------------------------------------
        h2 = layer_norm(x1, ln2w, ln2b)
        u2 = (jnp.dot(h2.astype(bf), w3[...],
                      preferred_element_type=jnp.float32) + b3[...])
        a2 = u2[:, :CP]
        g2 = u2[:, CP:]
        y2 = (jnp.dot((a2 * (g2 * jax.nn.sigmoid(g2))).astype(bf), w4[...],
                      preferred_element_type=jnp.float32) + b4[...])

        # ---- fused TS-block residual:  GPFCA(x) + x * scale  -----------------
        o_ref[...] = (x1 + y2 + x * scale[...]).reshape(G, L, CP)

    return kern


def _pack_gpfca_params(p, scale, C, P):
    """Build lane-packed / block-diagonal weights (tiny, done per forward)."""
    bf = jnp.bfloat16
    eye = jnp.eye(P, dtype=jnp.float32)

    def tile_c(v):                                    # per-channel -> (1, P*C)
        return jnp.tile(v.reshape(1, C), (1, P))

    def tile_2c(v):                                   # (1,2C) -> (1,2PC) halves
        v = v.reshape(1, 2 * C)
        return jnp.concatenate([jnp.tile(v[:, :C], (1, P)),
                                jnp.tile(v[:, C:], (1, P))], axis=1)

    def bdiag(w):                                     # (C, D) -> (PC, PD)
        return jnp.kron(eye, w)

    def bdiag_2c(w):                                  # (C,2C) -> (PC,2PC) halves
        return jnp.concatenate([jnp.kron(eye, w[:, :C]),
                                jnp.kron(eye, w[:, C:])], axis=1)

    wd = p['wd']                                      # (K, 2C)
    wd_p = jnp.concatenate([jnp.tile(wd[:, :C], (1, P)),
                            jnp.tile(wd[:, C:], (1, P))], axis=1)
    mavg = jnp.kron(eye, jnp.ones((C, C), jnp.float32) / C)

    return (mavg,
            tile_c(p['ln1w']), tile_c(p['ln1b']),
            bdiag_2c(p['w1']).astype(bf), tile_2c(p['b1']),
            wd_p, tile_2c(p['bd']),
            bdiag(p['wsca']).astype(bf), tile_c(p['bsca']),
            bdiag(p['w2']).astype(bf), tile_c(p['b2']),
            tile_c(p['ln2w']), tile_c(p['ln2b']),
            bdiag_2c(p['w3']).astype(bf), tile_2c(p['b3']),
            bdiag(p['w4']).astype(bf), tile_c(p['b4']),
            jnp.tile(scale.reshape(1, C), (1, P)))


def _choose_group(n_packs, L, CP):
    """Packs per grid step: largest block under a conservative VMEM budget
    (safe on v7x's 64 MiB VMEM with the 32 MiB scoped limit we request);
    prefer >=4 grid steps only when blocks stay large enough to hide DMA."""
    budget = 12 << 20

    def block_bytes(g):
        return g * L * CP * 4

    def est(g):
        # 2x double-buffered in/out blocks + ~3 live (g, L, 2*CP) temporaries
        # + packed weights (~1 MiB headroom).
        return 10 * block_bytes(g) + (1 << 20)

    divisors = [g for g in range(1, n_packs + 1) if n_packs % g == 0]
    fitting = [g for g in divisors if est(g) <= budget] or [1]
    g_best = max(fitting)
    if n_packs // g_best >= 4:
        return g_best
    overlapped = [g for g in fitting
                  if n_packs // g >= 4 and block_bytes(g) >= (2 << 20)]
    return max(overlapped) if overlapped else g_best


def gpfca_residual(x_seq, p, scale):
    """Fused GPFCA block + TS residual on sequences x_seq: (B2, L, C)."""
    B2, L, C = x_seq.shape
    P = 128 // C if 128 % C == 0 else 1     # sequences packed per 128-lane row
    CP = P * C
    K = PRIME_KMAX

    pad = (-B2) % P
    if pad:
        x_seq = jnp.concatenate(
            [x_seq, jnp.zeros((pad, L, C), x_seq.dtype)], axis=0)
    B2p = B2 + pad
    n_packs = B2p // P
    xp = (x_seq.reshape(n_packs, P, L, C)
               .transpose(0, 2, 1, 3)
               .reshape(n_packs, L, CP))

    G = _choose_group(n_packs, L, CP)
    grid = n_packs // G
    packed = _pack_gpfca_params(p, scale, C, P)

    in_specs = [pl.BlockSpec((G, L, CP), lambda i: (i, 0, 0))]
    in_specs += [pl.BlockSpec(a.shape, lambda i: (0, 0)) for a in packed]

    out_p = pl.pallas_call(
        _make_gpfca_kernel(G, L, CP, K),
        out_shape=jax.ShapeDtypeStruct((n_packs, L, CP), jnp.float32),
        grid=(grid,),
        in_specs=in_specs,
        out_specs=pl.BlockSpec((G, L, CP), lambda i: (i, 0, 0)),
        compiler_params=pltpu.CompilerParams(
            dimension_semantics=("parallel",),
            vmem_limit_bytes=32 * 1024 * 1024),
    )(xp, *packed)

    out = (out_p.reshape(n_packs, L, P, C)
                .transpose(0, 2, 1, 3)
                .reshape(B2p, L, C))
    return out[:B2] if pad else out


# ----------------------------------------------------------------------------
# TS_tfBLOCK forward (thin JAX glue mirroring the PyTorch view/permute ops)
# ----------------------------------------------------------------------------
def ts_tf_block(params, x):
    """x: (B, C, T, F) -> (B, C, T, F), faithful to the PyTorch reference
    including its reshape-based memory reinterpretations."""
    B, C, T, F = x.shape
    N = T * F

    # x_tf = TFca(LayerNorm(x.permute(0,2,3,1)).reshape(b,c,t,f)) -> (b, c)
    x_rows = jnp.transpose(x, (0, 2, 3, 1)).reshape(B, N, C)
    gate1 = tf_gate(x_rows, params['LN1_w'], params['LN1_b'], params['kan1'])

    # x = self.time(x_t) + x_t * beta ;  x_t = x.permute(0,3,2,1).view(b*f,t,c)
    x_t = jnp.transpose(x, (0, 3, 2, 1)).reshape(B * F, T, C)
    xt = gpfca_residual(x_t, params['time'], params['beta'])      # (b*f, t, c)

    # x = x.reshape(b,c,t,f) * x_tf     (flat reinterpretation + channel gate)
    x2 = xt.reshape(B, C, N) * gate1[:, :, None]                  # (b, c, t*f)

    # x_tf2 = TFca2(LayerNorm2(x.reshape(b,f,t,c)).reshape(b,c,f,t)) -> (b, c)
    gate2 = tf_gate(x2.reshape(B, N, C), params['LN2_w'], params['LN2_b'],
                    params['kan2'])

    # x = self.freq(x_f) + x_f * gamma ; x_f = x.permute(0,2,1,3).view(b*t,f,c)
    x_f = jnp.transpose(x2.reshape(B, C, T, F), (0, 2, 1, 3)).reshape(B * T, F, C)
    xf = gpfca_residual(x_f, params['freq'], params['gamma'])     # (b*t, f, c)

    # x = x.reshape(b,c,t,f) * x_tf2 ; return x.view(b,t,f,c).permute(0,3,1,2)
    x4 = xf.reshape(B, C, N) * gate2[:, :, None]
    return jnp.transpose(x4.reshape(B, T, F, C), (0, 3, 1, 2))


# ----------------------------------------------------------------------------
# Deterministic synthetic parameters
# ----------------------------------------------------------------------------
def init_params(key, C, K=PRIME_KMAX):
    keys = iter(jax.random.split(key, 64))

    def nrm(shape, s=0.08):
        return s * jax.random.normal(next(keys), shape, dtype=jnp.float32)

    def ones(shape):
        return jnp.ones(shape, jnp.float32)

    def zeros(shape):
        return jnp.zeros(shape, jnp.float32)

    def gpfca_params():
        C2 = 2 * C
        half = K // 2
        gs = C2 // 4
        wd = nrm((K, C2), 0.15)
        msk = np.zeros((K, C2), np.float32)
        for j, kj in enumerate((3, 5, 7, 11)):      # per-group prime kernels
            msk[half - kj // 2: half + kj // 2 + 1, j * gs:(j + 1) * gs] = 1.0
        wd = wd * jnp.asarray(msk)
        return dict(
            ln1w=ones((1, C)), ln1b=zeros((1, C)),
            w1=nrm((C, C2)), b1=zeros((1, C2)),
            wd=wd, bd=zeros((1, C2)),
            wsca=nrm((C, C)), bsca=zeros((1, C)),
            w2=nrm((C, C)), b2=zeros((1, C)),
            ln2w=ones((1, C)), ln2b=zeros((1, C)),
            w3=nrm((C, C2)), b3=zeros((1, C2)),
            w4=nrm((C, C)), b4=zeros((1, C)))

    def kan_params():
        return dict(wb=nrm((1, C), 0.5), ws=nrm((1, C), 0.5),
                    bb=0.5 * ones((1, C)))

    return dict(
        LN1_w=ones((1, C)), LN1_b=zeros((1, C)),
        LN2_w=ones((1, C)), LN2_b=zeros((1, C)),
        kan1=kan_params(), kan2=kan_params(),
        time=gpfca_params(), freq=gpfca_params(),
        # Reference initializes beta/gamma to zeros; small nonzero values here
        # so the fused skip-scale path is exercised numerically.
        beta=nrm((1, C), 0.05), gamma=nrm((1, C), 0.05))


# ----------------------------------------------------------------------------
if __name__ == "__main__":
    key = jax.random.PRNGKey(0)
    B, C, T, F = 2, DENSE_CHANNEL, 16, 8          # T*F = 128 (multiple of C)

    k1, k2 = jax.random.split(key)
    x = jax.random.normal(k1, (B, C, T, F), dtype=jnp.float32)
    params = init_params(k2, C)

    fwd = jax.jit(ts_tf_block)
    y = fwd(params, x)
    jax.block_until_ready(y)

    assert y.shape == (B, C, T, F)
    assert bool(jnp.all(jnp.isfinite(y)))
    print("KERNEL_OK")
</pallas_src>

<mosaic_0001>
module attributes {stable_mosaic.version = 11 : i64} {
  func.func @kern(%arg0: i32, %arg1: memref<2x16x128xf32, #tpu.memory_space<vmem>>, %arg2: memref<128x128xf32, #tpu.memory_space<vmem>>, %arg3: memref<1x128xf32, #tpu.memory_space<vmem>>, %arg4: memref<1x128xf32, #tpu.memory_space<vmem>>, %arg5: memref<128x256xbf16, #tpu.memory_space<vmem>>, %arg6: memref<1x256xf32, #tpu.memory_space<vmem>>, %arg7: memref<11x256xf32, #tpu.memory_space<vmem>>, %arg8: memref<1x256xf32, #tpu.memory_space<vmem>>, %arg9: memref<128x128xbf16, #tpu.memory_space<vmem>>, %arg10: memref<1x128xf32, #tpu.memory_space<vmem>>, %arg11: memref<128x128xbf16, #tpu.memory_space<vmem>>, %arg12: memref<1x128xf32, #tpu.memory_space<vmem>>, %arg13: memref<1x128xf32, #tpu.memory_space<vmem>>, %arg14: memref<1x128xf32, #tpu.memory_space<vmem>>, %arg15: memref<128x256xbf16, #tpu.memory_space<vmem>>, %arg16: memref<1x256xf32, #tpu.memory_space<vmem>>, %arg17: memref<128x128xbf16, #tpu.memory_space<vmem>>, %arg18: memref<1x128xf32, #tpu.memory_space<vmem>>, %arg19: memref<1x128xf32, #tpu.memory_space<vmem>>, %arg20: memref<2x16x128xf32, #tpu.memory_space<vmem>>) attributes {dimension_semantics = [#tpu.dimension_semantics<parallel>], iteration_bounds = array<i64: 1>, scalar_prefetch = 0 : i64, scratch_operands = 0 : i64, tpu.core_type = #tpu.core_type<tc>, window_params = [{transform_indices = @transform_0, window_bounds = array<i64: 2, 16, 128>}, {pipeline_mode = #tpu.pipeline_mode<synchronous>, transform_indices = @transform_1, window_bounds = array<i64: 128, 128>}, {pipeline_mode = #tpu.pipeline_mode<synchronous>, transform_indices = @transform_2, window_bounds = array<i64: 1, 128>}, {pipeline_mode = #tpu.pipeline_mode<synchronous>, transform_indices = @transform_3, window_bounds = array<i64: 1, 128>}, {pipeline_mode = #tpu.pipeline_mode<synchronous>, transform_indices = @transform_4, window_bounds = array<i64: 128, 256>}, {pipeline_mode = #tpu.pipeline_mode<synchronous>, transform_indices = @transform_5, window_bounds = array<i64: 1, 256>}, {pipeline_mode = #tpu.pipeline_mode<synchronous>, transform_indices = @transform_6, window_bounds = array<i64: 11, 256>}, {pipeline_mode = #tpu.pipeline_mode<synchronous>, transform_indices = @transform_7, window_bounds = array<i64: 1, 256>}, {pipeline_mode = #tpu.pipeline_mode<synchronous>, transform_indices = @transform_8, window_bounds = array<i64: 128, 128>}, {pipeline_mode = #tpu.pipeline_mode<synchronous>, transform_indices = @transform_9, window_bounds = array<i64: 1, 128>}, {pipeline_mode = #tpu.pipeline_mode<synchronous>, transform_indices = @transform_10, window_bounds = array<i64: 128, 128>}, {pipeline_mode = #tpu.pipeline_mode<synchronous>, transform_indices = @transform_11, window_bounds = array<i64: 1, 128>}, {pipeline_mode = #tpu.pipeline_mode<synchronous>, transform_indices = @transform_12, window_bounds = array<i64: 1, 128>}, {pipeline_mode = #tpu.pipeline_mode<synchronous>, transform_indices = @transform_13, window_bounds = array<i64: 1, 128>}, {pipeline_mode = #tpu.pipeline_mode<synchronous>, transform_indices = @transform_14, window_bounds = array<i64: 128, 256>}, {pipeline_mode = #tpu.pipeline_mode<synchronous>, transform_indices = @transform_15, window_bounds = array<i64: 1, 256>}, {pipeline_mode = #tpu.pipeline_mode<synchronous>, transform_indices = @transform_16, window_bounds = array<i64: 128, 128>}, {pipeline_mode = #tpu.pipeline_mode<synchronous>, transform_indices = @transform_17, window_bounds = array<i64: 1, 128>}, {pipeline_mode = #tpu.pipeline_mode<synchronous>, transform_indices = @transform_18, window_bounds = array<i64: 1, 128>}, {transform_indices = @transform_19, window_bounds = array<i64: 2, 16, 128>}]} {
    %c0 = arith.constant 0 : index
    %c0_0 = arith.constant 0 : index
    %c0_1 = arith.constant 0 : index
    %0 = vector.load %arg1[%c0, %c0_0, %c0_1] : memref<2x16x128xf32, #tpu.memory_space<vmem>>, vector<2x16x128xf32>
    %1 = vector.shape_cast %0 : vector<2x16x128xf32> to vector<32x128xf32>
    %c0_2 = arith.constant 0 : index
    %c0_3 = arith.constant 0 : index
    %2 = vector.load %arg2[%c0_2, %c0_3] : memref<128x128xf32, #tpu.memory_space<vmem>>, vector<128x128xf32>
    %cst = arith.constant dense<0.000000e+00> : vector<32x128xf32>
    %3 = tpu.matmul %1, %2, %cst {dimension_numbers = #tpu.dot_dimension_numbers<[1], [0], [0], [1], [0, 0, 1, 1], [], []>} : vector<32x128xf32>, vector<128x128xf32>, vector<32x128xf32> -> vector<32x128xf32>
    %4 = arith.subf %1, %3 : vector<32x128xf32>
    %5 = arith.mulf %4, %4 : vector<32x128xf32>
    %cst_4 = arith.constant dense<0.000000e+00> : vector<32x128xf32>
    %6 = tpu.matmul %5, %2, %cst_4 {dimension_numbers = #tpu.dot_dimension_numbers<[1], [0], [0], [1], [0, 0, 1, 1], [], []>} : vector<32x128xf32>, vector<128x128xf32>, vector<32x128xf32> -> vector<32x128xf32>
    %cst_5 = arith.constant 9.99999974E-6 : f32
    %7 = vector.broadcast %cst_5 : f32 to vector<32x128xf32>
    %8 = arith.addf %6, %7 : vector<32x128xf32>
    %9 = math.rsqrt %8 : vector<32x128xf32>
    %10 = arith.mulf %4, %9 : vector<32x128xf32>
    %c0_6 = arith.constant 0 : index
    %c0_7 = arith.constant 0 : index
    %11 = vector.load %arg3[%c0_6, %c0_7] : memref<1x128xf32, #tpu.memory_space<vmem>>, vector<1x128xf32>
    %12 = vector.broadcast %11 : vector<1x128xf32> to vector<32x128xf32>
    %13 = arith.mulf %10, %12 : vector<32x128xf32>
    %c0_8 = arith.constant 0 : index
    %c0_9 = arith.constant 0 : index
    %14 = vector.load %arg4[%c0_8, %c0_9] : memref<1x128xf32, #tpu.memory_space<vmem>>, vector<1x128xf32>
    %15 = vector.broadcast %14 : vector<1x128xf32> to vector<32x128xf32>
    %16 = arith.addf %13, %15 : vector<32x128xf32>
    %17 = arith.truncf %16 : vector<32x128xf32> to vector<32x128xbf16>
    %c0_10 = arith.constant 0 : index
    %c0_11 = arith.constant 0 : index
    %18 = vector.load %arg5[%c0_10, %c0_11] : memref<128x256xbf16, #tpu.memory_space<vmem>>, vector<128x256xbf16>
    %cst_12 = arith.constant dense<0.000000e+00> : vector<32x256xf32>
    %19 = tpu.matmul %17, %18, %cst_12 {dimension_numbers = #tpu.dot_dimension_numbers<[1], [0], [0], [1], [0, 0, 1, 1], [], []>} : vector<32x128xbf16>, vector<128x256xbf16>, vector<32x256xf32> -> vector<32x256xf32>
    %c0_13 = arith.constant 0 : index
    %c0_14 = arith.constant 0 : index
    %20 = vector.load %arg6[%c0_13, %c0_14] : memref<1x256xf32, #tpu.memory_space<vmem>>, vector<1x256xf32>
    %21 = vector.broadcast %20 : vector<1x256xf32> to vector<32x256xf32>
    %22 = arith.addf %19, %21 : vector<32x256xf32>
    %23 = vector.shape_cast %22 : vector<32x256xf32> to vector<2x16x256xf32>
    %c0_15 = arith.constant 0 : index
    %c0_16 = arith.constant 0 : index
    %24 = vector.load %arg7[%c0_15, %c0_16] : memref<11x256xf32, #tpu.memory_space<vmem>>, vector<11x256xf32>
    %25 = tpu.iota {dimensions = array<i32: 0>} : vector<16x256xi32>
    %cst_17 = arith.constant 0.000000e+00 : f32
    %26 = vector.broadcast %cst_17 : f32 to vector<2x16x256xf32>
    %c0_18 = arith.constant 0 : index
    %c0_19 = arith.constant 0 : index
    %27 = vector.load %arg8[%c0_18, %c0_19] : memref<1x256xf32, #tpu.memory_space<vmem>>, vector<1x256xf32>
    %28 = vector.shape_cast %27 : vector<1x256xf32> to vector<1x1x256xf32>
    %29 = vector.broadcast %28 : vector<1x1x256xf32> to vector<2x16x256xf32>
    %30 = arith.addf %26, %29 : vector<2x16x256xf32>
    %c5_i32 = arith.constant 5 : i32
    %31 = tpu.dynamic_rotate %23 by %c5_i32 dim 1 : vector<2x16x256xf32>, i32 -> vector<2x16x256xf32>
    %c5_i32_20 = arith.constant 5 : i32
    %32 = vector.broadcast %c5_i32_20 : i32 to vector<16x256xi32>
    %33 = arith.cmpi sge, %25, %32 : vector<16x256xi32>
    %c21_i32 = arith.constant 21 : i32
    %34 = vector.broadcast %c21_i32 : i32 to vector<16x256xi32>
    %35 = arith.cmpi slt, %25, %34 : vector<16x256xi32>
    %36 = arith.andi %33, %35 : vector<16x256xi1>
    %cst_21 = arith.constant 0.000000e+00 : f32
    %37 = vector.shape_cast %36 : vector<16x256xi1> to vector<1x16x256xi1>
    %38 = vector.broadcast %37 : vector<1x16x256xi1> to vector<2x16x256xi1>
    %39 = vector.broadcast %cst_21 : f32 to vector<2x16x256xf32>
    %40 = arith.select %38, %31, %39 : vector<2x16x256xi1>, vector<2x16x256xf32>
    %41 = vector.extract_strided_slice %24 {offsets = [0, 0], sizes = [1, 256], strides = [1, 1]} : vector<11x256xf32> to vector<1x256xf32>
    %42 = vector.shape_cast %41 : vector<1x256xf32> to vector<256xf32>
    %43 = vector.shape_cast %42 : vector<256xf32> to vector<1x1x256xf32>
    %44 = vector.broadcast %43 : vector<1x1x256xf32> to vector<2x16x256xf32>
    %45 = arith.mulf %40, %44 : vector<2x16x256xf32>
    %46 = arith.addf %30, %45 : vector<2x16x256xf32>
    %c4_i32 = arith.constant 4 : i32
    %47 = tpu.dynamic_rotate %23 by %c4_i32 dim 1 : vector<2x16x256xf32>, i32 -> vector<2x16x256xf32>
    %c4_i32_22 = arith.constant 4 : i32
    %48 = vector.broadcast %c4_i32_22 : i32 to vector<16x256xi32>
    %49 = arith.cmpi sge, %25, %48 : vector<16x256xi32>
    %c20_i32 = arith.constant 20 : i32
    %50 = vector.broadcast %c20_i32 : i32 to vector<16x256xi32>
    %51 = arith.cmpi slt, %25, %50 : vector<16x256xi32>
    %52 = arith.andi %49, %51 : vector<16x256xi1>
    %cst_23 = arith.constant 0.000000e+00 : f32
    %53 = vector.shape_cast %52 : vector<16x256xi1> to vector<1x16x256xi1>
    %54 = vector.broadcast %53 : vector<1x16x256xi1> to vector<2x16x256xi1>
    %55 = vector.broadcast %cst_23 : f32 to vector<2x16x256xf32>
    %56 = arith.select %54, %47, %55 : vector<2x16x256xi1>, vector<2x16x256xf32>
    %57 = vector.extract_strided_slice %24 {offsets = [1, 0], sizes = [1, 256], strides = [1, 1]} : vector<11x256xf32> to vector<1x256xf32>
    %58 = vector.shape_cast %57 : vector<1x256xf32> to vector<256xf32>
    %59 = vector.shape_cast %58 : vector<256xf32> to vector<1x1x256xf32>
    %60 = vector.broadcast %59 : vector<1x1x256xf32> to vector<2x16x256xf32>
    %61 = arith.mulf %56, %60 : vector<2x16x256xf32>
    %62 = arith.addf %46, %61 : vector<2x16x256xf32>
    %c3_i32 = arith.constant 3 : i32
    %63 = tpu.dynamic_rotate %23 by %c3_i32 dim 1 : vector<2x16x256xf32>, i32 -> vector<2x16x256xf32>
    %c3_i32_24 = arith.constant 3 : i32
    %64 = vector.broadcast %c3_i32_24 : i32 to vector<16x256xi32>
    %65 = arith.cmpi sge, %25, %64 : vector<16x256xi32>
    %c19_i32 = arith.constant 19 : i32
    %66 = vector.broadcast %c19_i32 : i32 to vector<16x256xi32>
    %67 = arith.cmpi slt, %25, %66 : vector<16x256xi32>
    %68 = arith.andi %65, %67 : vector<16x256xi1>
    %cst_25 = arith.constant 0.000000e+00 : f32
    %69 = vector.shape_cast %68 : vector<16x256xi1> to vector<1x16x256xi1>
    %70 = vector.broadcast %69 : vector<1x16x256xi1> to vector<2x16x256xi1>
    %71 = vector.broadcast %cst_25 : f32 to vector<2x16x256xf32>
    %72 = arith.select %70, %63, %71 : vector<2x16x256xi1>, vector<2x16x256xf32>
    %73 = vector.extract_strided_slice %24 {offsets = [2, 0], sizes = [1, 256], strides = [1, 1]} : vector<11x256xf32> to vector<1x256xf32>
    %74 = vector.shape_cast %73 : vector<1x256xf32> to vector<256xf32>
    %75 = vector.shape_cast %74 : vector<256xf32> to vector<1x1x256xf32>
    %76 = vector.broadcast %75 : vector<1x1x256xf32> to vector<2x16x256xf32>
    %77 = arith.mulf %72, %76 : vector<2x16x256xf32>
    %78 = arith.addf %62, %77 : vector<2x16x256xf32>
    %c2_i32 = arith.constant 2 : i32
    %79 = tpu.dynamic_rotate %23 by %c2_i32 dim 1 : vector<2x16x256xf32>, i32 -> vector<2x16x256xf32>
    %c2_i32_26 = arith.constant 2 : i32
    %80 = vector.broadcast %c2_i32_26 : i32 to vector<16x256xi32>
    %81 = arith.cmpi sge, %25, %80 : vector<16x256xi32>
    %c18_i32 = arith.constant 18 : i32
    %82 = vector.broadcast %c18_i32 : i32 to vector<16x256xi32>
    %83 = arith.cmpi slt, %25, %82 : vector<16x256xi32>
    %84 = arith.andi %81, %83 : vector<16x256xi1>
    %cst_27 = arith.constant 0.000000e+00 : f32
    %85 = vector.shape_cast %84 : vector<16x256xi1> to vector<1x16x256xi1>
    %86 = vector.broadcast %85 : vector<1x16x256xi1> to vector<2x16x256xi1>
    %87 = vector.broadcast %cst_27 : f32 to vector<2x16x256xf32>
    %88 = arith.select %86, %79, %87 : vector<2x16x256xi1>, vector<2x16x256xf32>
    %89 = vector.extract_strided_slice %24 {offsets = [3, 0], sizes = [1, 256], strides = [1, 1]} : vector<11x256xf32> to vector<1x256xf32>
    %90 = vector.shape_cast %89 : vector<1x256xf32> to vector<256xf32>
    %91 = vector.shape_cast %90 : vector<256xf32> to vector<1x1x256xf32>
    %92 = vector.broadcast %91 : vector<1x1x256xf32> to vector<2x16x256xf32>
    %93 = arith.mulf %88, %92 : vector<2x16x256xf32>
    %94 = arith.addf %78, %93 : vector<2x16x256xf32>
    %c1_i32 = arith.constant 1 : i32
    %95 = tpu.dynamic_rotate %23 by %c1_i32 dim 1 : vector<2x16x256xf32>, i32 -> vector<2x16x256xf32>
    %c1_i32_28 = arith.constant 1 : i32
    %96 = vector.broadcast %c1_i32_28 : i32 to vector<16x256xi32>
    %97 = arith.cmpi sge, %25, %96 : vector<16x256xi32>
    %c17_i32 = arith.constant 17 : i32
    %98 = vector.broadcast %c17_i32 : i32 to vector<16x256xi32>
    %99 = arith.cmpi slt, %25, %98 : vector<16x256xi32>
    %100 = arith.andi %97, %99 : vector<16x256xi1>
    %cst_29 = arith.constant 0.000000e+00 : f32
    %101 = vector.shape_cast %100 : vector<16x256xi1> to vector<1x16x256xi1>
    %102 = vector.broadcast %101 : vector<1x16x256xi1> to vector<2x16x256xi1>
    %103 = vector.broadcast %cst_29 : f32 to vector<2x16x256xf32>
    %104 = arith.select %102, %95, %103 : vector<2x16x256xi1>, vector<2x16x256xf32>
    %105 = vector.extract_strided_slice %24 {offsets = [4, 0], sizes = [1, 256], strides = [1, 1]} : vector<11x256xf32> to vector<1x256xf32>
    %106 = vector.shape_cast %105 : vector<1x256xf32> to vector<256xf32>
    %107 = vector.shape_cast %106 : vector<256xf32> to vector<1x1x256xf32>
    %108 = vector.broadcast %107 : vector<1x1x256xf32> to vector<2x16x256xf32>
    %109 = arith.mulf %104, %108 : vector<2x16x256xf32>
    %110 = arith.addf %94, %109 : vector<2x16x256xf32>
    %111 = vector.extract_strided_slice %24 {offsets = [5, 0], sizes = [1, 256], strides = [1, 1]} : vector<11x256xf32> to vector<1x256xf32>
    %112 = vector.shape_cast %111 : vector<1x256xf32> to vector<256xf32>
    %113 = vector.shape_cast %112 : vector<256xf32> to vector<1x1x256xf32>
    %114 = vector.broadcast %113 : vector<1x1x256xf32> to vector<2x16x256xf32>
    %115 = arith.mulf %23, %114 : vector<2x16x256xf32>
    %116 = arith.addf %110, %115 : vector<2x16x256xf32>
    %c15_i32 = arith.constant 15 : i32
    %117 = tpu.dynamic_rotate %23 by %c15_i32 dim 1 : vector<2x16x256xf32>, i32 -> vector<2x16x256xf32>
    %c-1_i32 = arith.constant -1 : i32
    %118 = vector.broadcast %c-1_i32 : i32 to vector<16x256xi32>
    %119 = arith.cmpi sge, %25, %118 : vector<16x256xi32>
    %c15_i32_30 = arith.constant 15 : i32
    %120 = vector.broadcast %c15_i32_30 : i32 to vector<16x256xi32>
    %121 = arith.cmpi slt, %25, %120 : vector<16x256xi32>
    %122 = arith.andi %119, %121 : vector<16x256xi1>
    %cst_31 = arith.constant 0.000000e+00 : f32
    %123 = vector.shape_cast %122 : vector<16x256xi1> to vector<1x16x256xi1>
    %124 = vector.broadcast %123 : vector<1x16x256xi1> to vector<2x16x256xi1>
    %125 = vector.broadcast %cst_31 : f32 to vector<2x16x256xf32>
    %126 = arith.select %124, %117, %125 : vector<2x16x256xi1>, vector<2x16x256xf32>
    %127 = vector.extract_strided_slice %24 {offsets = [6, 0], sizes = [1, 256], strides = [1, 1]} : vector<11x256xf32> to vector<1x256xf32>
    %128 = vector.shape_cast %127 : vector<1x256xf32> to vector<256xf32>
    %129 = vector.shape_cast %128 : vector<256xf32> to vector<1x1x256xf32>
    %130 = vector.broadcast %129 : vector<1x1x256xf32> to vector<2x16x256xf32>
    %131 = arith.mulf %126, %130 : vector<2x16x256xf32>
    %132 = arith.addf %116, %131 : vector<2x16x256xf32>
    %c14_i32 = arith.constant 14 : i32
    %133 = tpu.dynamic_rotate %23 by %c14_i32 dim 1 : vector<2x16x256xf32>, i32 -> vector<2x16x256xf32>
    %c-2_i32 = arith.constant -2 : i32
    %134 = vector.broadcast %c-2_i32 : i32 to vector<16x256xi32>
    %135 = arith.cmpi sge, %25, %134 : vector<16x256xi32>
    %c14_i32_32 = arith.constant 14 : i32
    %136 = vector.broadcast %c14_i32_32 : i32 to vector<16x256xi32>
    %137 = arith.cmpi slt, %25, %136 : vector<16x256xi32>
    %138 = arith.andi %135, %137 : vector<16x256xi1>
    %cst_33 = arith.constant 0.000000e+00 : f32
    %139 = vector.shape_cast %138 : vector<16x256xi1> to vector<1x16x256xi1>
    %140 = vector.broadcast %139 : vector<1x16x256xi1> to vector<2x16x256xi1>
    %141 = vector.broadcast %cst_33 : f32 to vector<2x16x256xf32>
    %142 = arith.select %140, %133, %141 : vector<2x16x256xi1>, vector<2x16x256xf32>
    %143 = vector.extract_strided_slice %24 {offsets = [7, 0], sizes = [1, 256], strides = [1, 1]} : vector<11x256xf32> to vector<1x256xf32>
    %144 = vector.shape_cast %143 : vector<1x256xf32> to vector<256xf32>
    %145 = vector.shape_cast %144 : vector<256xf32> to vector<1x1x256xf32>
    %146 = vector.broadcast %145 : vector<1x1x256xf32> to vector<2x16x256xf32>
    %147 = arith.mulf %142, %146 : vector<2x16x256xf32>
    %148 = arith.addf %132, %147 : vector<2x16x256xf32>
    %c13_i32 = arith.constant 13 : i32
    %149 = tpu.dynamic_rotate %23 by %c13_i32 dim 1 : vector<2x16x256xf32>, i32 -> vector<2x16x256xf32>
    %c-3_i32 = arith.constant -3 : i32
    %150 = vector.broadcast %c-3_i32 : i32 to vector<16x256xi32>
    %151 = arith.cmpi sge, %25, %150 : vector<16x256xi32>
    %c13_i32_34 = arith.constant 13 : i32
    %152 = vector.broadcast %c13_i32_34 : i32 to vector<16x256xi32>
    %153 = arith.cmpi slt, %25, %152 : vector<16x256xi32>
    %154 = arith.andi %151, %153 : vector<16x256xi1>
    %cst_35 = arith.constant 0.000000e+00 : f32
    %155 = vector.shape_cast %154 : vector<16x256xi1> to vector<1x16x256xi1>
    %156 = vector.broadcast %155 : vector<1x16x256xi1> to vector<2x16x256xi1>
    %157 = vector.broadcast %cst_35 : f32 to vector<2x16x256xf32>
    %158 = arith.select %156, %149, %157 : vector<2x16x256xi1>, vector<2x16x256xf32>
    %159 = vector.extract_strided_slice %24 {offsets = [8, 0], sizes = [1, 256], strides = [1, 1]} : vector<11x256xf32> to vector<1x256xf32>
    %160 = vector.shape_cast %159 : vector<1x256xf32> to vector<256xf32>
    %161 = vector.shape_cast %160 : vector<256xf32> to vector<1x1x256xf32>
    %162 = vector.broadcast %161 : vector<1x1x256xf32> to vector<2x16x256xf32>
    %163 = arith.mulf %158, %162 : vector<2x16x256xf32>
    %164 = arith.addf %148, %163 : vector<2x16x256xf32>
    %c12_i32 = arith.constant 12 : i32
    %165 = tpu.dynamic_rotate %23 by %c12_i32 dim 1 : vector<2x16x256xf32>, i32 -> vector<2x16x256xf32>
    %c-4_i32 = arith.constant -4 : i32
    %166 = vector.broadcast %c-4_i32 : i32 to vector<16x256xi32>
    %167 = arith.cmpi sge, %25, %166 : vector<16x256xi32>
    %c12_i32_36 = arith.constant 12 : i32
    %168 = vector.broadcast %c12_i32_36 : i32 to vector<16x256xi32>
    %169 = arith.cmpi slt, %25, %168 : vector<16x256xi32>
    %170 = arith.andi %167, %169 : vector<16x256xi1>
    %cst_37 = arith.constant 0.000000e+00 : f32
    %171 = vector.shape_cast %170 : vector<16x256xi1> to vector<1x16x256xi1>
    %172 = vector.broadcast %171 : vector<1x16x256xi1> to vector<2x16x256xi1>
    %173 = vector.broadcast %cst_37 : f32 to vector<2x16x256xf32>
    %174 = arith.select %172, %165, %173 : vector<2x16x256xi1>, vector<2x16x256xf32>
    %175 = vector.extract_strided_slice %24 {offsets = [9, 0], sizes = [1, 256], strides = [1, 1]} : vector<11x256xf32> to vector<1x256xf32>
    %176 = vector.shape_cast %175 : vector<1x256xf32> to vector<256xf32>
    %177 = vector.shape_cast %176 : vector<256xf32> to vector<1x1x256xf32>
    %178 = vector.broadcast %177 : vector<1x1x256xf32> to vector<2x16x256xf32>
    %179 = arith.mulf %174, %178 : vector<2x16x256xf32>
    %180 = arith.addf %164, %179 : vector<2x16x256xf32>
    %c11_i32 = arith.constant 11 : i32
    %181 = tpu.dynamic_rotate %23 by %c11_i32 dim 1 : vector<2x16x256xf32>, i32 -> vector<2x16x256xf32>
    %c-5_i32 = arith.constant -5 : i32
    %182 = vector.broadcast %c-5_i32 : i32 to vector<16x256xi32>
    %183 = arith.cmpi sge, %25, %182 : vector<16x256xi32>
    %c11_i32_38 = arith.constant 11 : i32
    %184 = vector.broadcast %c11_i32_38 : i32 to vector<16x256xi32>
    %185 = arith.cmpi slt, %25, %184 : vector<16x256xi32>
    %186 = arith.andi %183, %185 : vector<16x256xi1>
    %cst_39 = arith.constant 0.000000e+00 : f32
    %187 = vector.shape_cast %186 : vector<16x256xi1> to vector<1x16x256xi1>
    %188 = vector.broadcast %187 : vector<1x16x256xi1> to vector<2x16x256xi1>
    %189 = vector.broadcast %cst_39 : f32 to vector<2x16x256xf32>
    %190 = arith.select %188, %181, %189 : vector<2x16x256xi1>, vector<2x16x256xf32>
    %191 = vector.extract_strided_slice %24 {offsets = [10, 0], sizes = [1, 256], strides = [1, 1]} : vector<11x256xf32> to vector<1x256xf32>
    %192 = vector.shape_cast %191 : vector<1x256xf32> to vector<256xf32>
    %193 = vector.shape_cast %192 : vector<256xf32> to vector<1x1x256xf32>
    %194 = vector.broadcast %193 : vector<1x1x256xf32> to vector<2x16x256xf32>
    %195 = arith.mulf %190, %194 : vector<2x16x256xf32>
    %196 = arith.addf %180, %195 : vector<2x16x256xf32>
    %197 = vector.extract_strided_slice %196 {offsets = [0, 0, 0], sizes = [2, 16, 128], strides = [1, 1, 1]} : vector<2x16x256xf32> to vector<2x16x128xf32>
    %198 = vector.extract_strided_slice %196 {offsets = [0, 0, 128], sizes = [2, 16, 128], strides = [1, 1, 1]} : vector<2x16x256xf32> to vector<2x16x128xf32>
    %199 = arith.negf %198 : vector<2x16x128xf32>
    %200 = math.exp %199 : vector<2x16x128xf32>
    %cst_40 = arith.constant 1.000000e+00 : f32
    %201 = vector.broadcast %cst_40 : f32 to vector<2x16x128xf32>
    %202 = arith.addf %201, %200 : vector<2x16x128xf32>
    %203 = arith.divf %201, %202 : vector<2x16x128xf32>
    %204 = arith.mulf %198, %203 : vector<2x16x128xf32>
    %205 = arith.mulf %197, %204 : vector<2x16x128xf32>
    %cst_41 = arith.constant dense<0.000000e+00> : vector<2x128xf32>
    %206 = vector.multi_reduction <add>, %205, %cst_41 [1] : vector<2x16x128xf32> to vector<2x128xf32>
    %cst_42 = arith.constant 1.600000e+01 : f32
    %207 = vector.broadcast %cst_42 : f32 to vector<2x128xf32>
    %208 = arith.divf %206, %207 : vector<2x128xf32>
    %209 = arith.truncf %208 : vector<2x128xf32> to vector<2x128xbf16>
    %c0_43 = arith.constant 0 : index
    %c0_44 = arith.constant 0 : index
    %210 = vector.load %arg9[%c0_43, %c0_44] : memref<128x128xbf16, #tpu.memory_space<vmem>>, vector<128x128xbf16>
    %cst_45 = arith.constant dense<0.000000e+00> : vector<2x128xf32>
    %211 = tpu.matmul %209, %210, %cst_45 {dimension_numbers = #tpu.dot_dimension_numbers<[1], [0], [0], [1], [0, 0, 1, 1], [], []>} : vector<2x128xbf16>, vector<128x128xbf16>, vector<2x128xf32> -> vector<2x128xf32>
    %c0_46 = arith.constant 0 : index
    %c0_47 = arith.constant 0 : index
    %212 = vector.load %arg10[%c0_46, %c0_47] : memref<1x128xf32, #tpu.memory_space<vmem>>, vector<1x128xf32>
    %213 = vector.broadcast %212 : vector<1x128xf32> to vector<2x128xf32>
    %214 = arith.addf %211, %213 : vector<2x128xf32>
    %215 = arith.negf %214 : vector<2x128xf32>
    %216 = math.exp %215 : vector<2x128xf32>
    %cst_48 = arith.constant 1.000000e+00 : f32
    %217 = vector.broadcast %cst_48 : f32 to vector<2x128xf32>
    %218 = arith.addf %217, %216 : vector<2x128xf32>
    %219 = arith.divf %217, %218 : vector<2x128xf32>
    %220 = vector.shape_cast %219 : vector<2x128xf32> to vector<2x1x128xf32>
    %221 = vector.broadcast %220 : vector<2x1x128xf32> to vector<2x16x128xf32>
    %222 = arith.mulf %205, %221 : vector<2x16x128xf32>
    %223 = vector.shape_cast %222 : vector<2x16x128xf32> to vector<32x128xf32>
    %224 = arith.truncf %223 : vector<32x128xf32> to vector<32x128xbf16>
    %c0_49 = arith.constant 0 : index
    %c0_50 = arith.constant 0 : index
    %225 = vector.load %arg11[%c0_49, %c0_50] : memref<128x128xbf16, #tpu.memory_space<vmem>>, vector<128x128xbf16>
    %cst_51 = arith.constant dense<0.000000e+00> : vector<32x128xf32>
    %226 = tpu.matmul %224, %225, %cst_51 {dimension_numbers = #tpu.dot_dimension_numbers<[1], [0], [0], [1], [0, 0, 1, 1], [], []>} : vector<32x128xbf16>, vector<128x128xbf16>, vector<32x128xf32> -> vector<32x128xf32>
    %c0_52 = arith.constant 0 : index
    %c0_53 = arith.constant 0 : index
    %227 = vector.load %arg12[%c0_52, %c0_53] : memref<1x128xf32, #tpu.memory_space<vmem>>, vector<1x128xf32>
    %228 = vector.broadcast %227 : vector<1x128xf32> to vector<32x128xf32>
    %229 = arith.addf %226, %228 : vector<32x128xf32>
    %230 = arith.addf %1, %229 : vector<32x128xf32>
    %cst_54 = arith.constant dense<0.000000e+00> : vector<32x128xf32>
    %231 = tpu.matmul %230, %2, %cst_54 {dimension_numbers = #tpu.dot_dimension_numbers<[1], [0], [0], [1], [0, 0, 1, 1], [], []>} : vector<32x128xf32>, vector<128x128xf32>, vector<32x128xf32> -> vector<32x128xf32>
    %232 = arith.subf %230, %231 : vector<32x128xf32>
    %233 = arith.mulf %232, %232 : vector<32x128xf32>
    %cst_55 = arith.constant dense<0.000000e+00> : vector<32x128xf32>
    %234 = tpu.matmul %233, %2, %cst_55 {dimension_numbers = #tpu.dot_dimension_numbers<[1], [0], [0], [1], [0, 0, 1, 1], [], []>} : vector<32x128xf32>, vector<128x128xf32>, vector<32x128xf32> -> vector<32x128xf32>
    %cst_56 = arith.constant 9.99999974E-6 : f32
    %235 = vector.broadcast %cst_56 : f32 to vector<32x128xf32>
    %236 = arith.addf %234, %235 : vector<32x128xf32>
    %237 = math.rsqrt %236 : vector<32x128xf32>
    %238 = arith.mulf %232, %237 : vector<32x128xf32>
    %c0_57 = arith.constant 0 : index
    %c0_58 = arith.constant 0 : index
    %239 = vector.load %arg13[%c0_57, %c0_58] : memref<1x128xf32, #tpu.memory_space<vmem>>, vector<1x128xf32>
    %240 = vector.broadcast %239 : vector<1x128xf32> to vector<32x128xf32>
    %241 = arith.mulf %238, %240 : vector<32x128xf32>
    %c0_59 = arith.constant 0 : index
    %c0_60 = arith.constant 0 : index
    %242 = vector.load %arg14[%c0_59, %c0_60] : memref<1x128xf32, #tpu.memory_space<vmem>>, vector<1x128xf32>
    %243 = vector.broadcast %242 : vector<1x128xf32> to vector<32x128xf32>
    %244 = arith.addf %241, %243 : vector<32x128xf32>
    %245 = arith.truncf %244 : vector<32x128xf32> to vector<32x128xbf16>
    %c0_61 = arith.constant 0 : index
    %c0_62 = arith.constant 0 : index
    %246 = vector.load %arg15[%c0_61, %c0_62] : memref<128x256xbf16, #tpu.memory_space<vmem>>, vector<128x256xbf16>
    %cst_63 = arith.constant dense<0.000000e+00> : vector<32x256xf32>
    %247 = tpu.matmul %245, %246, %cst_63 {dimension_numbers = #tpu.dot_dimension_numbers<[1], [0], [0], [1], [0, 0, 1, 1], [], []>} : vector<32x128xbf16>, vector<128x256xbf16>, vector<32x256xf32> -> vector<32x256xf32>
    %c0_64 = arith.constant 0 : index
    %c0_65 = arith.constant 0 : index
    %248 = vector.load %arg16[%c0_64, %c0_65] : memref<1x256xf32, #tpu.memory_space<vmem>>, vector<1x256xf32>
    %249 = vector.broadcast %248 : vector<1x256xf32> to vector<32x256xf32>
    %250 = arith.addf %247, %249 : vector<32x256xf32>
    %251 = vector.extract_strided_slice %250 {offsets = [0, 0], sizes = [32, 128], strides = [1, 1]} : vector<32x256xf32> to vector<32x128xf32>
    %252 = vector.extract_strided_slice %250 {offsets = [0, 128], sizes = [32, 128], strides = [1, 1]} : vector<32x256xf32> to vector<32x128xf32>
    %253 = arith.negf %252 : vector<32x128xf32>
    %254 = math.exp %253 : vector<32x128xf32>
    %cst_66 = arith.constant 1.000000e+00 : f32
    %255 = vector.broadcast %cst_66 : f32 to vector<32x128xf32>
    %256 = arith.addf %255, %254 : vector<32x128xf32>
    %257 = arith.divf %255, %256 : vector<32x128xf32>
    %258 = arith.mulf %252, %257 : vector<32x128xf32>
    %259 = arith.mulf %251, %258 : vector<32x128xf32>
    %260 = arith.truncf %259 : vector<32x128xf32> to vector<32x128xbf16>
    %c0_67 = arith.constant 0 : index
    %c0_68 = arith.constant 0 : index
    %261 = vector.load %arg17[%c0_67, %c0_68] : memref<128x128xbf16, #tpu.memory_space<vmem>>, vector<128x128xbf16>
    %cst_69 = arith.constant dense<0.000000e+00> : vector<32x128xf32>
    %262 = tpu.matmul %260, %261, %cst_69 {dimension_numbers = #tpu.dot_dimension_numbers<[1], [0], [0], [1], [0, 0, 1, 1], [], []>} : vector<32x128xbf16>, vector<128x128xbf16>, vector<32x128xf32> -> vector<32x128xf32>
    %c0_70 = arith.constant 0 : index
    %c0_71 = arith.constant 0 : index
    %263 = vector.load %arg18[%c0_70, %c0_71] : memref<1x128xf32, #tpu.memory_space<vmem>>, vector<1x128xf32>
    %264 = vector.broadcast %263 : vector<1x128xf32> to vector<32x128xf32>
    %265 = arith.addf %262, %264 : vector<32x128xf32>
    %266 = arith.addf %230, %265 : vector<32x128xf32>
    %c0_72 = arith.constant 0 : index
    %c0_73 = arith.constant 0 : index
    %267 = vector.load %arg19[%c0_72, %c0_73] : memref<1x128xf32, #tpu.memory_space<vmem>>, vector<1x128xf32>
    %268 = vector.broadcast %267 : vector<1x128xf32> to vector<32x128xf32>
    %269 = arith.mulf %1, %268 : vector<32x128xf32>
    %270 = arith.addf %266, %269 : vector<32x128xf32>
    %271 = vector.shape_cast %270 : vector<32x128xf32> to vector<2x16x128xf32>
    %c0_74 = arith.constant 0 : index
    %c0_75 = arith.constant 0 : index
    %c0_76 = arith.constant 0 : index
    %272 = vector.load %arg20[%c0_74, %c0_75, %c0_76] : memref<2x16x128xf32, #tpu.memory_space<vmem>>, vector<2x16x128xf32>
    tpu.vector_store %arg20[%c0_74, %c0_75, %c0_76], %271 {strides = array<i32>} : memref<2x16x128xf32, #tpu.memory_space<vmem>>, vector<2x16x128xf32>,
    return
  }
  func.func @transform_0(%arg0: i32) -> (i32, i32, i32) {
    %c0_i32 = arith.constant 0 : i32
    %c0_i32_0 = arith.constant 0 : i32
    %c0_i32_1 = arith.constant 0 : i32
    return %arg0, %c0_i32, %c0_i32_0 : i32, i32, i32
  }
  func.func @transform_1(%arg0: i32) -> (i32, i32) {
    %c0_i32 = arith.constant 0 : i32
    %c0_i32_0 = arith.constant 0 : i32
    %c0_i32_1 = arith.constant 0 : i32
    return %c0_i32, %c0_i32_0 : i32, i32
  }
  func.func @transform_2(%arg0: i32) -> (i32, i32) {
    %c0_i32 = arith.constant 0 : i32
    %c0_i32_0 = arith.constant 0 : i32
    %c0_i32_1 = arith.constant 0 : i32
    return %c0_i32, %c0_i32_0 : i32, i32
  }
  func.func @transform_3(%arg0: i32) -> (i32, i32) {
    %c0_i32 = arith.constant 0 : i32
    %c0_i32_0 = arith.constant 0 : i32
    %c0_i32_1 = arith.constant 0 : i32
    return %c0_i32, %c0_i32_0 : i32, i32
  }
  func.func @transform_4(%arg0: i32) -> (i32, i32) {
    %c0_i32 = arith.constant 0 : i32
    %c0_i32_0 = arith.constant 0 : i32
    %c0_i32_1 = arith.constant 0 : i32
    return %c0_i32, %c0_i32_0 : i32, i32
  }
  func.func @transform_5(%arg0: i32) -> (i32, i32) {
    %c0_i32 = arith.constant 0 : i32
    %c0_i32_0 = arith.constant 0 : i32
    %c0_i32_1 = arith.constant 0 : i32
    return %c0_i32, %c0_i32_0 : i32, i32
  }
  func.func @transform_6(%arg0: i32) -> (i32, i32) {
    %c0_i32 = arith.constant 0 : i32
    %c0_i32_0 = arith.constant 0 : i32
    %c0_i32_1 = arith.constant 0 : i32
    return %c0_i32, %c0_i32_0 : i32, i32
  }
  func.func @transform_7(%arg0: i32) -> (i32, i32) {
    %c0_i32 = arith.constant 0 : i32
    %c0_i32_0 = arith.constant 0 : i32
    %c0_i32_1 = arith.constant 0 : i32
    return %c0_i32, %c0_i32_0 : i32, i32
  }
  func.func @transform_8(%arg0: i32) -> (i32, i32) {
    %c0_i32 = arith.constant 0 : i32
    %c0_i32_0 = arith.constant 0 : i32
    %c0_i32_1 = arith.constant 0 : i32
    return %c0_i32, %c0_i32_0 : i32, i32
  }
  func.func @transform_9(%arg0: i32) -> (i32, i32) {
    %c0_i32 = arith.constant 0 : i32
    %c0_i32_0 = arith.constant 0 : i32
    %c0_i32_1 = arith.constant 0 : i32
    return %c0_i32, %c0_i32_0 : i32, i32
  }
  func.func @transform_10(%arg0: i32) -> (i32, i32) {
    %c0_i32 = arith.constant 0 : i32
    %c0_i32_0 = arith.constant 0 : i32
    %c0_i32_1 = arith.constant 0 : i32
    return %c0_i32, %c0_i32_0 : i32, i32
  }
  func.func @transform_11(%arg0: i32) -> (i32, i32) {
    %c0_i32 = arith.constant 0 : i32
    %c0_i32_0 = arith.constant 0 : i32
    %c0_i32_1 = arith.constant 0 : i32
    return %c0_i32, %c0_i32_0 : i32, i32
  }
  func.func @transform_12(%arg0: i32) -> (i32, i32) {
    %c0_i32 = arith.constant 0 : i32
    %c0_i32_0 = arith.constant 0 : i32
    %c0_i32_1 = arith.constant 0 : i32
    return %c0_i32, %c0_i32_0 : i32, i32
  }
  func.func @transform_13(%arg0: i32) -> (i32, i32) {
    %c0_i32 = arith.constant 0 : i32
    %c0_i32_0 = arith.constant 0 : i32
    %c0_i32_1 = arith.constant 0 : i32
    return %c0_i32, %c0_i32_0 : i32, i32
  }
  func.func @transform_14(%arg0: i32) -> (i32, i32) {
    %c0_i32 = arith.constant 0 : i32
    %c0_i32_0 = arith.constant 0 : i32
    %c0_i32_1 = arith.constant 0 : i32
    return %c0_i32, %c0_i32_0 : i32, i32
  }
  func.func @transform_15(%arg0: i32) -> (i32, i32) {
    %c0_i32 = arith.constant 0 : i32
    %c0_i32_0 = arith.constant 0 : i32
    %c0_i32_1 = arith.constant 0 : i32
    return %c0_i32, %c0_i32_0 : i32, i32
  }
  func.func @transform_16(%arg0: i32) -> (i32, i32) {
    %c0_i32 = arith.constant 0 : i32
    %c0_i32_0 = arith.constant 0 : i32
    %c0_i32_1 = arith.constant 0 : i32
    return %c0_i32, %c0_i32_0 : i32, i32
  }
  func.func @transform_17(%arg0: i32) -> (i32, i32) {
    %c0_i32 = arith.constant 0 : i32
    %c0_i32_0 = arith.constant 0 : i32
    %c0_i32_1 = arith.constant 0 : i32
    return %c0_i32, %c0_i32_0 : i32, i32
  }
  func.func @transform_18(%arg0: i32) -> (i32, i32) {
    %c0_i32 = arith.constant 0 : i32
    %c0_i32_0 = arith.constant 0 : i32
    %c0_i32_1 = arith.constant 0 : i32
    return %c0_i32, %c0_i32_0 : i32, i32
  }
  func.func @transform_19(%arg0: i32) -> (i32, i32, i32) {
    %c0_i32 = arith.constant 0 : i32
    %c0_i32_0 = arith.constant 0 : i32
    %c0_i32_1 = arith.constant 0 : i32
    return %arg0, %c0_i32, %c0_i32_0 : i32, i32, i32
  }
}

module attributes {stable_mosaic.version = 11 : i64} {
  func.func @kern(%arg0: i32, %arg1: memref<2x128x16xf32, #tpu.memory_space<vmem>>, %arg2: memref<128x16xf32, #tpu.memory_space<vmem>>, %arg3: memref<1x16xf32, #tpu.memory_space<vmem>>, %arg4: memref<1x16xf32, #tpu.memory_space<vmem>>, %arg5: memref<1x16xf32, #tpu.memory_space<vmem>>, %arg6: memref<1x16xf32, #tpu.memory_space<vmem>>, %arg7: memref<1x16xf32, #tpu.memory_space<vmem>>, %arg8: memref<2x16xf32, #tpu.memory_space<vmem>>) attributes {dimension_semantics = [#tpu.dimension_semantics<arbitrary>], iteration_bounds = array<i64: 1>, scalar_prefetch = 0 : i64, scratch_operands = 0 : i64, tpu.core_type = #tpu.core_type<tc>, window_params = [{pipeline_mode = #tpu.pipeline_mode<synchronous>, transform_indices = @transform_0, window_bounds = array<i64: 2, 128, 16>}, {pipeline_mode = #tpu.pipeline_mode<synchronous>, transform_indices = @transform_1, window_bounds = array<i64: 128, 16>}, {pipeline_mode = #tpu.pipeline_mode<synchronous>, transform_indices = @transform_2, window_bounds = array<i64: 1, 16>}, {pipeline_mode = #tpu.pipeline_mode<synchronous>, transform_indices = @transform_3, window_bounds = array<i64: 1, 16>}, {pipeline_mode = #tpu.pipeline_mode<synchronous>, transform_indices = @transform_4, window_bounds = array<i64: 1, 16>}, {pipeline_mode = #tpu.pipeline_mode<synchronous>, transform_indices = @transform_5, window_bounds = array<i64: 1, 16>}, {pipeline_mode = #tpu.pipeline_mode<synchronous>, transform_indices = @transform_6, window_bounds = array<i64: 1, 16>}, {pipeline_mode = #tpu.pipeline_mode<synchronous>, transform_indices = @transform_7, window_bounds = array<i64: 2, 16>}]} {
    %c0 = arith.constant 0 : index
    %c0_0 = arith.constant 0 : index
    %c0_1 = arith.constant 0 : index
    %0 = vector.load %arg1[%c0, %c0_0, %c0_1] : memref<2x128x16xf32, #tpu.memory_space<vmem>>, vector<2x128x16xf32>
    %cst = arith.constant dense<0.000000e+00> : vector<2x128xf32>
    %1 = vector.multi_reduction <add>, %0, %cst [2] : vector<2x128x16xf32> to vector<2x128xf32>
    %2 = vector.shape_cast %1 : vector<2x128xf32> to vector<2x128x1xf32>
    %cst_2 = arith.constant 1.600000e+01 : f32
    %3 = vector.broadcast %cst_2 : f32 to vector<2x128x1xf32>
    %4 = arith.divf %2, %3 : vector<2x128x1xf32>
    %5 = vector.broadcast %4 : vector<2x128x1xf32> to vector<2x128x16xf32>
    %6 = arith.subf %0, %5 : vector<2x128x16xf32>
    %7 = arith.mulf %6, %6 : vector<2x128x16xf32>
    %cst_3 = arith.constant dense<0.000000e+00> : vector<2x128xf32>
    %8 = vector.multi_reduction <add>, %7, %cst_3 [2] : vector<2x128x16xf32> to vector<2x128xf32>
    %9 = vector.shape_cast %8 : vector<2x128xf32> to vector<2x128x1xf32>
    %cst_4 = arith.constant 1.600000e+01 : f32
    %10 = vector.broadcast %cst_4 : f32 to vector<2x128x1xf32>
    %11 = arith.divf %9, %10 : vector<2x128x1xf32>
    %cst_5 = arith.constant 9.99999974E-6 : f32
    %12 = vector.broadcast %cst_5 : f32 to vector<2x128x1xf32>
    %13 = arith.addf %11, %12 : vector<2x128x1xf32>
    %14 = math.rsqrt %13 : vector<2x128x1xf32>
    %15 = vector.broadcast %14 : vector<2x128x1xf32> to vector<2x128x16xf32>
    %16 = arith.mulf %6, %15 : vector<2x128x16xf32>
    %c0_6 = arith.constant 0 : index
    %c0_7 = arith.constant 0 : index
    %17 = vector.load %arg3[%c0_6, %c0_7] : memref<1x16xf32, #tpu.memory_space<vmem>>, vector<1x16xf32>
    %18 = vector.shape_cast %17 : vector<1x16xf32> to vector<1x1x16xf32>
    %19 = vector.broadcast %18 : vector<1x1x16xf32> to vector<2x128x16xf32>
    %20 = arith.mulf %16, %19 : vector<2x128x16xf32>
    %c0_8 = arith.constant 0 : index
    %c0_9 = arith.constant 0 : index
    %21 = vector.load %arg4[%c0_8, %c0_9] : memref<1x16xf32, #tpu.memory_space<vmem>>, vector<1x16xf32>
    %22 = vector.shape_cast %21 : vector<1x16xf32> to vector<1x1x16xf32>
    %23 = vector.broadcast %22 : vector<1x1x16xf32> to vector<2x128x16xf32>
    %24 = arith.addf %20, %23 : vector<2x128x16xf32>
    %cst_10 = arith.constant dense<0.000000e+00> : vector<2x128xf32>
    %25 = vector.multi_reduction <add>, %24, %cst_10 [2] : vector<2x128x16xf32> to vector<2x128xf32>
    %c0_11 = arith.constant 0 : index
    %c0_12 = arith.constant 0 : index
    %26 = vector.load %arg2[%c0_11, %c0_12] : memref<128x16xf32, #tpu.memory_space<vmem>>, vector<128x16xf32>
    %cst_13 = arith.constant dense<0.000000e+00> : vector<2x16xf32>
    %27 = tpu.matmul %25, %26, %cst_13 {dimension_numbers = #tpu.dot_dimension_numbers<[1], [0], [0], [1], [0, 0, 1, 1], [], []>} : vector<2x128xf32>, vector<128x16xf32>, vector<2x16xf32> -> vector<2x16xf32>
    %cst_14 = arith.constant 1.280000e+02 : f32
    %28 = vector.broadcast %cst_14 : f32 to vector<2x16xf32>
    %29 = arith.divf %27, %28 : vector<2x16xf32>
    %c0_15 = arith.constant 0 : index
    %c0_16 = arith.constant 0 : index
    %30 = vector.load %arg5[%c0_15, %c0_16] : memref<1x16xf32, #tpu.memory_space<vmem>>, vector<1x16xf32>
    %31 = arith.negf %29 : vector<2x16xf32>
    %32 = math.exp %31 : vector<2x16xf32>
    %cst_17 = arith.constant 1.000000e+00 : f32
    %33 = vector.broadcast %cst_17 : f32 to vector<2x16xf32>
    %34 = arith.addf %33, %32 : vector<2x16xf32>
    %35 = arith.divf %33, %34 : vector<2x16xf32>
    %36 = arith.mulf %29, %35 : vector<2x16xf32>
    %37 = vector.broadcast %30 : vector<1x16xf32> to vector<2x16xf32>
    %38 = arith.mulf %37, %36 : vector<2x16xf32>
    %c0_18 = arith.constant 0 : index
    %c0_19 = arith.constant 0 : index
    %39 = vector.load %arg6[%c0_18, %c0_19] : memref<1x16xf32, #tpu.memory_space<vmem>>, vector<1x16xf32>
    %40 = vector.broadcast %39 : vector<1x16xf32> to vector<2x16xf32>
    %41 = arith.mulf %40, %29 : vector<2x16xf32>
    %42 = arith.addf %38, %41 : vector<2x16xf32>
    %c0_20 = arith.constant 0 : index
    %c0_21 = arith.constant 0 : index
    %43 = vector.load %arg7[%c0_20, %c0_21] : memref<1x16xf32, #tpu.memory_space<vmem>>, vector<1x16xf32>
    %44 = vector.broadcast %43 : vector<1x16xf32> to vector<2x16xf32>
    %45 = arith.addf %42, %44 : vector<2x16xf32>
    %c0_22 = arith.constant 0 : index
    %c0_23 = arith.constant 0 : index
    %46 = vector.load %arg8[%c0_22, %c0_23] : memref<2x16xf32, #tpu.memory_space<vmem>>, vector<2x16xf32>
    tpu.vector_store %arg8[%c0_22, %c0_23], %45 {strides = array<i32>} : memref<2x16xf32, #tpu.memory_space<vmem>>, vector<2x16xf32>,
    return
  }
  func.func @transform_0(%arg0: i32) -> (i32, i32, i32) {
    %c0_i32 = arith.constant 0 : i32
    %c0_i32_0 = arith.constant 0 : i32
    %c0_i32_1 = arith.constant 0 : i32
    %c0_i32_2 = arith.constant 0 : i32
    return %c0_i32, %c0_i32_0, %c0_i32_1 : i32, i32, i32
  }
  func.func @transform_1(%arg0: i32) -> (i32, i32) {
    %c0_i32 = arith.constant 0 : i32
    %c0_i32_0 = arith.constant 0 : i32
    %c0_i32_1 = arith.constant 0 : i32
    return %c0_i32, %c0_i32_0 : i32, i32
  }
  func.func @transform_2(%arg0: i32) -> (i32, i32) {
    %c0_i32 = arith.constant 0 : i32
    %c0_i32_0 = arith.constant 0 : i32
    %c0_i32_1 = arith.constant 0 : i32
    return %c0_i32, %c0_i32_0 : i32, i32
  }
  func.func @transform_3(%arg0: i32) -> (i32, i32) {
    %c0_i32 = arith.constant 0 : i32
    %c0_i32_0 = arith.constant 0 : i32
    %c0_i32_1 = arith.constant 0 : i32
    return %c0_i32, %c0_i32_0 : i32, i32
  }
  func.func @transform_4(%arg0: i32) -> (i32, i32) {
    %c0_i32 = arith.constant 0 : i32
    %c0_i32_0 = arith.constant 0 : i32
    %c0_i32_1 = arith.constant 0 : i32
    return %c0_i32, %c0_i32_0 : i32, i32
  }
  func.func @transform_5(%arg0: i32) -> (i32, i32) {
    %c0_i32 = arith.constant 0 : i32
    %c0_i32_0 = arith.constant 0 : i32
    %c0_i32_1 = arith.constant 0 : i32
    return %c0_i32, %c0_i32_0 : i32, i32
  }
  func.func @transform_6(%arg0: i32) -> (i32, i32) {
    %c0_i32 = arith.constant 0 : i32
    %c0_i32_0 = arith.constant 0 : i32
    %c0_i32_1 = arith.constant 0 : i32
    return %c0_i32, %c0_i32_0 : i32, i32
  }
  func.func @transform_7(%arg0: i32) -> (i32, i32) {
    %c0_i32 = arith.constant 0 : i32
    %c0_i32_0 = arith.constant 0 : i32
    %c0_i32_1 = arith.constant 0 : i32
    return %c0_i32, %c0_i32_0 : i32, i32
  }
}

module attributes {stable_mosaic.version = 11 : i64} {
  func.func @kern(%arg0: i32, %arg1: memref<4x8x128xf32, #tpu.memory_space<vmem>>, %arg2: memref<128x128xf32, #tpu.memory_space<vmem>>, %arg3: memref<1x128xf32, #tpu.memory_space<vmem>>, %arg4: memref<1x128xf32, #tpu.memory_space<vmem>>, %arg5: memref<128x256xbf16, #tpu.memory_space<vmem>>, %arg6: memref<1x256xf32, #tpu.memory_space<vmem>>, %arg7: memref<11x256xf32, #tpu.memory_space<vmem>>, %arg8: memref<1x256xf32, #tpu.memory_space<vmem>>, %arg9: memref<128x128xbf16, #tpu.memory_space<vmem>>, %arg10: memref<1x128xf32, #tpu.memory_space<vmem>>, %arg11: memref<128x128xbf16, #tpu.memory_space<vmem>>, %arg12: memref<1x128xf32, #tpu.memory_space<vmem>>, %arg13: memref<1x128xf32, #tpu.memory_space<vmem>>, %arg14: memref<1x128xf32, #tpu.memory_space<vmem>>, %arg15: memref<128x256xbf16, #tpu.memory_space<vmem>>, %arg16: memref<1x256xf32, #tpu.memory_space<vmem>>, %arg17: memref<128x128xbf16, #tpu.memory_space<vmem>>, %arg18: memref<1x128xf32, #tpu.memory_space<vmem>>, %arg19: memref<1x128xf32, #tpu.memory_space<vmem>>, %arg20: memref<4x8x128xf32, #tpu.memory_space<vmem>>) attributes {dimension_semantics = [#tpu.dimension_semantics<parallel>], iteration_bounds = array<i64: 1>, scalar_prefetch = 0 : i64, scratch_operands = 0 : i64, tpu.core_type = #tpu.core_type<tc>, window_params = [{transform_indices = @transform_0, window_bounds = array<i64: 4, 8, 128>}, {pipeline_mode = #tpu.pipeline_mode<synchronous>, transform_indices = @transform_1, window_bounds = array<i64: 128, 128>}, {pipeline_mode = #tpu.pipeline_mode<synchronous>, transform_indices = @transform_2, window_bounds = array<i64: 1, 128>}, {pipeline_mode = #tpu.pipeline_mode<synchronous>, transform_indices = @transform_3, window_bounds = array<i64: 1, 128>}, {pipeline_mode = #tpu.pipeline_mode<synchronous>, transform_indices = @transform_4, window_bounds = array<i64: 128, 256>}, {pipeline_mode = #tpu.pipeline_mode<synchronous>, transform_indices = @transform_5, window_bounds = array<i64: 1, 256>}, {pipeline_mode = #tpu.pipeline_mode<synchronous>, transform_indices = @transform_6, window_bounds = array<i64: 11, 256>}, {pipeline_mode = #tpu.pipeline_mode<synchronous>, transform_indices = @transform_7, window_bounds = array<i64: 1, 256>}, {pipeline_mode = #tpu.pipeline_mode<synchronous>, transform_indices = @transform_8, window_bounds = array<i64: 128, 128>}, {pipeline_mode = #tpu.pipeline_mode<synchronous>, transform_indices = @transform_9, window_bounds = array<i64: 1, 128>}, {pipeline_mode = #tpu.pipeline_mode<synchronous>, transform_indices = @transform_10, window_bounds = array<i64: 128, 128>}, {pipeline_mode = #tpu.pipeline_mode<synchronous>, transform_indices = @transform_11, window_bounds = array<i64: 1, 128>}, {pipeline_mode = #tpu.pipeline_mode<synchronous>, transform_indices = @transform_12, window_bounds = array<i64: 1, 128>}, {pipeline_mode = #tpu.pipeline_mode<synchronous>, transform_indices = @transform_13, window_bounds = array<i64: 1, 128>}, {pipeline_mode = #tpu.pipeline_mode<synchronous>, transform_indices = @transform_14, window_bounds = array<i64: 128, 256>}, {pipeline_mode = #tpu.pipeline_mode<synchronous>, transform_indices = @transform_15, window_bounds = array<i64: 1, 256>}, {pipeline_mode = #tpu.pipeline_mode<synchronous>, transform_indices = @transform_16, window_bounds = array<i64: 128, 128>}, {pipeline_mode = #tpu.pipeline_mode<synchronous>, transform_indices = @transform_17, window_bounds = array<i64: 1, 128>}, {pipeline_mode = #tpu.pipeline_mode<synchronous>, transform_indices = @transform_18, window_bounds = array<i64: 1, 128>}, {transform_indices = @transform_19, window_bounds = array<i64: 4, 8, 128>}]} {
    %c0 = arith.constant 0 : index
    %c0_0 = arith.constant 0 : index
    %c0_1 = arith.constant 0 : index
    %0 = vector.load %arg1[%c0, %c0_0, %c0_1] : memref<4x8x128xf32, #tpu.memory_space<vmem>>, vector<4x8x128xf32>
    %1 = vector.shape_cast %0 : vector<4x8x128xf32> to vector<32x128xf32>
    %c0_2 = arith.constant 0 : index
    %c0_3 = arith.constant 0 : index
    %2 = vector.load %arg2[%c0_2, %c0_3] : memref<128x128xf32, #tpu.memory_space<vmem>>, vector<128x128xf32>
    %cst = arith.constant dense<0.000000e+00> : vector<32x128xf32>
    %3 = tpu.matmul %1, %2, %cst {dimension_numbers = #tpu.dot_dimension_numbers<[1], [0], [0], [1], [0, 0, 1, 1], [], []>} : vector<32x128xf32>, vector<128x128xf32>, vector<32x128xf32> -> vector<32x128xf32>
    %4 = arith.subf %1, %3 : vector<32x128xf32>
    %5 = arith.mulf %4, %4 : vector<32x128xf32>
    %cst_4 = arith.constant dense<0.000000e+00> : vector<32x128xf32>
    %6 = tpu.matmul %5, %2, %cst_4 {dimension_numbers = #tpu.dot_dimension_numbers<[1], [0], [0], [1], [0, 0, 1, 1], [], []>} : vector<32x128xf32>, vector<128x128xf32>, vector<32x128xf32> -> vector<32x128xf32>
    %cst_5 = arith.constant 9.99999974E-6 : f32
    %7 = vector.broadcast %cst_5 : f32 to vector<32x128xf32>
    %8 = arith.addf %6, %7 : vector<32x128xf32>
    %9 = math.rsqrt %8 : vector<32x128xf32>
    %10 = arith.mulf %4, %9 : vector<32x128xf32>
    %c0_6 = arith.constant 0 : index
    %c0_7 = arith.constant 0 : index
    %11 = vector.load %arg3[%c0_6, %c0_7] : memref<1x128xf32, #tpu.memory_space<vmem>>, vector<1x128xf32>
    %12 = vector.broadcast %11 : vector<1x128xf32> to vector<32x128xf32>
    %13 = arith.mulf %10, %12 : vector<32x128xf32>
    %c0_8 = arith.constant 0 : index
    %c0_9 = arith.constant 0 : index
    %14 = vector.load %arg4[%c0_8, %c0_9] : memref<1x128xf32, #tpu.memory_space<vmem>>, vector<1x128xf32>
    %15 = vector.broadcast %14 : vector<1x128xf32> to vector<32x128xf32>
    %16 = arith.addf %13, %15 : vector<32x128xf32>
    %17 = arith.truncf %16 : vector<32x128xf32> to vector<32x128xbf16>
    %c0_10 = arith.constant 0 : index
    %c0_11 = arith.constant 0 : index
    %18 = vector.load %arg5[%c0_10, %c0_11] : memref<128x256xbf16, #tpu.memory_space<vmem>>, vector<128x256xbf16>
    %cst_12 = arith.constant dense<0.000000e+00> : vector<32x256xf32>
    %19 = tpu.matmul %17, %18, %cst_12 {dimension_numbers = #tpu.dot_dimension_numbers<[1], [0], [0], [1], [0, 0, 1, 1], [], []>} : vector<32x128xbf16>, vector<128x256xbf16>, vector<32x256xf32> -> vector<32x256xf32>
    %c0_13 = arith.constant 0 : index
    %c0_14 = arith.constant 0 : index
    %20 = vector.load %arg6[%c0_13, %c0_14] : memref<1x256xf32, #tpu.memory_space<vmem>>, vector<1x256xf32>
    %21 = vector.broadcast %20 : vector<1x256xf32> to vector<32x256xf32>
    %22 = arith.addf %19, %21 : vector<32x256xf32>
    %23 = vector.shape_cast %22 : vector<32x256xf32> to vector<4x8x256xf32>
    %c0_15 = arith.constant 0 : index
    %c0_16 = arith.constant 0 : index
    %24 = vector.load %arg7[%c0_15, %c0_16] : memref<11x256xf32, #tpu.memory_space<vmem>>, vector<11x256xf32>
    %25 = tpu.iota {dimensions = array<i32: 0>} : vector<8x256xi32>
    %cst_17 = arith.constant 0.000000e+00 : f32
    %26 = vector.broadcast %cst_17 : f32 to vector<4x8x256xf32>
    %c0_18 = arith.constant 0 : index
    %c0_19 = arith.constant 0 : index
    %27 = vector.load %arg8[%c0_18, %c0_19] : memref<1x256xf32, #tpu.memory_space<vmem>>, vector<1x256xf32>
    %28 = vector.shape_cast %27 : vector<1x256xf32> to vector<1x1x256xf32>
    %29 = vector.broadcast %28 : vector<1x1x256xf32> to vector<4x8x256xf32>
    %30 = arith.addf %26, %29 : vector<4x8x256xf32>
    %c5_i32 = arith.constant 5 : i32
    %31 = tpu.dynamic_rotate %23 by %c5_i32 dim 1 : vector<4x8x256xf32>, i32 -> vector<4x8x256xf32>
    %c5_i32_20 = arith.constant 5 : i32
    %32 = vector.broadcast %c5_i32_20 : i32 to vector<8x256xi32>
    %33 = arith.cmpi sge, %25, %32 : vector<8x256xi32>
    %c13_i32 = arith.constant 13 : i32
    %34 = vector.broadcast %c13_i32 : i32 to vector<8x256xi32>
    %35 = arith.cmpi slt, %25, %34 : vector<8x256xi32>
    %36 = arith.andi %33, %35 : vector<8x256xi1>
    %cst_21 = arith.constant 0.000000e+00 : f32
    %37 = vector.shape_cast %36 : vector<8x256xi1> to vector<1x8x256xi1>
    %38 = vector.broadcast %37 : vector<1x8x256xi1> to vector<4x8x256xi1>
    %39 = vector.broadcast %cst_21 : f32 to vector<4x8x256xf32>
    %40 = arith.select %38, %31, %39 : vector<4x8x256xi1>, vector<4x8x256xf32>
    %41 = vector.extract_strided_slice %24 {offsets = [0, 0], sizes = [1, 256], strides = [1, 1]} : vector<11x256xf32> to vector<1x256xf32>
    %42 = vector.shape_cast %41 : vector<1x256xf32> to vector<256xf32>
    %43 = vector.shape_cast %42 : vector<256xf32> to vector<1x1x256xf32>
    %44 = vector.broadcast %43 : vector<1x1x256xf32> to vector<4x8x256xf32>
    %45 = arith.mulf %40, %44 : vector<4x8x256xf32>
    %46 = arith.addf %30, %45 : vector<4x8x256xf32>
    %c4_i32 = arith.constant 4 : i32
    %47 = tpu.dynamic_rotate %23 by %c4_i32 dim 1 : vector<4x8x256xf32>, i32 -> vector<4x8x256xf32>
    %c4_i32_22 = arith.constant 4 : i32
    %48 = vector.broadcast %c4_i32_22 : i32 to vector<8x256xi32>
    %49 = arith.cmpi sge, %25, %48 : vector<8x256xi32>
    %c12_i32 = arith.constant 12 : i32
    %50 = vector.broadcast %c12_i32 : i32 to vector<8x256xi32>
    %51 = arith.cmpi slt, %25, %50 : vector<8x256xi32>
    %52 = arith.andi %49, %51 : vector<8x256xi1>
    %cst_23 = arith.constant 0.000000e+00 : f32
    %53 = vector.shape_cast %52 : vector<8x256xi1> to vector<1x8x256xi1>
    %54 = vector.broadcast %53 : vector<1x8x256xi1> to vector<4x8x256xi1>
    %55 = vector.broadcast %cst_23 : f32 to vector<4x8x256xf32>
    %56 = arith.select %54, %47, %55 : vector<4x8x256xi1>, vector<4x8x256xf32>
    %57 = vector.extract_strided_slice %24 {offsets = [1, 0], sizes = [1, 256], strides = [1, 1]} : vector<11x256xf32> to vector<1x256xf32>
    %58 = vector.shape_cast %57 : vector<1x256xf32> to vector<256xf32>
    %59 = vector.shape_cast %58 : vector<256xf32> to vector<1x1x256xf32>
    %60 = vector.broadcast %59 : vector<1x1x256xf32> to vector<4x8x256xf32>
    %61 = arith.mulf %56, %60 : vector<4x8x256xf32>
    %62 = arith.addf %46, %61 : vector<4x8x256xf32>
    %c3_i32 = arith.constant 3 : i32
    %63 = tpu.dynamic_rotate %23 by %c3_i32 dim 1 : vector<4x8x256xf32>, i32 -> vector<4x8x256xf32>
    %c3_i32_24 = arith.constant 3 : i32
    %64 = vector.broadcast %c3_i32_24 : i32 to vector<8x256xi32>
    %65 = arith.cmpi sge, %25, %64 : vector<8x256xi32>
    %c11_i32 = arith.constant 11 : i32
    %66 = vector.broadcast %c11_i32 : i32 to vector<8x256xi32>
    %67 = arith.cmpi slt, %25, %66 : vector<8x256xi32>
    %68 = arith.andi %65, %67 : vector<8x256xi1>
    %cst_25 = arith.constant 0.000000e+00 : f32
    %69 = vector.shape_cast %68 : vector<8x256xi1> to vector<1x8x256xi1>
    %70 = vector.broadcast %69 : vector<1x8x256xi1> to vector<4x8x256xi1>
    %71 = vector.broadcast %cst_25 : f32 to vector<4x8x256xf32>
    %72 = arith.select %70, %63, %71 : vector<4x8x256xi1>, vector<4x8x256xf32>
    %73 = vector.extract_strided_slice %24 {offsets = [2, 0], sizes = [1, 256], strides = [1, 1]} : vector<11x256xf32> to vector<1x256xf32>
    %74 = vector.shape_cast %73 : vector<1x256xf32> to vector<256xf32>
    %75 = vector.shape_cast %74 : vector<256xf32> to vector<1x1x256xf32>
    %76 = vector.broadcast %75 : vector<1x1x256xf32> to vector<4x8x256xf32>
    %77 = arith.mulf %72, %76 : vector<4x8x256xf32>
    %78 = arith.addf %62, %77 : vector<4x8x256xf32>
    %c2_i32 = arith.constant 2 : i32
    %79 = tpu.dynamic_rotate %23 by %c2_i32 dim 1 : vector<4x8x256xf32>, i32 -> vector<4x8x256xf32>
    %c2_i32_26 = arith.constant 2 : i32
    %80 = vector.broadcast %c2_i32_26 : i32 to vector<8x256xi32>
    %81 = arith.cmpi sge, %25, %80 : vector<8x256xi32>
    %c10_i32 = arith.constant 10 : i32
    %82 = vector.broadcast %c10_i32 : i32 to vector<8x256xi32>
    %83 = arith.cmpi slt, %25, %82 : vector<8x256xi32>
    %84 = arith.andi %81, %83 : vector<8x256xi1>
    %cst_27 = arith.constant 0.000000e+00 : f32
    %85 = vector.shape_cast %84 : vector<8x256xi1> to vector<1x8x256xi1>
    %86 = vector.broadcast %85 : vector<1x8x256xi1> to vector<4x8x256xi1>
    %87 = vector.broadcast %cst_27 : f32 to vector<4x8x256xf32>
    %88 = arith.select %86, %79, %87 : vector<4x8x256xi1>, vector<4x8x256xf32>
    %89 = vector.extract_strided_slice %24 {offsets = [3, 0], sizes = [1, 256], strides = [1, 1]} : vector<11x256xf32> to vector<1x256xf32>
    %90 = vector.shape_cast %89 : vector<1x256xf32> to vector<256xf32>
    %91 = vector.shape_cast %90 : vector<256xf32> to vector<1x1x256xf32>
    %92 = vector.broadcast %91 : vector<1x1x256xf32> to vector<4x8x256xf32>
    %93 = arith.mulf %88, %92 : vector<4x8x256xf32>
    %94 = arith.addf %78, %93 : vector<4x8x256xf32>
    %c1_i32 = arith.constant 1 : i32
    %95 = tpu.dynamic_rotate %23 by %c1_i32 dim 1 : vector<4x8x256xf32>, i32 -> vector<4x8x256xf32>
    %c1_i32_28 = arith.constant 1 : i32
    %96 = vector.broadcast %c1_i32_28 : i32 to vector<8x256xi32>
    %97 = arith.cmpi sge, %25, %96 : vector<8x256xi32>
    %c9_i32 = arith.constant 9 : i32
    %98 = vector.broadcast %c9_i32 : i32 to vector<8x256xi32>
    %99 = arith.cmpi slt, %25, %98 : vector<8x256xi32>
    %100 = arith.andi %97, %99 : vector<8x256xi1>
    %cst_29 = arith.constant 0.000000e+00 : f32
    %101 = vector.shape_cast %100 : vector<8x256xi1> to vector<1x8x256xi1>
    %102 = vector.broadcast %101 : vector<1x8x256xi1> to vector<4x8x256xi1>
    %103 = vector.broadcast %cst_29 : f32 to vector<4x8x256xf32>
    %104 = arith.select %102, %95, %103 : vector<4x8x256xi1>, vector<4x8x256xf32>
    %105 = vector.extract_strided_slice %24 {offsets = [4, 0], sizes = [1, 256], strides = [1, 1]} : vector<11x256xf32> to vector<1x256xf32>
    %106 = vector.shape_cast %105 : vector<1x256xf32> to vector<256xf32>
    %107 = vector.shape_cast %106 : vector<256xf32> to vector<1x1x256xf32>
    %108 = vector.broadcast %107 : vector<1x1x256xf32> to vector<4x8x256xf32>
    %109 = arith.mulf %104, %108 : vector<4x8x256xf32>
    %110 = arith.addf %94, %109 : vector<4x8x256xf32>
    %111 = vector.extract_strided_slice %24 {offsets = [5, 0], sizes = [1, 256], strides = [1, 1]} : vector<11x256xf32> to vector<1x256xf32>
    %112 = vector.shape_cast %111 : vector<1x256xf32> to vector<256xf32>
    %113 = vector.shape_cast %112 : vector<256xf32> to vector<1x1x256xf32>
    %114 = vector.broadcast %113 : vector<1x1x256xf32> to vector<4x8x256xf32>
    %115 = arith.mulf %23, %114 : vector<4x8x256xf32>
    %116 = arith.addf %110, %115 : vector<4x8x256xf32>
    %c7_i32 = arith.constant 7 : i32
    %117 = tpu.dynamic_rotate %23 by %c7_i32 dim 1 : vector<4x8x256xf32>, i32 -> vector<4x8x256xf32>
    %c-1_i32 = arith.constant -1 : i32
    %118 = vector.broadcast %c-1_i32 : i32 to vector<8x256xi32>
    %119 = arith.cmpi sge, %25, %118 : vector<8x256xi32>
    %c7_i32_30 = arith.constant 7 : i32
    %120 = vector.broadcast %c7_i32_30 : i32 to vector<8x256xi32>
    %121 = arith.cmpi slt, %25, %120 : vector<8x256xi32>
    %122 = arith.andi %119, %121 : vector<8x256xi1>
    %cst_31 = arith.constant 0.000000e+00 : f32
    %123 = vector.shape_cast %122 : vector<8x256xi1> to vector<1x8x256xi1>
    %124 = vector.broadcast %123 : vector<1x8x256xi1> to vector<4x8x256xi1>
    %125 = vector.broadcast %cst_31 : f32 to vector<4x8x256xf32>
    %126 = arith.select %124, %117, %125 : vector<4x8x256xi1>, vector<4x8x256xf32>
    %127 = vector.extract_strided_slice %24 {offsets = [6, 0], sizes = [1, 256], strides = [1, 1]} : vector<11x256xf32> to vector<1x256xf32>
    %128 = vector.shape_cast %127 : vector<1x256xf32> to vector<256xf32>
    %129 = vector.shape_cast %128 : vector<256xf32> to vector<1x1x256xf32>
    %130 = vector.broadcast %129 : vector<1x1x256xf32> to vector<4x8x256xf32>
    %131 = arith.mulf %126, %130 : vector<4x8x256xf32>
    %132 = arith.addf %116, %131 : vector<4x8x256xf32>
    %c6_i32 = arith.constant 6 : i32
    %133 = tpu.dynamic_rotate %23 by %c6_i32 dim 1 : vector<4x8x256xf32>, i32 -> vector<4x8x256xf32>
    %c-2_i32 = arith.constant -2 : i32
    %134 = vector.broadcast %c-2_i32 : i32 to vector<8x256xi32>
    %135 = arith.cmpi sge, %25, %134 : vector<8x256xi32>
    %c6_i32_32 = arith.constant 6 : i32
    %136 = vector.broadcast %c6_i32_32 : i32 to vector<8x256xi32>
    %137 = arith.cmpi slt, %25, %136 : vector<8x256xi32>
    %138 = arith.andi %135, %137 : vector<8x256xi1>
    %cst_33 = arith.constant 0.000000e+00 : f32
    %139 = vector.shape_cast %138 : vector<8x256xi1> to vector<1x8x256xi1>
    %140 = vector.broadcast %139 : vector<1x8x256xi1> to vector<4x8x256xi1>
    %141 = vector.broadcast %cst_33 : f32 to vector<4x8x256xf32>
    %142 = arith.select %140, %133, %141 : vector<4x8x256xi1>, vector<4x8x256xf32>
    %143 = vector.extract_strided_slice %24 {offsets = [7, 0], sizes = [1, 256], strides = [1, 1]} : vector<11x256xf32> to vector<1x256xf32>
    %144 = vector.shape_cast %143 : vector<1x256xf32> to vector<256xf32>
    %145 = vector.shape_cast %144 : vector<256xf32> to vector<1x1x256xf32>
    %146 = vector.broadcast %145 : vector<1x1x256xf32> to vector<4x8x256xf32>
    %147 = arith.mulf %142, %146 : vector<4x8x256xf32>
    %148 = arith.addf %132, %147 : vector<4x8x256xf32>
    %c5_i32_34 = arith.constant 5 : i32
    %149 = tpu.dynamic_rotate %23 by %c5_i32_34 dim 1 : vector<4x8x256xf32>, i32 -> vector<4x8x256xf32>
    %c-3_i32 = arith.constant -3 : i32
    %150 = vector.broadcast %c-3_i32 : i32 to vector<8x256xi32>
    %151 = arith.cmpi sge, %25, %150 : vector<8x256xi32>
    %c5_i32_35 = arith.constant 5 : i32
    %152 = vector.broadcast %c5_i32_35 : i32 to vector<8x256xi32>
    %153 = arith.cmpi slt, %25, %152 : vector<8x256xi32>
    %154 = arith.andi %151, %153 : vector<8x256xi1>
    %cst_36 = arith.constant 0.000000e+00 : f32
    %155 = vector.shape_cast %154 : vector<8x256xi1> to vector<1x8x256xi1>
    %156 = vector.broadcast %155 : vector<1x8x256xi1> to vector<4x8x256xi1>
    %157 = vector.broadcast %cst_36 : f32 to vector<4x8x256xf32>
    %158 = arith.select %156, %149, %157 : vector<4x8x256xi1>, vector<4x8x256xf32>
    %159 = vector.extract_strided_slice %24 {offsets = [8, 0], sizes = [1, 256], strides = [1, 1]} : vector<11x256xf32> to vector<1x256xf32>
    %160 = vector.shape_cast %159 : vector<1x256xf32> to vector<256xf32>
    %161 = vector.shape_cast %160 : vector<256xf32> to vector<1x1x256xf32>
    %162 = vector.broadcast %161 : vector<1x1x256xf32> to vector<4x8x256xf32>
    %163 = arith.mulf %158, %162 : vector<4x8x256xf32>
    %164 = arith.addf %148, %163 : vector<4x8x256xf32>
    %c4_i32_37 = arith.constant 4 : i32
    %165 = tpu.dynamic_rotate %23 by %c4_i32_37 dim 1 : vector<4x8x256xf32>, i32 -> vector<4x8x256xf32>
    %c-4_i32 = arith.constant -4 : i32
    %166 = vector.broadcast %c-4_i32 : i32 to vector<8x256xi32>
    %167 = arith.cmpi sge, %25, %166 : vector<8x256xi32>
    %c4_i32_38 = arith.constant 4 : i32
    %168 = vector.broadcast %c4_i32_38 : i32 to vector<8x256xi32>
    %169 = arith.cmpi slt, %25, %168 : vector<8x256xi32>
    %170 = arith.andi %167, %169 : vector<8x256xi1>
    %cst_39 = arith.constant 0.000000e+00 : f32
    %171 = vector.shape_cast %170 : vector<8x256xi1> to vector<1x8x256xi1>
    %172 = vector.broadcast %171 : vector<1x8x256xi1> to vector<4x8x256xi1>
    %173 = vector.broadcast %cst_39 : f32 to vector<4x8x256xf32>
    %174 = arith.select %172, %165, %173 : vector<4x8x256xi1>, vector<4x8x256xf32>
    %175 = vector.extract_strided_slice %24 {offsets = [9, 0], sizes = [1, 256], strides = [1, 1]} : vector<11x256xf32> to vector<1x256xf32>
    %176 = vector.shape_cast %175 : vector<1x256xf32> to vector<256xf32>
    %177 = vector.shape_cast %176 : vector<256xf32> to vector<1x1x256xf32>
    %178 = vector.broadcast %177 : vector<1x1x256xf32> to vector<4x8x256xf32>
    %179 = arith.mulf %174, %178 : vector<4x8x256xf32>
    %180 = arith.addf %164, %179 : vector<4x8x256xf32>
    %c3_i32_40 = arith.constant 3 : i32
    %181 = tpu.dynamic_rotate %23 by %c3_i32_40 dim 1 : vector<4x8x256xf32>, i32 -> vector<4x8x256xf32>
    %c-5_i32 = arith.constant -5 : i32
    %182 = vector.broadcast %c-5_i32 : i32 to vector<8x256xi32>
    %183 = arith.cmpi sge, %25, %182 : vector<8x256xi32>
    %c3_i32_41 = arith.constant 3 : i32
    %184 = vector.broadcast %c3_i32_41 : i32 to vector<8x256xi32>
    %185 = arith.cmpi slt, %25, %184 : vector<8x256xi32>
    %186 = arith.andi %183, %185 : vector<8x256xi1>
    %cst_42 = arith.constant 0.000000e+00 : f32
    %187 = vector.shape_cast %186 : vector<8x256xi1> to vector<1x8x256xi1>
    %188 = vector.broadcast %187 : vector<1x8x256xi1> to vector<4x8x256xi1>
    %189 = vector.broadcast %cst_42 : f32 to vector<4x8x256xf32>
    %190 = arith.select %188, %181, %189 : vector<4x8x256xi1>, vector<4x8x256xf32>
    %191 = vector.extract_strided_slice %24 {offsets = [10, 0], sizes = [1, 256], strides = [1, 1]} : vector<11x256xf32> to vector<1x256xf32>
    %192 = vector.shape_cast %191 : vector<1x256xf32> to vector<256xf32>
    %193 = vector.shape_cast %192 : vector<256xf32> to vector<1x1x256xf32>
    %194 = vector.broadcast %193 : vector<1x1x256xf32> to vector<4x8x256xf32>
    %195 = arith.mulf %190, %194 : vector<4x8x256xf32>
    %196 = arith.addf %180, %195 : vector<4x8x256xf32>
    %197 = vector.extract_strided_slice %196 {offsets = [0, 0, 0], sizes = [4, 8, 128], strides = [1, 1, 1]} : vector<4x8x256xf32> to vector<4x8x128xf32>
    %198 = vector.extract_strided_slice %196 {offsets = [0, 0, 128], sizes = [4, 8, 128], strides = [1, 1, 1]} : vector<4x8x256xf32> to vector<4x8x128xf32>
    %199 = arith.negf %198 : vector<4x8x128xf32>
    %200 = math.exp %199 : vector<4x8x128xf32>
    %cst_43 = arith.constant 1.000000e+00 : f32
    %201 = vector.broadcast %cst_43 : f32 to vector<4x8x128xf32>
    %202 = arith.addf %201, %200 : vector<4x8x128xf32>
    %203 = arith.divf %201, %202 : vector<4x8x128xf32>
    %204 = arith.mulf %198, %203 : vector<4x8x128xf32>
    %205 = arith.mulf %197, %204 : vector<4x8x128xf32>
    %cst_44 = arith.constant dense<0.000000e+00> : vector<4x128xf32>
    %206 = vector.multi_reduction <add>, %205, %cst_44 [1] : vector<4x8x128xf32> to vector<4x128xf32>
    %cst_45 = arith.constant 8.000000e+00 : f32
    %207 = vector.broadcast %cst_45 : f32 to vector<4x128xf32>
    %208 = arith.divf %206, %207 : vector<4x128xf32>
    %209 = arith.truncf %208 : vector<4x128xf32> to vector<4x128xbf16>
    %c0_46 = arith.constant 0 : index
    %c0_47 = arith.constant 0 : index
    %210 = vector.load %arg9[%c0_46, %c0_47] : memref<128x128xbf16, #tpu.memory_space<vmem>>, vector<128x128xbf16>
    %cst_48 = arith.constant dense<0.000000e+00> : vector<4x128xf32>
    %211 = tpu.matmul %209, %210, %cst_48 {dimension_numbers = #tpu.dot_dimension_numbers<[1], [0], [0], [1], [0, 0, 1, 1], [], []>} : vector<4x128xbf16>, vector<128x128xbf16>, vector<4x128xf32> -> vector<4x128xf32>
    %c0_49 = arith.constant 0 : index
    %c0_50 = arith.constant 0 : index
    %212 = vector.load %arg10[%c0_49, %c0_50] : memref<1x128xf32, #tpu.memory_space<vmem>>, vector<1x128xf32>
    %213 = vector.broadcast %212 : vector<1x128xf32> to vector<4x128xf32>
    %214 = arith.addf %211, %213 : vector<4x128xf32>
    %215 = arith.negf %214 : vector<4x128xf32>
    %216 = math.exp %215 : vector<4x128xf32>
    %cst_51 = arith.constant 1.000000e+00 : f32
    %217 = vector.broadcast %cst_51 : f32 to vector<4x128xf32>
    %218 = arith.addf %217, %216 : vector<4x128xf32>
    %219 = arith.divf %217, %218 : vector<4x128xf32>
    %220 = vector.shape_cast %219 : vector<4x128xf32> to vector<4x1x128xf32>
    %221 = vector.broadcast %220 : vector<4x1x128xf32> to vector<4x8x128xf32>
    %222 = arith.mulf %205, %221 : vector<4x8x128xf32>
    %223 = vector.shape_cast %222 : vector<4x8x128xf32> to vector<32x128xf32>
    %224 = arith.truncf %223 : vector<32x128xf32> to vector<32x128xbf16>
    %c0_52 = arith.constant 0 : index
    %c0_53 = arith.constant 0 : index
    %225 = vector.load %arg11[%c0_52, %c0_53] : memref<128x128xbf16, #tpu.memory_space<vmem>>, vector<128x128xbf16>
    %cst_54 = arith.constant dense<0.000000e+00> : vector<32x128xf32>
    %226 = tpu.matmul %224, %225, %cst_54 {dimension_numbers = #tpu.dot_dimension_numbers<[1], [0], [0], [1], [0, 0, 1, 1], [], []>} : vector<32x128xbf16>, vector<128x128xbf16>, vector<32x128xf32> -> vector<32x128xf32>
    %c0_55 = arith.constant 0 : index
    %c0_56 = arith.constant 0 : index
    %227 = vector.load %arg12[%c0_55, %c0_56] : memref<1x128xf32, #tpu.memory_space<vmem>>, vector<1x128xf32>
    %228 = vector.broadcast %227 : vector<1x128xf32> to vector<32x128xf32>
    %229 = arith.addf %226, %228 : vector<32x128xf32>
    %230 = arith.addf %1, %229 : vector<32x128xf32>
    %cst_57 = arith.constant dense<0.000000e+00> : vector<32x128xf32>
    %231 = tpu.matmul %230, %2, %cst_57 {dimension_numbers = #tpu.dot_dimension_numbers<[1], [0], [0], [1], [0, 0, 1, 1], [], []>} : vector<32x128xf32>, vector<128x128xf32>, vector<32x128xf32> -> vector<32x128xf32>
    %232 = arith.subf %230, %231 : vector<32x128xf32>
    %233 = arith.mulf %232, %232 : vector<32x128xf32>
    %cst_58 = arith.constant dense<0.000000e+00> : vector<32x128xf32>
    %234 = tpu.matmul %233, %2, %cst_58 {dimension_numbers = #tpu.dot_dimension_numbers<[1], [0], [0], [1], [0, 0, 1, 1], [], []>} : vector<32x128xf32>, vector<128x128xf32>, vector<32x128xf32> -> vector<32x128xf32>
    %cst_59 = arith.constant 9.99999974E-6 : f32
    %235 = vector.broadcast %cst_59 : f32 to vector<32x128xf32>
    %236 = arith.addf %234, %235 : vector<32x128xf32>
    %237 = math.rsqrt %236 : vector<32x128xf32>
    %238 = arith.mulf %232, %237 : vector<32x128xf32>
    %c0_60 = arith.constant 0 : index
    %c0_61 = arith.constant 0 : index
    %239 = vector.load %arg13[%c0_60, %c0_61] : memref<1x128xf32, #tpu.memory_space<vmem>>, vector<1x128xf32>
    %240 = vector.broadcast %239 : vector<1x128xf32> to vector<32x128xf32>
    %241 = arith.mulf %238, %240 : vector<32x128xf32>
    %c0_62 = arith.constant 0 : index
    %c0_63 = arith.constant 0 : index
    %242 = vector.load %arg14[%c0_62, %c0_63] : memref<1x128xf32, #tpu.memory_space<vmem>>, vector<1x128xf32>
    %243 = vector.broadcast %242 : vector<1x128xf32> to vector<32x128xf32>
    %244 = arith.addf %241, %243 : vector<32x128xf32>
    %245 = arith.truncf %244 : vector<32x128xf32> to vector<32x128xbf16>
    %c0_64 = arith.constant 0 : index
    %c0_65 = arith.constant 0 : index
    %246 = vector.load %arg15[%c0_64, %c0_65] : memref<128x256xbf16, #tpu.memory_space<vmem>>, vector<128x256xbf16>
    %cst_66 = arith.constant dense<0.000000e+00> : vector<32x256xf32>
    %247 = tpu.matmul %245, %246, %cst_66 {dimension_numbers = #tpu.dot_dimension_numbers<[1], [0], [0], [1], [0, 0, 1, 1], [], []>} : vector<32x128xbf16>, vector<128x256xbf16>, vector<32x256xf32> -> vector<32x256xf32>
    %c0_67 = arith.constant 0 : index
    %c0_68 = arith.constant 0 : index
    %248 = vector.load %arg16[%c0_67, %c0_68] : memref<1x256xf32, #tpu.memory_space<vmem>>, vector<1x256xf32>
    %249 = vector.broadcast %248 : vector<1x256xf32> to vector<32x256xf32>
    %250 = arith.addf %247, %249 : vector<32x256xf32>
    %251 = vector.extract_strided_slice %250 {offsets = [0, 0], sizes = [32, 128], strides = [1, 1]} : vector<32x256xf32> to vector<32x128xf32>
    %252 = vector.extract_strided_slice %250 {offsets = [0, 128], sizes = [32, 128], strides = [1, 1]} : vector<32x256xf32> to vector<32x128xf32>
    %253 = arith.negf %252 : vector<32x128xf32>
    %254 = math.exp %253 : vector<32x128xf32>
    %cst_69 = arith.constant 1.000000e+00 : f32
    %255 = vector.broadcast %cst_69 : f32 to vector<32x128xf32>
    %256 = arith.addf %255, %254 : vector<32x128xf32>
    %257 = arith.divf %255, %256 : vector<32x128xf32>
    %258 = arith.mulf %252, %257 : vector<32x128xf32>
    %259 = arith.mulf %251, %258 : vector<32x128xf32>
    %260 = arith.truncf %259 : vector<32x128xf32> to vector<32x128xbf16>
    %c0_70 = arith.constant 0 : index
    %c0_71 = arith.constant 0 : index
    %261 = vector.load %arg17[%c0_70, %c0_71] : memref<128x128xbf16, #tpu.memory_space<vmem>>, vector<128x128xbf16>
    %cst_72 = arith.constant dense<0.000000e+00> : vector<32x128xf32>
    %262 = tpu.matmul %260, %261, %cst_72 {dimension_numbers = #tpu.dot_dimension_numbers<[1], [0], [0], [1], [0, 0, 1, 1], [], []>} : vector<32x128xbf16>, vector<128x128xbf16>, vector<32x128xf32> -> vector<32x128xf32>
    %c0_73 = arith.constant 0 : index
    %c0_74 = arith.constant 0 : index
    %263 = vector.load %arg18[%c0_73, %c0_74] : memref<1x128xf32, #tpu.memory_space<vmem>>, vector<1x128xf32>
    %264 = vector.broadcast %263 : vector<1x128xf32> to vector<32x128xf32>
    %265 = arith.addf %262, %264 : vector<32x128xf32>
    %266 = arith.addf %230, %265 : vector<32x128xf32>
    %c0_75 = arith.constant 0 : index
    %c0_76 = arith.constant 0 : index
    %267 = vector.load %arg19[%c0_75, %c0_76] : memref<1x128xf32, #tpu.memory_space<vmem>>, vector<1x128xf32>
    %268 = vector.broadcast %267 : vector<1x128xf32> to vector<32x128xf32>
    %269 = arith.mulf %1, %268 : vector<32x128xf32>
    %270 = arith.addf %266, %269 : vector<32x128xf32>
    %271 = vector.shape_cast %270 : vector<32x128xf32> to vector<4x8x128xf32>
    %c0_77 = arith.constant 0 : index
    %c0_78 = arith.constant 0 : index
    %c0_79 = arith.constant 0 : index
    %272 = vector.load %arg20[%c0_77, %c0_78, %c0_79] : memref<4x8x128xf32, #tpu.memory_space<vmem>>, vector<4x8x128xf32>
    tpu.vector_store %arg20[%c0_77, %c0_78, %c0_79], %271 {strides = array<i32>} : memref<4x8x128xf32, #tpu.memory_space<vmem>>, vector<4x8x128xf32>,
    return
  }
  func.func @transform_0(%arg0: i32) -> (i32, i32, i32) {
    %c0_i32 = arith.constant 0 : i32
    %c0_i32_0 = arith.constant 0 : i32
    %c0_i32_1 = arith.constant 0 : i32
    return %arg0, %c0_i32, %c0_i32_0 : i32, i32, i32
  }
  func.func @transform_1(%arg0: i32) -> (i32, i32) {
    %c0_i32 = arith.constant 0 : i32
    %c0_i32_0 = arith.constant 0 : i32
    %c0_i32_1 = arith.constant 0 : i32
    return %c0_i32, %c0_i32_0 : i32, i32
  }
  func.func @transform_2(%arg0: i32) -> (i32, i32) {
    %c0_i32 = arith.constant 0 : i32
    %c0_i32_0 = arith.constant 0 : i32
    %c0_i32_1 = arith.constant 0 : i32
    return %c0_i32, %c0_i32_0 : i32, i32
  }
  func.func @transform_3(%arg0: i32) -> (i32, i32) {
    %c0_i32 = arith.constant 0 : i32
    %c0_i32_0 = arith.constant 0 : i32
    %c0_i32_1 = arith.constant 0 : i32
    return %c0_i32, %c0_i32_0 : i32, i32
  }
  func.func @transform_4(%arg0: i32) -> (i32, i32) {
    %c0_i32 = arith.constant 0 : i32
    %c0_i32_0 = arith.constant 0 : i32
    %c0_i32_1 = arith.constant 0 : i32
    return %c0_i32, %c0_i32_0 : i32, i32
  }
  func.func @transform_5(%arg0: i32) -> (i32, i32) {
    %c0_i32 = arith.constant 0 : i32
    %c0_i32_0 = arith.constant 0 : i32
    %c0_i32_1 = arith.constant 0 : i32
    return %c0_i32, %c0_i32_0 : i32, i32
  }
  func.func @transform_6(%arg0: i32) -> (i32, i32) {
    %c0_i32 = arith.constant 0 : i32
    %c0_i32_0 = arith.constant 0 : i32
    %c0_i32_1 = arith.constant 0 : i32
    return %c0_i32, %c0_i32_0 : i32, i32
  }
  func.func @transform_7(%arg0: i32) -> (i32, i32) {
    %c0_i32 = arith.constant 0 : i32
    %c0_i32_0 = arith.constant 0 : i32
    %c0_i32_1 = arith.constant 0 : i32
    return %c0_i32, %c0_i32_0 : i32, i32
  }
  func.func @transform_8(%arg0: i32) -> (i32, i32) {
    %c0_i32 = arith.constant 0 : i32
    %c0_i32_0 = arith.constant 0 : i32
    %c0_i32_1 = arith.constant 0 : i32
    return %c0_i32, %c0_i32_0 : i32, i32
  }
  func.func @transform_9(%arg0: i32) -> (i32, i32) {
    %c0_i32 = arith.constant 0 : i32
    %c0_i32_0 = arith.constant 0 : i32
    %c0_i32_1 = arith.constant 0 : i32
    return %c0_i32, %c0_i32_0 : i32, i32
  }
  func.func @transform_10(%arg0: i32) -> (i32, i32) {
    %c0_i32 = arith.constant 0 : i32
    %c0_i32_0 = arith.constant 0 : i32
    %c0_i32_1 = arith.constant 0 : i32
    return %c0_i32, %c0_i32_0 : i32, i32
  }
  func.func @transform_11(%arg0: i32) -> (i32, i32) {
    %c0_i32 = arith.constant 0 : i32
    %c0_i32_0 = arith.constant 0 : i32
    %c0_i32_1 = arith.constant 0 : i32
    return %c0_i32, %c0_i32_0 : i32, i32
  }
  func.func @transform_12(%arg0: i32) -> (i32, i32) {
    %c0_i32 = arith.constant 0 : i32
    %c0_i32_0 = arith.constant 0 : i32
    %c0_i32_1 = arith.constant 0 : i32
    return %c0_i32, %c0_i32_0 : i32, i32
  }
  func.func @transform_13(%arg0: i32) -> (i32, i32) {
    %c0_i32 = arith.constant 0 : i32
    %c0_i32_0 = arith.constant 0 : i32
    %c0_i32_1 = arith.constant 0 : i32
    return %c0_i32, %c0_i32_0 : i32, i32
  }
  func.func @transform_14(%arg0: i32) -> (i32, i32) {
    %c0_i32 = arith.constant 0 : i32
    %c0_i32_0 = arith.constant 0 : i32
    %c0_i32_1 = arith.constant 0 : i32
    return %c0_i32, %c0_i32_0 : i32, i32
  }
  func.func @transform_15(%arg0: i32) -> (i32, i32) {
    %c0_i32 = arith.constant 0 : i32
    %c0_i32_0 = arith.constant 0 : i32
    %c0_i32_1 = arith.constant 0 : i32
    return %c0_i32, %c0_i32_0 : i32, i32
  }
  func.func @transform_16(%arg0: i32) -> (i32, i32) {
    %c0_i32 = arith.constant 0 : i32
    %c0_i32_0 = arith.constant 0 : i32
    %c0_i32_1 = arith.constant 0 : i32
    return %c0_i32, %c0_i32_0 : i32, i32
  }
  func.func @transform_17(%arg0: i32) -> (i32, i32) {
    %c0_i32 = arith.constant 0 : i32
    %c0_i32_0 = arith.constant 0 : i32
    %c0_i32_1 = arith.constant 0 : i32
    return %c0_i32, %c0_i32_0 : i32, i32
  }
  func.func @transform_18(%arg0: i32) -> (i32, i32) {
    %c0_i32 = arith.constant 0 : i32
    %c0_i32_0 = arith.constant 0 : i32
    %c0_i32_1 = arith.constant 0 : i32
    return %c0_i32, %c0_i32_0 : i32, i32
  }
  func.func @transform_19(%arg0: i32) -> (i32, i32, i32) {
    %c0_i32 = arith.constant 0 : i32
    %c0_i32_0 = arith.constant 0 : i32
    %c0_i32_1 = arith.constant 0 : i32
    return %arg0, %c0_i32, %c0_i32_0 : i32, i32, i32
  }
}

</mosaic_0001>

<bundles_post_ra>
// kernel: tile.164
= control target key start
LH: loop header
LB: loop body
LE: loop exit
PB: predicated region body
PF: predicated region fallthrough
CT: control target
= control target key end

     0   :  { %vm4_vm0 = vcmask 1047556   ;;  %s169_s14 = smov 96   ;;  %s170_s15 = smov 112   ;;  %vm6_vm1 = vcmask 130048   ;;  %vm21_vm2 = vcmask 1048448   ;;  %vm38_vm3 = vcmask 917248   ;;  %s314_s0 = inlined_call_operand.vmem [shape: f32[11,8,16], index: 0, kind: input, shape index: {}]   ;;  %s315_s1 = inlined_call_operand.vmem [shape: f32[11,128], index: 1, kind: output, shape index: {}]  }
   0x1   :  { %v138_v0 = vld [vmem:[%s314_s0 + $0x6] ss:$8 sm:$0xf]   ;;  %v134_v3 = vld [vmem:[%s314_s0 + $0x7] ss:$8 sm:$0xf]  }
   0x2   :  { %v139_v1 = vld [vmem:[%s314_s0 + $0x6] ss:$8 sm:$0xf0]   ;;  %v135_v4 = vld [vmem:[%s314_s0 + $0x7] ss:$8 sm:$0xf0]  }
   0x3   :  { %v35_v2 = vsel %vm4_vm0, %v139_v1, %v138_v0  ;;  %v18_v5 = vsel %vm4_vm0, %v135_v4, %v134_v3  ;;  %v140_v6 = vld [vmem:[%s314_s0 + $0x46] ss:$8 sm:$0x7]   ;;  %v136_v7 = vld [vmem:[%s314_s0 + $0x47] ss:$8 sm:$0x7]  }
   0x4   :  { %36 = vrot.lane.b32.xlu1 %v35_v2, %s169_s14  ;;  %19 = vrot.lane.b32.xlu0 %v18_v5, %s170_s15  ;;  %v142_v8 = vld [vmem:[%s314_s0 + $0x5] ss:$8 sm:$0xf]   ;;  %v146_v12 = vld [vmem:[%s314_s0 + $0x4] ss:$8 sm:$0xf]  }
   0x5   :  { %v143_v9 = vld [vmem:[%s314_s0 + $0x5] ss:$8 sm:$0xf0]   ;;  %v147_v13 = vld [vmem:[%s314_s0 + $0x4] ss:$8 sm:$0xf0]  }
   0x6   :  { %v144_v10 = vld [vmem:[%s314_s0 + $0x45] ss:$8 sm:$0x7]   ;;  %v52_v11 = vsel %vm4_vm0, %v143_v9, %v142_v8  ;;  %s171_s30 = smov 80   ;;  %v69_v16 = vsel %vm4_vm0, %v147_v13, %v146_v12  ;;  %s173_s25 = smov 48   ;;  %vm55_vm4 = vcmask 786048  }
   0x7   :  { %v148_v14 = vld [vmem:[%s314_s0 + $0x44] ss:$8 sm:$0x7]   ;;  %v150_v15 = vld [vmem:[%s314_s0 + $0x3] ss:$8 sm:$0xf]  }
   0x8   :  { %42 = vrot.lane.b32.xlu1 %v140_v6, %s169_s14  ;;  %25 = vrot.lane.b32.xlu0 %v136_v7, %s170_s15  ;;  %v2_v17 = vld [vmem:[%s314_s0] ss:$8 sm:$0xf]   ;;  %v151_v19 = vld [vmem:[%s314_s0 + $0x3] ss:$8 sm:$0xf0]  }
   0x9   :  { %v3_v18 = vld [vmem:[%s314_s0] ss:$8 sm:$0xf0]   ;;  %s172_s14 = smov 64   ;;  %v86_v23 = vsel %vm4_vm0, %v151_v19, %v150_v15  ;;  %s174_s3 = smov 32   ;;  %vm72_vm5 = vcmask 654848  }
   0xa   :  { %v5_v20 = vsel %vm4_vm0, %v3_v18, %v2_v17  ;;  %v132_v21 = vld [vmem:[%s314_s0 + $0x40] ss:$8 sm:$0x7]   ;;  %v152_v22 = vld [vmem:[%s314_s0 + $0x43] ss:$8 sm:$0x7]  }
   0xb   :  { %7 = vst.msk [vmem:[%s315_s1] sm:$0xff] %vm6_vm1, %v5_v20   ;;  %133 = vst.msk [vmem:[%s315_s1 + $0x8] sm:$0x7] %vm6_vm1, %v132_v21   ;;  %v154_v24 = vld [vmem:[%s314_s0 + $0x2] ss:$8 sm:$0xf]  }
   0xc   :  { %59 = vrot.lane.b32.xlu1 %v144_v10, %s171_s30  ;;  %53 = vrot.lane.b32.xlu0 %v52_v11, %s171_s30  ;;  %v155_v25 = vld [vmem:[%s314_s0 + $0x2] ss:$8 sm:$0xf0]   ;;  %v158_v28 = vld [vmem:[%s314_s0 + $0x1] ss:$8 sm:$0xf]  }
   0xd   :  { %v156_v26 = vld [vmem:[%s314_s0 + $0x42] ss:$8 sm:$0x7]   ;;  %v103_v27 = vsel %vm4_vm0, %v155_v25, %v154_v24  ;;  %v159_v29 = vld [vmem:[%s314_s0 + $0x1] ss:$8 sm:$0xf0]  }
   0xe   :  { %v160_v30 = vld [vmem:[%s314_s0 + $0x41] ss:$8 sm:$0x7]   ;;  %v120_v31 = vsel %vm4_vm0, %v159_v29, %v158_v28  ;;  %s175_s0 = smov 16   ;;  %vm89_vm6 = vcmask 523648   ;;  %vm106_vm7 = vcmask 392448  }
   0xf   :  { %vm123_vm8 = vcmask 261248  }
  0x10   :  { %76 = vrot.lane.b32.xlu1 %v148_v14, %s172_s14  ;;  %70 = vrot.lane.b32.xlu0 %v69_v16, %s172_s14 }
  0x14   :  { %93 = vrot.lane.b32.xlu1 %v152_v22, %s173_s25  ;;  %87 = vrot.lane.b32.xlu0 %v86_v23, %s173_s25 }
  0x18   :  { %110 = vrot.lane.b32.xlu1 %v156_v26, %s174_s3  ;;  %104 = vrot.lane.b32.xlu0 %v103_v27, %s174_s3 }
  0x1c   :  { %127 = vrot.lane.b32.xlu1 %v160_v30, %s175_s0  ;;  %121 = vrot.lane.b32.xlu0 %v120_v31, %s175_s0 }
  0x76   :  { %v37_v32 = vpop.permute.xlu1 %36   ;;  %v20_v33 = vpop.permute.xlu0 %19  }
  0x77   :  { %22 = vst.msk [vmem:[%s315_s1] sm:$0xff] %vm21_vm2, %v20_v33  }
  0x78   :  { %39 = vst.msk [vmem:[%s315_s1] sm:$0xff] %vm38_vm3, %v37_v32  }
  0x7a   :  { %v43_v34 = vpop.permute.xlu1 %42   ;;  %v26_v35 = vpop.permute.xlu0 %25  }
  0x7b   :  { %137 = vst.msk [vmem:[%s315_s1 + $0x8] sm:$0x7] %vm21_vm2, %v26_v35  }
  0x7c   :  { %141 = vst.msk [vmem:[%s315_s1 + $0x8] sm:$0x7] %vm38_vm3, %v43_v34  }
  0x7e   :  { %v60_v36 = vpop.permute.xlu1 %59   ;;  %v54_v37 = vpop.permute.xlu0 %53  }
  0x7f   :  { %145 = vst.msk [vmem:[%s315_s1 + $0x8] sm:$0x7] %vm55_vm4, %v60_v36   ;;  %56 = vst.msk [vmem:[%s315_s1] sm:$0xff] %vm55_vm4, %v54_v37  }
  0x82   :  { %v77_v38 = vpop.permute.xlu1 %76   ;;  %v71_v39 = vpop.permute.xlu0 %70  }
  0x83   :  { %149 = vst.msk [vmem:[%s315_s1 + $0x8] sm:$0x7] %vm72_vm5, %v77_v38   ;;  %73 = vst.msk [vmem:[%s315_s1] sm:$0xff] %vm72_vm5, %v71_v39  }
  0x86   :  { %v94_v40 = vpop.permute.xlu1 %93   ;;  %v88_v41 = vpop.permute.xlu0 %87  }
  0x87   :  { %153 = vst.msk [vmem:[%s315_s1 + $0x8] sm:$0x7] %vm89_vm6, %v94_v40   ;;  %90 = vst.msk [vmem:[%s315_s1] sm:$0xff] %vm89_vm6, %v88_v41  }
  0x8a   :  { %v111_v42 = vpop.permute.xlu1 %110   ;;  %v105_v43 = vpop.permute.xlu0 %104  }
  0x8b   :  { %157 = vst.msk [vmem:[%s315_s1 + $0x8] sm:$0x7] %vm106_vm7, %v111_v42   ;;  %107 = vst.msk [vmem:[%s315_s1] sm:$0xff] %vm106_vm7, %v105_v43  }
  0x8e   :  { %v128_v44 = vpop.permute.xlu1 %127   ;;  %v122_v45 = vpop.permute.xlu0 %121  }
  0x8f   :  { %161 = vst.msk [vmem:[%s315_s1 + $0x8] sm:$0x7] %vm123_vm8, %v128_v44   ;;  %124 = vst.msk [vmem:[%s315_s1] sm:$0xff] %vm123_vm8, %v122_v45  }

// kernel: ts_tf_block.4
= control target key start
LH: loop header
LB: loop body
LE: loop exit
PB: predicated region body
PF: predicated region fallthrough
CT: control target
= control target key end

     0   :  { %vm58_vm0 = vcmask 130048   ;;  %vm1155_vm1 = vmmov 0   ;;  %vm709_vm2 = vcmask 130112   ;;  %vm716_vm3 = vcmask 195712   ;;  %s1944_s0 = inlined_call_operand.vmem [shape: f32[2,128,16], index: 0, kind: input, shape index: {}]   ;;  %s1945_s2 = inlined_call_operand.vmem [shape: f32[1,16], index: 2, kind: input, shape index: {}]   ;;  %s1946_s3 = inlined_call_operand.vmem [shape: f32[1,16], index: 3, kind: input, shape index: {}]   ;;  %s1947_s1 = inlined_call_operand.vmem [shape: f32[128,16], index: 1, kind: input, shape index: {}]   ;;  %s1948_s4 = inlined_call_operand.vmem [shape: f32[1,16], index: 4, kind: input, shape index: {}]   ;;  %s1949_s5 = inlined_call_operand.vmem [shape: f32[1,16], index: 5, kind: input, shape index: {}]   ;;  %s1950_s6 = inlined_call_operand.vmem [shape: f32[1,16], index: 6, kind: input, shape index: {}]   ;;  %s1951_s7 = inlined_call_operand.vmem [shape: f32[2,16], index: 7, kind: output, shape index: {}]  }
   0x1   :  { %v1200_v0 = vld [vmem:[%s1944_s0] sm:$0xff]  ;;  %v1210_v2 = vld [vmem:[%s1944_s0 + $0x8] sm:$0xff]  ;;  %v1228_v8 = vld [vmem:[%s1944_s0 + $0x10] sm:$0xff]  ;;  %vm723_vm4 = vcmask 261312   ;;  %vm730_vm5 = vcmask 326912   ;;  %vm737_vm6 = vcmask 392512  }
   0x2   :  { %v1205_v1 = vld [vmem:[%s1944_s0 + $0x80] sm:$0xff]  ;;  %v59_v3 = vsel %vm58_vm0, %v1200_v0, 0.0  ;;  %v1219_v5 = vld [vmem:[%s1944_s0 + $0x88] sm:$0xff]  ;;  %v62_v6 = vsel %vm58_vm0, %v1210_v2, 0.0  ;;  %v1233_v9 = vld [vmem:[%s1944_s0 + $0x90] sm:$0xff]  ;;  %v65_v10 = vsel %vm58_vm0, %v1228_v8, 0.0 }
   0x3   :  { %v107_v4 = vsel %vm58_vm0, %v1205_v1, 0.0  ;;  %60 = vadd.xlane.f32.xlu0 %v59_v3  ;;  %v110_v7 = vsel %vm58_vm0, %v1219_v5, 0.0  ;;  %v113_v11 = vsel %vm58_vm0, %v1233_v9, 0.0  ;;  %v1242_v12 = vld [vmem:[%s1944_s0 + $0x18] sm:$0xff]  ;;  %v1256_v16 = vld [vmem:[%s1944_s0 + $0x20] sm:$0xff]  ;;  %v1270_v20 = vld [vmem:[%s1944_s0 + $0x28] sm:$0xff] }
   0x4   :  { %108 = vadd.xlane.f32.xlu1 %v107_v4  ;;  %v1247_v13 = vld [vmem:[%s1944_s0 + $0x98] sm:$0xff]  ;;  %v68_v14 = vsel %vm58_vm0, %v1242_v12, 0.0  ;;  %v1261_v17 = vld [vmem:[%s1944_s0 + $0xa0] sm:$0xff]  ;;  %v71_v18 = vsel %vm58_vm0, %v1256_v16, 0.0  ;;  %v1275_v21 = vld [vmem:[%s1944_s0 + $0xa8] sm:$0xff]  ;;  %v74_v22 = vsel %vm58_vm0, %v1270_v20, 0.0 }
   0x5   :  { %v116_v15 = vsel %vm58_vm0, %v1247_v13, 0.0  ;;  %v119_v19 = vsel %vm58_vm0, %v1261_v17, 0.0  ;;  %v122_v23 = vsel %vm58_vm0, %v1275_v21, 0.0  ;;  %v1284_v24 = vld [vmem:[%s1944_s0 + $0x30] sm:$0xff]  ;;  %v1298_v28 = vld [vmem:[%s1944_s0 + $0x38] sm:$0xff]  ;;  %v1312_v32 = vld [vmem:[%s1944_s0 + $0x40] sm:$0xff] }
   0x6   :  { %v1289_v25 = vld [vmem:[%s1944_s0 + $0xb0] sm:$0xff]  ;;  %v77_v26 = vsel %vm58_vm0, %v1284_v24, 0.0  ;;  %v1303_v29 = vld [vmem:[%s1944_s0 + $0xb8] sm:$0xff]  ;;  %v80_v30 = vsel %vm58_vm0, %v1298_v28, 0.0  ;;  %v1317_v33 = vld [vmem:[%s1944_s0 + $0xc0] sm:$0xff]  ;;  %v83_v34 = vsel %vm58_vm0, %v1312_v32, 0.0 }
   0x7   :  { %63 = vadd.xlane.f32.xlu0 %v62_v6  ;;  %v125_v27 = vsel %vm58_vm0, %v1289_v25, 0.0  ;;  %v128_v31 = vsel %vm58_vm0, %v1303_v29, 0.0  ;;  %v131_v35 = vsel %vm58_vm0, %v1317_v33, 0.0  ;;  %v1326_v36 = vld [vmem:[%s1944_s0 + $0x48] sm:$0xff]  ;;  %v1340_v40 = vld [vmem:[%s1944_s0 + $0x50] sm:$0xff]  ;;  %v1354_v44 = vld [vmem:[%s1944_s0 + $0x58] sm:$0xff] }
   0x8   :  { %111 = vadd.xlane.f32.xlu1 %v110_v7  ;;  %v1331_v37 = vld [vmem:[%s1944_s0 + $0xc8] sm:$0xff]  ;;  %v86_v38 = vsel %vm58_vm0, %v1326_v36, 0.0  ;;  %v1345_v41 = vld [vmem:[%s1944_s0 + $0xd0] sm:$0xff]  ;;  %v89_v42 = vsel %vm58_vm0, %v1340_v40, 0.0  ;;  %v1359_v45 = vld [vmem:[%s1944_s0 + $0xd8] sm:$0xff]  ;;  %v92_v46 = vsel %vm58_vm0, %v1354_v44, 0.0 }
   0x9   :  { %v134_v39 = vsel %vm58_vm0, %v1331_v37, 0.0  ;;  %v137_v43 = vsel %vm58_vm0, %v1345_v41, 0.0  ;;  %v140_v47 = vsel %vm58_vm0, %v1359_v45, 0.0  ;;  %v1368_v48 = vld [vmem:[%s1944_s0 + $0x60] sm:$0xff]  ;;  %v1382_v52 = vld [vmem:[%s1944_s0 + $0x68] sm:$0xff]  ;;  %v1396_v56 = vld [vmem:[%s1944_s0 + $0x70] sm:$0xff] }
   0xa   :  { %v1373_v49 = vld [vmem:[%s1944_s0 + $0xe0] sm:$0xff]  ;;  %v95_v50 = vsel %vm58_vm0, %v1368_v48, 0.0  ;;  %v1387_v53 = vld [vmem:[%s1944_s0 + $0xe8] sm:$0xff]  ;;  %v98_v54 = vsel %vm58_vm0, %v1382_v52, 0.0  ;;  %v1401_v57 = vld [vmem:[%s1944_s0 + $0xf0] sm:$0xff]  ;;  %v101_v58 = vsel %vm58_vm0, %v1396_v56, 0.0 }
   0xb   :  { %66 = vadd.xlane.f32.xlu0 %v65_v10  ;;  %v143_v51 = vsel %vm58_vm0, %v1373_v49, 0.0  ;;  %v146_v55 = vsel %vm58_vm0, %v1387_v53, 0.0  ;;  %v149_v59 = vsel %vm58_vm0, %v1401_v57, 0.0  ;;  %v1410_v60 = vld [vmem:[%s1944_s0 + $0x78] sm:$0xff]  ;;  %vm744_vm7 = vcmask 458112  }
   0xc   :  { %114 = vadd.xlane.f32.xlu1 %v113_v11  ;;  %v1415_v61 = vld [vmem:[%s1944_s0 + $0xf8] sm:$0xff]  ;;  %v104_v62 = vsel %vm58_vm0, %v1410_v60, 0.0  ;;  %vm751_vm8 = vcmask 523712   ;;  %vm758_vm9 = vcmask 589312   ;;  %vm765_vm10 = vcmask 654912  }
   0xd   :  { %v152_v63 = vsel %vm58_vm0, %v1415_v61, 0.0  ;;  %vm772_vm11 = vcmask 720512   ;;  %vm779_vm12 = vcmask 786112   ;;  %vm786_vm13 = vcmask 851712  }
   0xe   :  { %vm793_vm14 = vcmask 917312   ;;  %vm800_vm15 = vcmask 982912  }
   0xf   :  { %69 = vadd.xlane.f32.xlu0 %v68_v14 }
  0x10   :  { %117 = vadd.xlane.f32.xlu1 %v116_v15 }
  0x13   :  { %72 = vadd.xlane.f32.xlu0 %v71_v18 }
  0x14   :  { %120 = vadd.xlane.f32.xlu1 %v119_v19 }
  0x17   :  { %75 = vadd.xlane.f32.xlu0 %v74_v22 }
  0x18   :  { %123 = vadd.xlane.f32.xlu1 %v122_v23 }
  0x1b   :  { %78 = vadd.xlane.f32.xlu0 %v77_v26 }
  0x1c   :  { %126 = vadd.xlane.f32.xlu1 %v125_v27 }
  0x1f   :  { %81 = vadd.xlane.f32.xlu0 %v80_v30 }
  0x20   :  { %129 = vadd.xlane.f32.xlu1 %v128_v31 }
  0x23   :  { %84 = vadd.xlane.f32.xlu0 %v83_v34 }
  0x24   :  { %132 = vadd.xlane.f32.xlu1 %v131_v35 }
  0x27   :  { %87 = vadd.xlane.f32.xlu0 %v86_v38 }
  0x28   :  { %135 = vadd.xlane.f32.xlu1 %v134_v39 }
  0x2b   :  { %90 = vadd.xlane.f32.xlu0 %v89_v42 }
  0x2c   :  { %138 = vadd.xlane.f32.xlu1 %v137_v43 }
  0x2f   :  { %93 = vadd.xlane.f32.xlu0 %v92_v46 }
  0x30   :  { %141 = vadd.xlane.f32.xlu1 %v140_v47 }
  0x33   :  { %96 = vadd.xlane.f32.xlu0 %v95_v50 }
  0x34   :  { %144 = vadd.xlane.f32.xlu1 %v143_v51 }
  0x37   :  { %99 = vadd.xlane.f32.xlu0 %v98_v54 }
  0x38   :  { %147 = vadd.xlane.f32.xlu1 %v146_v55 }
  0x3b   :  { %102 = vadd.xlane.f32.xlu0 %v101_v58 }
  0x3c   :  { %150 = vadd.xlane.f32.xlu1 %v149_v59 }
  0x3f   :  { %105 = vadd.xlane.f32.xlu0 %v104_v62 }
  0x40   :  { %153 = vadd.xlane.f32.xlu1 %v152_v63 }
  0x90   :  { %v61_v3 = vpop.xlane.xlu0 %60 }
  0x91   :  { %v109_v4 = vpop.xlane.xlu1 %108  ;;  %v156_v6 = vmul.f32 0.0625, %v61_v3 }
  0x92   :  { %v172_v7 = vmul.f32 0.0625, %v109_v4 }
  0x93   :  { %v1422_v10 = vsub.f32 %v1200_v0, %v156_v6 }
  0x94   :  { %v1425_v11 = vsub.f32 %v1205_v1, %v172_v7  ;;  %v64_v14 = vpop.xlane.xlu0 %63 }
  0x95   :  { %v112_v15 = vpop.xlane.xlu1 %111  ;;  %v157_v18 = vmul.f32 0.0625, %v64_v14  ;;  %v220_v22 = vmul.f32 %v1422_v10, %v1422_v10 }
  0x96   :  { %v173_v19 = vmul.f32 0.0625, %v112_v15  ;;  %v236_v23 = vmul.f32 %v1425_v11, %v1425_v11 }
  0x97   :  { %v1432_v26 = vsub.f32 %v1210_v2, %v157_v18  ;;  %v252_v0 = vsel %vm58_vm0, %v220_v22, 0.0 }
  0x98   :  { %v1435_v27 = vsub.f32 %v1219_v5, %v173_v19  ;;  %253 = vadd.xlane.f32.xlu0 %v252_v0  ;;  %v67_v1 = vpop.xlane.xlu0 %66  ;;  %v300_v31 = vsel %vm58_vm0, %v236_v23, 0.0 }
  0x99   :  { %v115_v30 = vpop.xlane.xlu1 %114  ;;  %v158_v34 = vmul.f32 0.0625, %v67_v1  ;;  %v221_v38 = vmul.f32 %v1432_v26, %v1432_v26 }
  0x9a   :  { %v174_v35 = vmul.f32 0.0625, %v115_v30  ;;  %v237_v39 = vmul.f32 %v1435_v27, %v1435_v27 }
  0x9b   :  { %v1444_v2 = vsub.f32 %v1228_v8, %v158_v34  ;;  %v255_v42 = vsel %vm58_vm0, %v221_v38, 0.0 }
  0x9c   :  { %v1447_v5 = vsub.f32 %v1233_v9, %v174_v35  ;;  %301 = vadd.xlane.f32.xlu0 %v300_v31  ;;  %256 = vadd.xlane.f32.xlu1 %v255_v42  ;;  %v70_v43 = vpop.xlane.xlu0 %69  ;;  %v303_v47 = vsel %vm58_vm0, %v237_v39, 0.0 }
  0x9d   :  { %v118_v46 = vpop.xlane.xlu1 %117  ;;  %v159_v50 = vmul.f32 0.0625, %v70_v43  ;;  %v222_v54 = vmul.f32 %v1444_v2, %v1444_v2 }
  0x9e   :  { %v175_v51 = vmul.f32 0.0625, %v118_v46  ;;  %v238_v8 = vmul.f32 %v1447_v5, %v1447_v5 }
  0x9f   :  { %v1456_v55 = vsub.f32 %v1242_v12, %v159_v50  ;;  %v258_v58 = vsel %vm58_vm0, %v222_v54, 0.0 }
  0xa0   :  { %v1459_v9 = vsub.f32 %v1247_v13, %v175_v51  ;;  %304 = vadd.xlane.f32.xlu1 %v303_v47  ;;  %259 = vadd.xlane.f32.xlu0 %v258_v58  ;;  %v73_v59 = vpop.xlane.xlu0 %72  ;;  %v306_v63 = vsel %vm58_vm0, %v238_v8, 0.0 }
  0xa1   :  { %v121_v62 = vpop.xlane.xlu1 %120  ;;  %v160_v3 = vmul.f32 0.0625, %v73_v59  ;;  %v223_v6 = vmul.f32 %v1456_v55, %v1456_v55 }
  0xa2   :  { %v176_v4 = vmul.f32 0.0625, %v121_v62  ;;  %v239_v12 = vmul.f32 %v1459_v9, %v1459_v9 }
  0xa3   :  { %v1468_v7 = vsub.f32 %v1256_v16, %v160_v3  ;;  %v261_v14 = vsel %vm58_vm0, %v223_v6, 0.0 }
  0xa4   :  { %v1471_v13 = vsub.f32 %v1261_v17, %v176_v4  ;;  %307 = vadd.xlane.f32.xlu1 %v306_v63  ;;  %262 = vadd.xlane.f32.xlu0 %v261_v14  ;;  %v76_v15 = vpop.xlane.xlu0 %75  ;;  %v309_v19 = vsel %vm58_vm0, %v239_v12, 0.0 }
  0xa5   :  { %v124_v18 = vpop.xlane.xlu1 %123  ;;  %v161_v22 = vmul.f32 0.0625, %v76_v15  ;;  %v224_v0 = vmul.f32 %v1468_v7, %v1468_v7 }
  0xa6   :  { %v177_v23 = vmul.f32 0.0625, %v124_v18  ;;  %v240_v16 = vmul.f32 %v1471_v13, %v1471_v13 }
  0xa7   :  { %v1480_v1 = vsub.f32 %v1270_v20, %v161_v22  ;;  %v264_v30 = vsel %vm58_vm0, %v224_v0, 0.0 }
  0xa8   :  { %v1483_v17 = vsub.f32 %v1275_v21, %v177_v23  ;;  %310 = vadd.xlane.f32.xlu1 %v309_v19  ;;  %265 = vadd.xlane.f32.xlu0 %v264_v30  ;;  %v79_v31 = vpop.xlane.xlu0 %78  ;;  %v312_v35 = vsel %vm58_vm0, %v240_v16, 0.0 }
  0xa9   :  { %v127_v34 = vpop.xlane.xlu1 %126  ;;  %v162_v38 = vmul.f32 0.0625, %v79_v31  ;;  %v225_v42 = vmul.f32 %v1480_v1, %v1480_v1 }
  0xaa   :  { %v178_v39 = vmul.f32 0.0625, %v127_v34  ;;  %v241_v20 = vmul.f32 %v1483_v17, %v1483_v17 }
  0xab   :  { %v1492_v43 = vsub.f32 %v1284_v24, %v162_v38  ;;  %v267_v46 = vsel %vm58_vm0, %v225_v42, 0.0 }
  0xac   :  { %v1495_v21 = vsub.f32 %v1289_v25, %v178_v39  ;;  %313 = vadd.xlane.f32.xlu1 %v312_v35  ;;  %268 = vadd.xlane.f32.xlu0 %v267_v46  ;;  %v82_v47 = vpop.xlane.xlu0 %81  ;;  %v315_v51 = vsel %vm58_vm0, %v241_v20, 0.0 }
  0xad   :  { %v130_v50 = vpop.xlane.xlu1 %129  ;;  %v163_v54 = vmul.f32 0.0625, %v82_v47  ;;  %v226_v58 = vmul.f32 %v1492_v43, %v1492_v43 }
  0xae   :  { %v179_v8 = vmul.f32 0.0625, %v130_v50  ;;  %v242_v24 = vmul.f32 %v1495_v21, %v1495_v21 }
  0xaf   :  { %v1504_v59 = vsub.f32 %v1298_v28, %v163_v54  ;;  %v270_v62 = vsel %vm58_vm0, %v226_v58, 0.0 }
  0xb0   :  { %v1507_v25 = vsub.f32 %v1303_v29, %v179_v8  ;;  %316 = vadd.xlane.f32.xlu1 %v315_v51  ;;  %271 = vadd.xlane.f32.xlu0 %v270_v62  ;;  %v85_v63 = vpop.xlane.xlu0 %84  ;;  %v318_v4 = vsel %vm58_vm0, %v242_v24, 0.0 }
  0xb1   :  { %v133_v3 = vpop.xlane.xlu1 %132  ;;  %v164_v6 = vmul.f32 0.0625, %v85_v63  ;;  %v227_v14 = vmul.f32 %v1504_v59, %v1504_v59 }
  0xb2   :  { %v180_v12 = vmul.f32 0.0625, %v133_v3  ;;  %v243_v28 = vmul.f32 %v1507_v25, %v1507_v25 }
  0xb3   :  { %v1516_v15 = vsub.f32 %v1312_v32, %v164_v6  ;;  %v273_v18 = vsel %vm58_vm0, %v227_v14, 0.0 }
  0xb4   :  { %v1519_v29 = vsub.f32 %v1317_v33, %v180_v12  ;;  %319 = vadd.xlane.f32.xlu1 %v318_v4  ;;  %274 = vadd.xlane.f32.xlu0 %v273_v18  ;;  %v88_v19 = vpop.xlane.xlu0 %87  ;;  %v321_v23 = vsel %vm58_vm0, %v243_v28, 0.0 }
  0xb5   :  { %v136_v22 = vpop.xlane.xlu1 %135  ;;  %v165_v0 = vmul.f32 0.0625, %v88_v19  ;;  %v228_v30 = vmul.f32 %v1516_v15, %v1516_v15 }
  0xb6   :  { %v181_v16 = vmul.f32 0.0625, %v136_v22  ;;  %v244_v32 = vmul.f32 %v1519_v29, %v1519_v29 }
  0xb7   :  { %v1528_v31 = vsub.f32 %v1326_v36, %v165_v0  ;;  %v276_v34 = vsel %vm58_vm0, %v228_v30, 0.0 }
  0xb8   :  { %v1531_v33 = vsub.f32 %v1331_v37, %v181_v16  ;;  %322 = vadd.xlane.f32.xlu1 %v321_v23  ;;  %277 = vadd.xlane.f32.xlu0 %v276_v34  ;;  %v91_v35 = vpop.xlane.xlu0 %90  ;;  %v324_v39 = vsel %vm58_vm0, %v244_v32, 0.0 }
  0xb9   :  { %v139_v38 = vpop.xlane.xlu1 %138  ;;  %v166_v42 = vmul.f32 0.0625, %v91_v35  ;;  %v229_v46 = vmul.f32 %v1528_v31, %v1528_v31 }
  0xba   :  { %v182_v20 = vmul.f32 0.0625, %v139_v38  ;;  %v245_v36 = vmul.f32 %v1531_v33, %v1531_v33 }
  0xbb   :  { %v1540_v47 = vsub.f32 %v1340_v40, %v166_v42  ;;  %v279_v50 = vsel %vm58_vm0, %v229_v46, 0.0 }
  0xbc   :  { %v1543_v37 = vsub.f32 %v1345_v41, %v182_v20  ;;  %325 = vadd.xlane.f32.xlu1 %v324_v39  ;;  %280 = vadd.xlane.f32.xlu0 %v279_v50  ;;  %v94_v51 = vpop.xlane.xlu0 %93  ;;  %v327_v8 = vsel %vm58_vm0, %v245_v36, 0.0 }
  0xbd   :  { %v142_v54 = vpop.xlane.xlu1 %141  ;;  %v167_v58 = vmul.f32 0.0625, %v94_v51  ;;  %v230_v62 = vmul.f32 %v1540_v47, %v1540_v47 }
  0xbe   :  { %v183_v24 = vmul.f32 0.0625, %v142_v54  ;;  %v246_v40 = vmul.f32 %v1543_v37, %v1543_v37 }
  0xbf   :  { %v1552_v63 = vsub.f32 %v1354_v44, %v167_v58  ;;  %v282_v3 = vsel %vm58_vm0, %v230_v62, 0.0 }
  0xc0   :  { %v1555_v41 = vsub.f32 %v1359_v45, %v183_v24  ;;  %328 = vadd.xlane.f32.xlu1 %v327_v8  ;;  %283 = vadd.xlane.f32.xlu0 %v282_v3  ;;  %v97_v4 = vpop.xlane.xlu0 %96  ;;  %v330_v12 = vsel %vm58_vm0, %v246_v40, 0.0 }
  0xc1   :  { %v145_v6 = vpop.xlane.xlu1 %144  ;;  %v168_v14 = vmul.f32 0.0625, %v97_v4  ;;  %v231_v18 = vmul.f32 %v1552_v63, %v1552_v63 }
  0xc2   :  { %v184_v28 = vmul.f32 0.0625, %v145_v6  ;;  %v247_v44 = vmul.f32 %v1555_v41, %v1555_v41 }
  0xc3   :  { %v1564_v19 = vsub.f32 %v1368_v48, %v168_v14  ;;  %v285_v22 = vsel %vm58_vm0, %v231_v18, 0.0 }
  0xc4   :  { %v1567_v45 = vsub.f32 %v1373_v49, %v184_v28  ;;  %331 = vadd.xlane.f32.xlu1 %v330_v12  ;;  %286 = vadd.xlane.f32.xlu0 %v285_v22  ;;  %v100_v23 = vpop.xlane.xlu0 %99  ;;  %v333_v16 = vsel %vm58_vm0, %v247_v44, 0.0 }
  0xc5   :  { %v148_v0 = vpop.xlane.xlu1 %147  ;;  %v169_v30 = vmul.f32 0.0625, %v100_v23  ;;  %v232_v34 = vmul.f32 %v1564_v19, %v1564_v19 }
  0xc6   :  { %v185_v32 = vmul.f32 0.0625, %v148_v0  ;;  %v248_v48 = vmul.f32 %v1567_v45, %v1567_v45 }
  0xc7   :  { %v1576_v35 = vsub.f32 %v1382_v52, %v169_v30  ;;  %v288_v38 = vsel %vm58_vm0, %v232_v34, 0.0 }
  0xc8   :  { %v1579_v49 = vsub.f32 %v1387_v53, %v185_v32  ;;  %334 = vadd.xlane.f32.xlu1 %v333_v16  ;;  %289 = vadd.xlane.f32.xlu0 %v288_v38  ;;  %v103_v39 = vpop.xlane.xlu0 %102  ;;  %v336_v20 = vsel %vm58_vm0, %v248_v48, 0.0 }
  0xc9   :  { %v151_v42 = vpop.xlane.xlu1 %150  ;;  %v170_v46 = vmul.f32 0.0625, %v103_v39  ;;  %v233_v50 = vmul.f32 %v1576_v35, %v1576_v35 }
  0xca   :  { %v186_v36 = vmul.f32 0.0625, %v151_v42  ;;  %v249_v52 = vmul.f32 %v1579_v49, %v1579_v49 }
  0xcb   :  { %v1588_v51 = vsub.f32 %v1396_v56, %v170_v46  ;;  %v291_v54 = vsel %vm58_vm0, %v233_v50, 0.0 }
  0xcc   :  { %v1591_v53 = vsub.f32 %v1401_v57, %v186_v36  ;;  %337 = vadd.xlane.f32.xlu1 %v336_v20  ;;  %292 = vadd.xlane.f32.xlu0 %v291_v54  ;;  %v106_v8 = vpop.xlane.xlu0 %105  ;;  %v339_v24 = vsel %vm58_vm0, %v249_v52, 0.0 }
  0xcd   :  { %v154_v58 = vpop.xlane.xlu1 %153  ;;  %v171_v62 = vmul.f32 0.0625, %v106_v8  ;;  %v234_v3 = vmul.f32 %v1588_v51, %v1588_v51 }
  0xce   :  { %v187_v40 = vmul.f32 0.0625, %v154_v58  ;;  %v250_v56 = vmul.f32 %v1591_v53, %v1591_v53 }
  0xcf   :  { %v1600_v4 = vsub.f32 %v1410_v60, %v171_v62  ;;  %v294_v6 = vsel %vm58_vm0, %v234_v3, 0.0  ;;  %v1616_v62 = vld [vmem:[%s1945_s2] ss:$0 sm:$0xff] }
  0xd0   :  { %v1603_v57 = vsub.f32 %v1415_v61, %v187_v40  ;;  %340 = vadd.xlane.f32.xlu1 %v339_v24  ;;  %295 = vadd.xlane.f32.xlu0 %v294_v6  ;;  %v342_v12 = vsel %vm58_vm0, %v250_v56, 0.0 }
  0xd1   :  { %v235_v14 = vmul.f32 %v1600_v4, %v1600_v4 }
  0xd2   :  { %v251_v28 = vmul.f32 %v1603_v57, %v1603_v57 }
  0xd3   :  { %v297_v18 = vsel %vm58_vm0, %v235_v14, 0.0  ;;  %v1622_v14 = vld [vmem:[%s1946_s3] ss:$0 sm:$0xff] }
  0xd4   :  { %343 = vadd.xlane.f32.xlu1 %v342_v12  ;;  %298 = vadd.xlane.f32.xlu0 %v297_v18  ;;  %v345_v60 = vsel %vm58_vm0, %v251_v28, 0.0 }
  0xd8   :  { %346 = vadd.xlane.f32.xlu1 %v345_v60 }
 0x125   :  { %v254_v61 = vpop.xlane.xlu0 %253 }
 0x126   :  { %v348_v44 = vmul.f32 0.0625, %v254_v61 }
 0x128   :  { %v380_v22 = vadd.f32 1e-05, %v348_v44 }
 0x129   :  { %v257_v23 = vpop.xlane.xlu1 %256  ;;  %v302_v0 = vpop.xlane.xlu0 %301 }
 0x12a   :  { %1086 = vrsqrt.f32 %v380_v22  ;;  %v349_v16 = vmul.f32 0.0625, %v257_v23  ;;  %v364_v30 = vmul.f32 0.0625, %v302_v0 }
 0x12c   :  { %v381_v32 = vadd.f32 1e-05, %v349_v16  ;;  %v396_v34 = vadd.f32 1e-05, %v364_v30 }
 0x12d   :  { %v305_v48 = vpop.xlane.xlu1 %304  ;;  %v260_v38 = vpop.xlane.xlu0 %259 }
 0x12e   :  { %1088 = vrsqrt.f32 %v381_v32  ;;  %v365_v39 = vmul.f32 0.0625, %v305_v48  ;;  %v350_v42 = vmul.f32 0.0625, %v260_v38 }
 0x12f   :  { %1090 = vrsqrt.f32 %v396_v34 }
 0x130   :  { %v397_v20 = vadd.f32 1e-05, %v365_v39  ;;  %v382_v46 = vadd.f32 1e-05, %v350_v42 }
 0x131   :  { %v308_v36 = vpop.xlane.xlu1 %307  ;;  %v263_v50 = vpop.xlane.xlu0 %262 }
 0x132   :  { %1092 = vrsqrt.f32 %v397_v20  ;;  %v366_v52 = vmul.f32 0.0625, %v308_v36  ;;  %v351_v54 = vmul.f32 0.0625, %v263_v50 }
 0x133   :  { %1094 = vrsqrt.f32 %v382_v46 }
 0x134   :  { %v1087_v8 = vpop.eup %1086  ;;  %v398_v58 = vadd.f32 1e-05, %v366_v52  ;;  %v383_v24 = vadd.f32 1e-05, %v351_v54 }
 0x135   :  { %v311_v40 = vpop.xlane.xlu1 %310  ;;  %v266_v3 = vpop.xlane.xlu0 %265  ;;  %v444_v56 = vmul.f32 %v1087_v8, %v1422_v10 }
 0x136   :  { %1096 = vrsqrt.f32 %v398_v58  ;;  %v367_v6 = vmul.f32 0.0625, %v311_v40  ;;  %v352_v12 = vmul.f32 0.0625, %v266_v3 }
 0x137   :  { %1098 = vrsqrt.f32 %v383_v24  ;;  %v483_v28 = vmul.f32 %v1616_v62, %v444_v56 }
 0x138   :  { %v1089_v18 = vpop.eup %1088  ;;  %v399_v60 = vadd.f32 1e-05, %v367_v6  ;;  %v384_v61 = vadd.f32 1e-05, %v352_v12 }
 0x139   :  { %v1091_v44 = vpop.eup %1090  ;;  %v314_v22 = vpop.xlane.xlu1 %313  ;;  %v522_v0 = vadd.f32 %v1622_v14, %v483_v28  ;;  %v445_v10 = vmul.f32 %v1089_v18, %v1432_v26 }
 0x13a   :  { %v269_v23 = vpop.xlane.xlu0 %268  ;;  %1100 = vrsqrt.f32 %v399_v60  ;;  %v368_v16 = vmul.f32 0.0625, %v314_v22  ;;  %v460_v32 = vmul.f32 %v1091_v44, %v1425_v11 }
 0x13b   :  { %v353_v30 = vmul.f32 0.0625, %v269_v23  ;;  %1102 = vrsqrt.f32 %v384_v61  ;;  %v554_v34 = vsel %vm58_vm0, %v522_v0, 0.0  ;;  %v484_v48 = vmul.f32 %v1616_v62, %v445_v10 }
 0x13c   :  { %v1093_v38 = vpop.eup %1092  ;;  %v400_v39 = vadd.f32 1e-05, %v368_v16  ;;  %555 = vadd.xlane.f32.xlu0 %v554_v34  ;;  %v499_v20 = vmul.f32 %v1616_v62, %v460_v32 }
 0x13d   :  { %v385_v42 = vadd.f32 1e-05, %v353_v30  ;;  %v1095_v46 = vpop.eup %1094  ;;  %v317_v36 = vpop.xlane.xlu1 %316  ;;  %v523_v26 = vadd.f32 %v1622_v14, %v484_v48  ;;  %v461_v52 = vmul.f32 %v1093_v38, %v1435_v27 }
 0x13e   :  { %v272_v50 = vpop.xlane.xlu0 %271  ;;  %1104 = vrsqrt.f32 %v400_v39  ;;  %v369_v11 = vmul.f32 0.0625, %v317_v36  ;;  %v538_v8 = vadd.f32 %v1622_v14, %v499_v20  ;;  %v446_v40 = vmul.f32 %v1095_v46, %v1444_v2 }
 0x13f   :  { %v354_v54 = vmul.f32 0.0625, %v272_v50  ;;  %1106 = vrsqrt.f32 %v385_v42  ;;  %v557_v58 = vsel %vm58_vm0, %v523_v26, 0.0  ;;  %v500_v24 = vmul.f32 %v1616_v62, %v461_v52 }
 0x140   :  { %v1097_v3 = vpop.eup %1096  ;;  %v401_v56 = vadd.f32 1e-05, %v369_v11  ;;  %558 = vadd.xlane.f32.xlu1 %v557_v58  ;;  %v602_v12 = vsel %vm58_vm0, %v538_v8, 0.0  ;;  %v485_v61 = vmul.f32 %v1616_v62, %v446_v40 }
 0x141   :  { %v386_v6 = vadd.f32 1e-05, %v354_v54  ;;  %v1099_v28 = vpop.eup %1098  ;;  %603 = vadd.xlane.f32.xlu0 %v602_v12  ;;  %v320_v27 = vpop.xlane.xlu1 %319  ;;  %v539_v60 = vadd.f32 %v1622_v14, %v500_v24  ;;  %v462_v44 = vmul.f32 %v1097_v3, %v1447_v5 }
 0x142   :  { %v275_v18 = vpop.xlane.xlu0 %274  ;;  %1108 = vrsqrt.f32 %v401_v56  ;;  %v370_v22 = vmul.f32 0.0625, %v320_v27  ;;  %v447_v2 = vmul.f32 %v1099_v28, %v1456_v55  ;;  %v524_v10 = vadd.f32 %v1622_v14, %v485_v61 }
 0x143   :  { %v355_v23 = vmul.f32 0.0625, %v275_v18  ;;  %1110 = vrsqrt.f32 %v386_v6  ;;  %v605_v0 = vsel %vm58_vm0, %v539_v60, 0.0  ;;  %v501_v16 = vmul.f32 %v1616_v62, %v462_v44 }
 0x144   :  { %v1101_v30 = vpop.eup %1100  ;;  %v402_v32 = vadd.f32 1e-05, %v370_v22  ;;  %606 = vadd.xlane.f32.xlu1 %v605_v0  ;;  %v486_v48 = vmul.f32 %v1616_v62, %v447_v2  ;;  %v560_v5 = vsel %vm58_vm0, %v524_v10, 0.0 }
 0x145   :  { %v387_v34 = vadd.f32 1e-05, %v355_v23  ;;  %v1103_v38 = vpop.eup %1102  ;;  %v323_v39 = vpop.xlane.xlu1 %322  ;;  %v540_v55 = vadd.f32 %v1622_v14, %v501_v16  ;;  %v463_v20 = vmul.f32 %v1101_v30, %v1459_v9  ;;  %561 = vadd.xlane.f32.xlu0 %v560_v5 }
 0x146   :  { %v278_v42 = vpop.xlane.xlu0 %277  ;;  %1112 = vrsqrt.f32 %v402_v32  ;;  %v371_v46 = vmul.f32 0.0625, %v323_v39  ;;  %v525_v50 = vadd.f32 %v1622_v14, %v486_v48  ;;  %v448_v11 = vmul.f32 %v1103_v38, %v1468_v7 }
 0x147   :  { %v356_v36 = vmul.f32 0.0625, %v278_v42  ;;  %1114 = vrsqrt.f32 %v387_v34  ;;  %v608_v26 = vsel %vm58_vm0, %v540_v55, 0.0  ;;  %v502_v52 = vmul.f32 %v1616_v62, %v463_v20 }
 0x148   :  { %v1105_v54 = vpop.eup %1104  ;;  %v403_v8 = vadd.f32 1e-05, %v371_v46  ;;  %609 = vadd.xlane.f32.xlu1 %v608_v26  ;;  %v563_v24 = vsel %vm58_vm0, %v525_v50, 0.0  ;;  %v487_v6 = vmul.f32 %v1616_v62, %v448_v11 }
 0x149   :  { %v388_v58 = vadd.f32 1e-05, %v356_v36  ;;  %v1107_v9 = vpop.eup %1106  ;;  %v326_v40 = vpop.xlane.xlu1 %325  ;;  %v541_v56 = vadd.f32 %v1622_v14, %v502_v52  ;;  %v464_v12 = vmul.f32 %v1105_v54, %v1471_v13  ;;  %564 = vadd.xlane.f32.xlu0 %v563_v24 }
 0x14a   :  { %v281_v3 = vpop.xlane.xlu0 %280  ;;  %1116 = vrsqrt.f32 %v403_v8  ;;  %v372_v28 = vmul.f32 0.0625, %v326_v40  ;;  %v449_v7 = vmul.f32 %v1107_v9, %v1480_v1  ;;  %v526_v60 = vadd.f32 %v1622_v14, %v487_v6 }
 0x14b   :  { %v357_v27 = vmul.f32 0.0625, %v281_v3  ;;  %1118 = vrsqrt.f32 %v388_v58  ;;  %v611_v18 = vsel %vm58_vm0, %v541_v56, 0.0  ;;  %v503_v61 = vmul.f32 %v1616_v62, %v464_v12 }
 0x14c   :  { %v1109_v44 = vpop.eup %1108  ;;  %v404_v22 = vadd.f32 1e-05, %v372_v28  ;;  %612 = vadd.xlane.f32.xlu1 %v611_v18  ;;  %v488_v2 = vmul.f32 %v1616_v62, %v449_v7  ;;  %v566_v0 = vsel %vm58_vm0, %v526_v60, 0.0 }
 0x14d   :  { %v389_v23 = vadd.f32 1e-05, %v357_v27  ;;  %v1111_v13 = vpop.eup %1110  ;;  %v329_v10 = vpop.xlane.xlu1 %328  ;;  %v542_v1 = vadd.f32 %v1622_v14, %v503_v61  ;;  %v465_v30 = vmul.f32 %v1109_v44, %v1483_v17  ;;  %567 = vadd.xlane.f32.xlu0 %v566_v0 }
 0x14e   :  { %v284_v16 = vpop.xlane.xlu0 %283  ;;  %1120 = vrsqrt.f32 %v404_v22  ;;  %v373_v32 = vmul.f32 0.0625, %v329_v10  ;;  %v527_v48 = vadd.f32 %v1622_v14, %v488_v2  ;;  %v450_v39 = vmul.f32 %v1111_v13, %v1492_v43 }
 0x14f   :  { %v358_v34 = vmul.f32 0.0625, %v284_v16  ;;  %1122 = vrsqrt.f32 %v389_v23  ;;  %v614_v38 = vsel %vm58_vm0, %v542_v1, 0.0  ;;  %v504_v5 = vmul.f32 %v1616_v62, %v465_v30 }
 0x150   :  { %v1113_v42 = vpop.eup %1112  ;;  %v405_v55 = vadd.f32 1e-05, %v373_v32  ;;  %615 = vadd.xlane.f32.xlu1 %v614_v38  ;;  %v569_v46 = vsel %vm58_vm0, %v527_v48, 0.0  ;;  %v489_v52 = vmul.f32 %v1616_v62, %v450_v39 }
 0x151   :  { %v390_v20 = vadd.f32 1e-05, %v358_v34  ;;  %v1115_v17 = vpop.eup %1114  ;;  %v332_v36 = vpop.xlane.xlu1 %331  ;;  %v543_v26 = vadd.f32 %v1622_v14, %v504_v5  ;;  %v466_v11 = vmul.f32 %v1113_v42, %v1495_v21  ;;  %570 = vadd.xlane.f32.xlu0 %v569_v46 }
 0x152   :  { %v287_v50 = vpop.xlane.xlu0 %286  ;;  %1124 = vrsqrt.f32 %v405_v55  ;;  %v374_v54 = vmul.f32 0.0625, %v332_v36  ;;  %v451_v43 = vmul.f32 %v1115_v17, %v1504_v59  ;;  %v528_v24 = vadd.f32 %v1622_v14, %v489_v52 }
 0x153   :  { %v359_v8 = vmul.f32 0.0625, %v287_v50  ;;  %1126 = vrsqrt.f32 %v390_v20  ;;  %v617_v58 = vsel %vm58_vm0, %v543_v26, 0.0  ;;  %v505_v9 = vmul.f32 %v1616_v62, %v466_v11 }
 0x154   :  { %v1117_v40 = vpop.eup %1116  ;;  %v406_v3 = vadd.f32 1e-05, %v374_v54  ;;  %618 = vadd.xlane.f32.xlu1 %v617_v58  ;;  %v490_v6 = vmul.f32 %v1616_v62, %v451_v43  ;;  %v572_v12 = vsel %vm58_vm0, %v528_v24, 0.0 }
 0x155   :  { %v391_v56 = vadd.f32 1e-05, %v359_v8  ;;  %v1119_v21 = vpop.eup %1118  ;;  %v335_v28 = vpop.xlane.xlu1 %334  ;;  %v544_v59 = vadd.f32 %v1622_v14, %v505_v9  ;;  %v467_v7 = vmul.f32 %v1117_v40, %v1507_v25  ;;  %573 = vadd.xlane.f32.xlu0 %v572_v12 }
 0x156   :  { %v290_v27 = vpop.xlane.xlu0 %289  ;;  %1128 = vrsqrt.f32 %v406_v3  ;;  %v375_v18 = vmul.f32 0.0625, %v335_v28  ;;  %v529_v61 = vadd.f32 %v1622_v14, %v490_v6  ;;  %v452_v23 = vmul.f32 %v1119_v21, %v1516_v15 }
 0x157   :  { %v360_v60 = vmul.f32 0.0625, %v290_v27  ;;  %1130 = vrsqrt.f32 %v391_v56  ;;  %v620_v44 = vsel %vm58_vm0, %v544_v59, 0.0  ;;  %v506_v22 = vmul.f32 %v1616_v62, %v467_v7 }
 0x158   :  { %v1121_v2 = vpop.eup %1120  ;;  %v407_v13 = vadd.f32 1e-05, %v375_v18  ;;  %621 = vadd.xlane.f32.xlu1 %v620_v44  ;;  %v575_v10 = vsel %vm58_vm0, %v529_v61, 0.0  ;;  %v491_v32 = vmul.f32 %v1616_v62, %v452_v23 }
 0x159   :  { %v392_v0 = vadd.f32 1e-05, %v360_v60  ;;  %v1123_v25 = vpop.eup %1122  ;;  %v338_v16 = vpop.xlane.xlu1 %337  ;;  %v545_v30 = vadd.f32 %v1622_v14, %v506_v22  ;;  %v468_v34 = vmul.f32 %v1121_v2, %v1519_v29  ;;  %576 = vadd.xlane.f32.xlu0 %v575_v10 }
 0x15a   :  { %v293_v1 = vpop.xlane.xlu0 %292  ;;  %1132 = vrsqrt.f32 %v407_v13  ;;  %v376_v48 = vmul.f32 0.0625, %v338_v16  ;;  %v453_v15 = vmul.f32 %v1123_v25, %v1528_v31  ;;  %v530_v39 = vadd.f32 %v1622_v14, %v491_v32 }
 0x15b   :  { %v361_v38 = vmul.f32 0.0625, %v293_v1  ;;  %1134 = vrsqrt.f32 %v392_v0  ;;  %v623_v5 = vsel %vm58_vm0, %v545_v30, 0.0  ;;  %v507_v42 = vmul.f32 %v1616_v62, %v468_v34 }
 0x15c   :  { %v1125_v55 = vpop.eup %1124  ;;  %v408_v20 = vadd.f32 1e-05, %v376_v48  ;;  %624 = vadd.xlane.f32.xlu1 %v623_v5  ;;  %v492_v17 = vmul.f32 %v1616_v62, %v453_v15  ;;  %v578_v36 = vsel %vm58_vm0, %v530_v39, 0.0 }
 0x15d   :  { %v393_v46 = vadd.f32 1e-05, %v361_v38  ;;  %v1127_v29 = vpop.eup %1126  ;;  %v341_v50 = vpop.xlane.xlu1 %340  ;;  %v546_v31 = vadd.f32 %v1622_v14, %v507_v42  ;;  %v469_v52 = vmul.f32 %v1125_v55, %v1531_v33  ;;  %579 = vadd.xlane.f32.xlu0 %v578_v36 }
 0x15e   :  { %v296_v26 = vpop.xlane.xlu0 %295  ;;  %1136 = vrsqrt.f32 %v408_v20  ;;  %v377_v11 = vmul.f32 0.0625, %v341_v50  ;;  %v531_v8 = vadd.f32 %v1622_v14, %v492_v17  ;;  %v454_v24 = vmul.f32 %v1127_v29, %v1540_v47 }
 0x15f   :  { %v362_v54 = vmul.f32 0.0625, %v296_v26  ;;  %1138 = vrsqrt.f32 %v393_v46  ;;  %v626_v43 = vsel %vm58_vm0, %v546_v31, 0.0  ;;  %v508_v58 = vmul.f32 %v1616_v62, %v469_v52  ;;  %v650_v31 = vld [vmem:[%s1947_s1] sm:$0xff]  ;;  %v651_v52 = vld [vmem:[%s1947_s1 + $0x8] sm:$0xff] }
 0x160   :  { %v1129_v9 = vpop.eup %1128  ;;  %v409_v40 = vadd.f32 1e-05, %v377_v11  ;;  %627 = vadd.xlane.f32.xlu1 %v626_v43  ;;  %v581_v56 = vsel %vm58_vm0, %v531_v8, 0.0  ;;  %v493_v28 = vmul.f32 %v1616_v62, %v454_v24 }
 0x161   :  { %v394_v3 = vadd.f32 1e-05, %v362_v54  ;;  %v1131_v33 = vpop.eup %1130  ;;  %v344_v6 = vpop.xlane.xlu1 %343  ;;  %v547_v12 = vadd.f32 %v1622_v14, %v508_v58  ;;  %v470_v27 = vmul.f32 %v1129_v9, %v1543_v37  ;;  %582 = vadd.xlane.f32.xlu0 %v581_v56  ;;  %v1154_v58 = vmov 0.0|0.0  }
 0x162   :  { %v299_v21 = vpop.xlane.xlu0 %298  ;;  %1140 = vrsqrt.f32 %v409_v40  ;;  %v378_v59 = vmul.f32 0.0625, %v344_v6  ;;  %v455_v47 = vmul.f32 %v1131_v33, %v1552_v63  ;;  %v532_v60 = vadd.f32 %v1622_v14, %v493_v28  ;;  %1059 = vmatprep.subr.bf16.mxu0 %v1154_v58  ;;  %v652_v33 = vld [vmem:[%s1947_s1 + $0x10] sm:$0xff]  ;;  %v653_v6 = vld [vmem:[%s1947_s1 + $0x18] sm:$0xff] }
 0x163   :  { %v363_v7 = vmul.f32 0.0625, %v299_v21  ;;  %1142 = vrsqrt.f32 %v394_v3  ;;  %v629_v18 = vsel %vm58_vm0, %v547_v12, 0.0  ;;  %v509_v61 = vmul.f32 %v1616_v62, %v470_v27 }
 0x164   :  { %v1133_v44 = vpop.eup %1132  ;;  %v410_v22 = vadd.f32 1e-05, %v378_v59  ;;  %630 = vadd.xlane.f32.xlu1 %v629_v18  ;;  %v494_v2 = vmul.f32 %v1616_v62, %v455_v47  ;;  %v584_v13 = vsel %vm58_vm0, %v532_v60, 0.0  ;;  %v654_v18 = vld [vmem:[%s1947_s1 + $0x20] sm:$0xff]  ;;  %v655_v60 = vld [vmem:[%s1947_s1 + $0x28] sm:$0xff] }
 0x165   :  { %v395_v23 = vadd.f32 1e-05, %v363_v7  ;;  %v1135_v37 = vpop.eup %1134  ;;  %v347_v0 = vpop.xlane.xlu1 %346  ;;  %v548_v10 = vadd.f32 %v1622_v14, %v509_v61  ;;  %v471_v63 = vmul.f32 %v1133_v44, %v1555_v41  ;;  %585 = vadd.xlane.f32.xlu0 %v584_v13 }
 0x166   :  { %1144 = vrsqrt.f32 %v410_v22  ;;  %v379_v25 = vmul.f32 0.0625, %v347_v0  ;;  %v533_v16 = vadd.f32 %v1622_v14, %v494_v2  ;;  %v456_v1 = vmul.f32 %v1135_v37, %v1564_v19  ;;  %v656_v2 = vld [vmem:[%s1947_s1 + $0x30] sm:$0xff]  ;;  %v657_v37 = vld [vmem:[%s1947_s1 + $0x38] sm:$0xff]  ;;  %v659_v0 = vld [vmem:[%s1947_s1 + $0x48] sm:$0xff] }
 0x167   :  { %1146 = vrsqrt.f32 %v395_v23  ;;  %v632_v30 = vsel %vm58_vm0, %v548_v10, 0.0  ;;  %v510_v32 = vmul.f32 %v1616_v62, %v471_v63  ;;  %v1066_v22 = vpack.c.bf16 %v655_v60, %v654_v18  ;;  %v660_v63 = vld [vmem:[%s1947_s1 + $0x50] sm:$0xff] }
 0x168   :  { %v1137_v34 = vpop.eup %1136  ;;  %v411_v48 = vadd.f32 1e-05, %v379_v25  ;;  %633 = vadd.xlane.f32.xlu1 %v632_v30  ;;  %v587_v38 = vsel %vm58_vm0, %v533_v16, 0.0  ;;  %v495_v15 = vmul.f32 %v1616_v62, %v456_v1  ;;  %v661_v25 = vld [vmem:[%s1947_s1 + $0x58] sm:$0xff]  ;;  %v662_v1 = vld [vmem:[%s1947_s1 + $0x60] sm:$0xff]  ;;  %v663_v30 = vld [vmem:[%s1947_s1 + $0x68] sm:$0xff] }
 0x169   :  { %v1139_v41 = vpop.eup %1138  ;;  %v549_v5 = vadd.f32 %v1622_v14, %v510_v32  ;;  %v472_v39 = vmul.f32 %v1137_v34, %v1567_v45  ;;  %588 = vadd.xlane.f32.xlu0 %v587_v38  ;;  %v1075_v16 = vpack.c.bf16 %v661_v25, %v660_v63  ;;  %v1078_v32 = vpack.c.bf16 %v663_v30, %v662_v1  ;;  %v664_v34 = vld [vmem:[%s1947_s1 + $0x70] sm:$0xff] }
 0x16a   :  { %1148 = vrsqrt.f32 %v411_v48  ;;  %v534_v19 = vadd.f32 %v1622_v14, %v495_v15  ;;  %v457_v42 = vmul.f32 %v1139_v41, %v1576_v35  ;;  %v665_v48 = vld [vmem:[%s1947_s1 + $0x78] sm:$0xff]  ;;  %v1156_v15 = vmov 0.0  }
 0x16b   :  { %v635_v55 = vsel %vm58_vm0, %v549_v5, 0.0  ;;  %v511_v20 = vmul.f32 %v1616_v62, %v472_v39  ;;  %v1081_v38 = vpack.c.bf16 %v665_v48, %v664_v34  ;;  %1056 = vmatprep.mubr.msk.f32.mxu0 %vm1155_vm1, %v1156_v15  ;;  %vm888_vm1 = vcmask 1041409  }
 0x16c   :  { %v1141_v46 = vpop.eup %1140  ;;  %636 = vadd.xlane.f32.xlu1 %v635_v55  ;;  %v590_v17 = vsel %vm58_vm0, %v534_v19, 0.0  ;;  %v496_v29 = vmul.f32 %v1616_v62, %v457_v42 }
 0x16d   :  { %v1143_v36 = vpop.eup %1142  ;;  %v550_v50 = vadd.f32 %v1622_v14, %v511_v20  ;;  %v473_v45 = vmul.f32 %v1141_v46, %v1579_v49  ;;  %591 = vadd.xlane.f32.xlu0 %v590_v17 }
 0x16e   :  { %v535_v26 = vadd.f32 %v1622_v14, %v496_v29  ;;  %v458_v35 = vmul.f32 %v1143_v36, %v1588_v51  ;;  %v1060_v51 = vpack.c.bf16 %v651_v52, %v650_v31  ;;  %v698_v31 = vlaneseq }
 0x16f   :  { %v638_v11 = vsel %vm58_vm0, %v550_v50, 0.0  ;;  %v512_v54 = vmul.f32 %v1616_v62, %v473_v45 }
 0x170   :  { %v1145_v8 = vpop.eup %1144  ;;  %639 = vadd.xlane.f32.xlu1 %v638_v11  ;;  %v593_v49 = vsel %vm58_vm0, %v535_v26, 0.0  ;;  %v497_v43 = vmul.f32 %v1616_v62, %v458_v35  ;;  %1061 = vmatpush3.bf16.msra.mxu0 %v1060_v51 }
 0x171   :  { %v1147_v24 = vpop.eup %1146  ;;  %v551_v9 = vadd.f32 %v1622_v14, %v512_v54  ;;  %v474_v40 = vmul.f32 %v1145_v8, %v1591_v53  ;;  %594 = vadd.xlane.f32.xlu0 %v593_v49  ;;  %1062 = vmatprep.subr.bf16.mxu0 %v1154_v58  ;;  %v1063_v53 = vpack.c.bf16 %v653_v6, %v652_v33  ;;  %v699_v54 = vand.u32 127, %v698_v31 }
 0x172   :  { %v536_v3 = vadd.f32 %v1622_v14, %v497_v43  ;;  %v459_v56 = vmul.f32 %v1147_v24, %v1600_v4  ;;  %v701_v49 = vshrl.u32 %v698_v31, 7 }
 0x173   :  { %v641_v21 = vsel %vm58_vm0, %v551_v9, 0.0  ;;  %v513_v12 = vmul.f32 %v1616_v62, %v474_v40  ;;  %v704_v43 = vadd.s32 4294967288, %v699_v54  ;;  %v711_v51 = vadd.s32 4294967280, %v699_v54 }
 0x174   :  { %v1149_v28 = vpop.eup %1148  ;;  %642 = vadd.xlane.f32.xlu1 %v641_v21  ;;  %v596_v27 = vsel %vm58_vm0, %v536_v3, 0.0  ;;  %v498_v4 = vmul.f32 %v1616_v62, %v459_v56  ;;  %1064 = vmatpush3.bf16.msra.mxu0 %v1063_v53  ;;  %v718_v9 = vadd.s32 4294967272, %v699_v54  ;;  %v725_v40 = vadd.s32 4294967264, %v699_v54 }
 0x175   :  { %v552_v59 = vadd.f32 %v1622_v14, %v513_v12  ;;  %v475_v7 = vmul.f32 %v1149_v28, %v1603_v57  ;;  %597 = vadd.xlane.f32.xlu0 %v596_v27  ;;  %1065 = vmatprep.subr.bf16.mxu0 %v1154_v58  ;;  %v702_v3 = vsub.s32 %v699_v54, %v701_v49  ;;  %v732_v21 = vadd.s32 4294967256, %v699_v54 }
 0x176   :  { %v537_v47 = vadd.f32 %v1622_v14, %v498_v4  ;;  %v707_v56 = vsub.s32 %v704_v43, %v701_v49  ;;  %v714_v6 = vsub.s32 %v711_v51, %v701_v49  ;;  %v739_v12 = vadd.s32 4294967248, %v699_v54 }
 0x177   :  { %v644_v61 = vsel %vm58_vm0, %v552_v59, 0.0  ;;  %v514_v44 = vmul.f32 %v1616_v62, %v475_v7  ;;  %v1069_v62 = vpack.c.bf16 %v657_v37, %v656_v2  ;;  %v746_v53 = vadd.s32 4294967240, %v699_v54 }
 0x178   :  { %645 = vadd.xlane.f32.xlu1 %v644_v61  ;;  %v599_v57 = vsel %vm58_vm0, %v537_v47, 0.0  ;;  %1067 = vmatpush3.bf16.msra.mxu0 %v1066_v22  ;;  %v753_v28 = vadd.s32 4294967232, %v699_v54  ;;  %v760_v27 = vadd.s32 4294967224, %v699_v54  ;;  %v721_v59 = vsub.s32 %v718_v9, %v701_v49 }
 0x179   :  { %v553_v23 = vadd.f32 %v1622_v14, %v514_v44  ;;  %600 = vadd.xlane.f32.xlu0 %v599_v57  ;;  %1068 = vmatprep.subr.bf16.mxu0 %v1154_v58  ;;  %v658_v14 = vld [vmem:[%s1947_s1 + $0x40] sm:$0xff]  ;;  %v728_v7 = vsub.s32 %v725_v40, %v701_v49  ;;  %v767_v47 = vadd.s32 4294967216, %v699_v54  ;;  %v774_v18 = vadd.s32 4294967208, %v699_v54 }
 0x17a   :  { %v1072_v10 = vpack.c.bf16 %v659_v0, %v658_v14  ;;  %v781_v61 = vadd.s32 4294967200, %v699_v54  ;;  %v788_v44 = vadd.s32 4294967192, %v699_v54  ;;  %v735_v22 = vsub.s32 %v732_v21, %v701_v49 }
 0x17b   :  { %v647_v13 = vsel %vm58_vm0, %v553_v23, 0.0  ;;  %v742_v57 = vsub.s32 %v739_v12, %v701_v49  ;;  %v749_v23 = vsub.s32 %v746_v53, %v701_v49  ;;  %v1845_v2 = vsub.s32 %v753_v28, %v701_v49 }
 0x17c   :  { %648 = vadd.xlane.f32.xlu1 %v647_v13  ;;  %1070 = vmatpush3.bf16.msra.mxu0 %v1069_v62  ;;  %v1847_v37 = vsub.s32 %v760_v27, %v701_v49  ;;  %v795_v62 = vadd.s32 4294967184, %v699_v54  ;;  %v802_v14 = vadd.s32 4294967176, %v699_v54  ;;  %v1853_v63 = vsub.s32 %v767_v47, %v701_v49 }
 0x17d   :  { %1071 = vmatprep.subr.bf16.mxu0 %v1154_v58  ;;  %v1855_v25 = vsub.s32 %v774_v18, %v701_v49  ;;  %v1859_v30 = vsub.s32 %v781_v61, %v701_v49  ;;  %v1863_v34 = vsub.s32 %v788_v44, %v701_v49  ;;  %vm807_vm0 = vcmask 1048512  }
 0x17e   :  { %v1871_v31 = vsub.s32 %v795_v62, %v701_v49  ;;  %v1873_v54 = vsub.s32 %v802_v14, %v701_v49 }
 0x180   :  { %1073 = vmatpush3.bf16.msra.mxu0 %v1072_v10 }
 0x181   :  { %1074 = vmatprep.subr.bf16.mxu0 %v1154_v58 }
 0x184   :  { %1076 = vmatpush3.bf16.msra.mxu0 %v1075_v16 }
 0x185   :  { %1077 = vmatprep.subr.bf16.mxu0 %v1154_v58 }
 0x188   :  { %1079 = vmatpush3.bf16.msra.mxu0 %v1078_v32 }
 0x189   :  { %1080 = vmatprep.subr.bf16.mxu0 %v1154_v58 }
 0x18c   :  { %1082 = vmatpush3.bf16.msra.mxu0 %v1081_v38 }
 0x1c9   :  { %v1799_v41 = vpop.xlane.xlu0 %555 }
 0x1ca   :  { %v703_v48 = vrot.slane %v1799_v41, %v702_v3 }
 0x1cd   :  { %v1801_v5 = vpop.xlane.xlu1 %558 }
 0x1ce   :  { %v1803_v39 = vpop.xlane.xlu0 %603  ;;  %v708_v0 = vrot.slane %v1801_v5, %v707_v56 }
 0x1cf   :  { %v812_v38 = vrot.slane %v1803_v39, %v702_v3 }
 0x1d0   :  { %v710_v43 = vsel %vm709_vm2, %v708_v0, %v703_v48 }
 0x1d1   :  { %v1805_v19 = vpop.xlane.xlu1 %606 }
 0x1d2   :  { %v1807_v42 = vpop.xlane.xlu0 %561  ;;  %v816_v10 = vrot.slane %v1805_v19, %v707_v56 }
 0x1d3   :  { %v715_v16 = vrot.slane %v1807_v42, %v714_v6 }
 0x1d4   :  { %v817_v41 = vsel %vm709_vm2, %v816_v10, %v812_v38  ;;  %vm995_vm2 = vcmask 123904  }
 0x1d5   :  { %v1809_v55 = vpop.xlane.xlu1 %609 }
 0x1d6   :  { %v1811_v20 = vpop.xlane.xlu0 %564  ;;  %v821_v1 = vrot.slane %v1809_v55, %v714_v6 }
 0x1d7   :  { %v722_v15 = vrot.slane %v1811_v20, %v721_v59 }
 0x1d9   :  { %v1813_v46 = vpop.xlane.xlu1 %612 }
 0x1da   :  { %v1815_v17 = vpop.xlane.xlu0 %567  ;;  %v826_v5 = vrot.slane %v1813_v46, %v721_v59  ;;  %v717_v46 = vsel %vm716_vm3, %v715_v16, %v710_v43 }
 0x1db   :  { %v729_v19 = vrot.slane %v1815_v17, %v728_v7  ;;  %v822_v17 = vsel %vm716_vm3, %v821_v1, %v817_v41  ;;  %v724_v9 = vsel %vm723_vm4, %v722_v15, %v717_v46  ;;  %v1005_v46 = vld [vmem:[%s1949_s5] ss:$0 sm:$0xff] }
 0x1dc   :  { %v827_v40 = vsel %vm723_vm4, %v826_v5, %v822_v17 }
 0x1dd   :  { %v1817_v29 = vpop.xlane.xlu1 %615 }
 0x1de   :  { %v1819_v36 = vpop.xlane.xlu0 %570  ;;  %v831_v42 = vrot.slane %v1817_v29, %v728_v7 }
 0x1df   :  { %v736_v39 = vrot.slane %v1819_v36, %v735_v22 }
 0x1e0   :  { %v832_v56 = vsel %vm730_vm5, %v831_v42, %v827_v40 }
 0x1e1   :  { %v1821_v50 = vpop.xlane.xlu1 %618 }
 0x1e2   :  { %v1823_v45 = vpop.xlane.xlu0 %573  ;;  %v836_v20 = vrot.slane %v1821_v50, %v735_v22  ;;  %v731_v50 = vsel %vm730_vm5, %v729_v19, %v724_v9 }
 0x1e3   :  { %v743_v29 = vrot.slane %v1823_v45, %v742_v57  ;;  %v738_v21 = vsel %vm737_vm6, %v736_v39, %v731_v50 }
 0x1e4   :  { %v837_v12 = vsel %vm737_vm6, %v836_v20, %v832_v56 }
 0x1e5   :  { %v1825_v26 = vpop.xlane.xlu1 %621  ;;  %v745_v53 = vsel %vm744_vm7, %v743_v29, %v738_v21 }
 0x1e6   :  { %v1827_v35 = vpop.xlane.xlu0 %576  ;;  %v841_v51 = vrot.slane %v1825_v26, %v742_v57 }
 0x1e7   :  { %v750_v3 = vrot.slane %v1827_v35, %v749_v23 }
 0x1e8   :  { %v842_v28 = vsel %vm744_vm7, %v841_v51, %v837_v12 }
 0x1e9   :  { %v1829_v52 = vpop.xlane.xlu1 %624  ;;  %v752_v59 = vsel %vm751_vm8, %v750_v3, %v745_v53 }
 0x1ea   :  { %v1831_v11 = vpop.xlane.xlu0 %579  ;;  %v846_v36 = vrot.slane %v1829_v52, %v749_v23 }
 0x1eb   :  { %v757_v6 = vrot.slane %v1831_v11, %v1845_v2 }
 0x1ec   :  { %v847_v7 = vsel %vm751_vm8, %v846_v36, %v842_v28 }
 0x1ed   :  { %v1833_v8 = vpop.xlane.xlu1 %627  ;;  %v759_v47 = vsel %vm758_vm9, %v757_v6, %v752_v59 }
 0x1ee   :  { %v1835_v58 = vpop.xlane.xlu0 %582  ;;  %v851_v45 = vrot.slane %v1833_v8, %v1845_v2 }
 0x1ef   :  { %v764_v35 = vrot.slane %v1835_v58, %v1847_v37 }
 0x1f0   :  { %v852_v18 = vsel %vm758_vm9, %v851_v45, %v847_v7 }
 0x1f1   :  { %v1837_v24 = vpop.xlane.xlu1 %630  ;;  %v766_v44 = vsel %vm765_vm10, %v764_v35, %v759_v47 }
 0x1f2   :  { %v1839_v33 = vpop.xlane.xlu0 %585  ;;  %v856_v52 = vrot.slane %v1837_v24, %v1847_v37 }
 0x1f3   :  { %v771_v11 = vrot.slane %v1839_v33, %v1853_v63 }
 0x1f4   :  { %v857_v22 = vsel %vm765_vm10, %v856_v52, %v852_v18 }
 0x1f5   :  { %v1841_v4 = vpop.xlane.xlu1 %633  ;;  %v773_v23 = vsel %vm772_vm11, %v771_v11, %v766_v44 }
 0x1f6   :  { %v1843_v60 = vpop.xlane.xlu0 %588  ;;  %v861_v8 = vrot.slane %v1841_v4, %v1853_v63 }
 0x1f7   :  { %v778_v58 = vrot.slane %v1843_v60, %v1855_v25 }
 0x1f8   :  { %v862_v2 = vsel %vm772_vm11, %v861_v8, %v857_v22 }
 0x1f9   :  { %v1849_v13 = vpop.xlane.xlu1 %636  ;;  %v780_v14 = vsel %vm779_vm12, %v778_v58, %v773_v23 }
 0x1fa   :  { %v1861_v32 = vpop.xlane.xlu0 %591  ;;  %v866_v24 = vrot.slane %v1849_v13, %v1855_v25 }
 0x1fb   :  { %v785_v33 = vrot.slane %v1861_v32, %v1859_v30 }
 0x1fc   :  { %v867_v0 = vsel %vm779_vm12, %v866_v24, %v862_v2 }
 0x1fd   :  { %v640_v55 = vpop.xlane.xlu1 %639  ;;  %v787_v63 = vsel %vm786_vm13, %v785_v33, %v780_v14 }
 0x1fe   :  { %v595_v49 = vpop.xlane.xlu0 %594  ;;  %v871_v4 = vrot.slane %v640_v55, %v1859_v30 }
 0x1ff   :  { %v792_v57 = vrot.slane %v595_v49, %v1863_v34  ;;  %v1006_v49 = vld [vmem:[%s1950_s6] ss:$0 sm:$0xff] }
 0x200   :  { %v872_v25 = vsel %vm786_vm13, %v871_v4, %v867_v0 }
 0x201   :  { %v643_v26 = vpop.xlane.xlu1 %642  ;;  %v794_v1 = vsel %vm793_vm14, %v792_v57, %v787_v63 }
 0x202   :  { %v598_v27 = vpop.xlane.xlu0 %597  ;;  %v876_v60 = vrot.slane %v643_v26, %v1863_v34 }
 0x203   :  { %v799_v37 = vrot.slane %v598_v27, %v1871_v31 }
 0x204   :  { %v877_v30 = vsel %vm793_vm14, %v876_v60, %v872_v25 }
 0x205   :  { %v646_v61 = vpop.xlane.xlu1 %645  ;;  %v801_v34 = vsel %vm800_vm15, %v799_v37, %v794_v1 }
 0x206   :  { %v881_v13 = vrot.slane %v646_v61, %v1871_v31  ;;  %v601_v62 = vpop.xlane.xlu0 %600 }
 0x207   :  { %v806_v10 = vrot.slane %v601_v62, %v1873_v54 }
 0x208   :  { %v882_v48 = vsel %vm800_vm15, %v881_v13, %v877_v30 }
 0x209   :  { %v649_v16 = vpop.xlane.xlu1 %648  ;;  %v808_v38 = vsel %vm807_vm0, %v806_v10, %v801_v34 }
 0x20a   :  { %v886_v32 = vrot.slane %v649_v16, %v1873_v54  ;;  %v1004_v54 = vld [vmem:[%s1948_s4] ss:$0 sm:$0xff] }
 0x20c   :  { %v887_v15 = vsel %vm807_vm0, %v886_v32, %v882_v48 }
 0x20d   :  { %v889_v5 = vsel %vm888_vm1, %v887_v15, %v808_v38 }
 0x20e   :  { %1057 = vmatmul.mubr.f32.vlgmr.msra.gmra.mrb[0].mxu0 %v889_v5 }
 0x2e1   :  { %v957_v19 = vpop.f32.mrb[0].mxu0 }
 0x2e2   :  { %v1003_v42 = vmul.f32 -0.0078125, %v957_v19  ;;  %v1058_v55 = vpop.f32.mrb[1].mxu0  ;;  %v962_v39 = vmul.f32 0.0078125, %v957_v19 }
 0x2e4   :  { %v965_v31 = vmul.f32 1.442695, %v1003_v42  ;;  %v985_v51 = vmul.f32 %v1005_v46, %v962_v39 }
 0x2e6   :  { %1150 = vpow2.f32 %v965_v31 }
 0x2f0   :  { %v1151_v43 = vpop.eup %1150 }
 0x2f1   :  { %v967_v41 = vadd.f32 1.0, %v1151_v43 }
 0x2f3   :  { %1152 = vrcp.f32 %v967_v41 }
 0x2fd   :  { %v1153_v20 = vpop.eup %1152 }
 0x2fe   :  { %v970_v17 = vmul.f32 %v1153_v20, %v962_v39 }
 0x300   :  { %v977_v29 = vmul.f32 %v1004_v54, %v970_v17 }
 0x302   :  { %v986_v9 = vadd.f32 %v985_v51, %v977_v29 }
 0x304   :  { %v994_v40 = vadd.f32 %v1006_v49, %v986_v9 }
 0x306   :  { %996 = vst.msk [vmem:[%s1951_s7] sm:$0x3] %vm995_vm2, %v994_v40 }

// kernel: ts_tf_block.5
= control target key start
LH: loop header
LB: loop body
LE: loop exit
PB: predicated region body
PF: predicated region fallthrough
CT: control target
= control target key end

     0   :  { %v3934_v56 = vmov 0   ;;  %vm2585_vm0 = vmmov 0   ;;  %s3911_s1 = inlined_call_operand.vmem [shape: f32[128,128], index: 1, kind: input, shape index: {}]   ;;  %s3912_s0 = inlined_call_operand.vmem [shape: f32[2,16,128], index: 0, kind: input, shape index: {}]   ;;  %s3913_s4 = inlined_call_operand.vmem [shape: bf16[128,256], index: 4, kind: input, shape index: {}]   ;;  %s3914_s2 = inlined_call_operand.vmem [shape: f32[1,128], index: 2, kind: input, shape index: {}]   ;;  %s3915_s3 = inlined_call_operand.vmem [shape: f32[1,128], index: 3, kind: input, shape index: {}]   ;;  %s3916_s8 = inlined_call_operand.vmem [shape: bf16[128,128], index: 8, kind: input, shape index: {}]   ;;  %s3917_s5 = inlined_call_operand.vmem [shape: f32[1,256], index: 5, kind: input, shape index: {}]   ;;  %s3918_s6 = inlined_call_operand.vmem [shape: f32[11,256], index: 6, kind: input, shape index: {}]   ;;  %s3919_s7 = inlined_call_operand.vmem [shape: f32[1,256], index: 7, kind: input, shape index: {}]   ;;  %s3920_s10 = inlined_call_operand.vmem [shape: bf16[128,128], index: 10, kind: input, shape index: {}]   ;;  %s3921_s9 = inlined_call_operand.vmem [shape: f32[1,128], index: 9, kind: input, shape index: {}]   ;;  %s3922_s11 = inlined_call_operand.vmem [shape: f32[1,128], index: 11, kind: input, shape index: {}]   ;;  %s3923_s14 = inlined_call_operand.vmem [shape: bf16[128,256], index: 14, kind: input, shape index: {}]   ;;  %s3924_s12 = inlined_call_operand.vmem [shape: f32[1,128], index: 12, kind: input, shape index: {}]   ;;  %s3925_s13 = inlined_call_operand.vmem [shape: f32[1,128], index: 13, kind: input, shape index: {}]   ;;  %s3926_s16 = inlined_call_operand.vmem [shape: bf16[128,128], index: 16, kind: input, shape index: {}]   ;;  %s3927_s15 = inlined_call_operand.vmem [shape: f32[1,256], index: 15, kind: input, shape index: {}]   ;;  %s3928_s17 = inlined_call_operand.vmem [shape: f32[1,128], index: 17, kind: input, shape index: {}]   ;;  %s3929_s18 = inlined_call_operand.vmem [shape: f32[1,128], index: 18, kind: input, shape index: {}]   ;;  %s3930_s19 = inlined_call_operand.vmem [shape: f32[2,16,128], index: 19, kind: output, shape index: {}]  }
   0x1   :  { %3978 = sst [smem:[#allocation53_spill]] %s3911_s1 }
   0x2   :  { %3979 = sst [smem:[#allocation54_spill]] %s3912_s0  ;;  %s3982_s20 = sld [smem:[#allocation53_spill]] }
   0x3   :  { %3980 = sst [smem:[#allocation55_spill]] %s3913_s4  ;;  %s3986_s1 = sld [smem:[#allocation54_spill]] }
   0x4   :  { %3981 = sst [smem:[#allocation56_spill]] %s3914_s2  ;;  %s3992_s21 = sld [smem:[#allocation55_spill]] }
   0x8   :  { %v67_v0 = vld [vmem:[%s3982_s20] sm:$0xff]  ;;  %v68_v1 = vld [vmem:[%s3982_s20 + $0x8] sm:$0xff]  ;;  %v69_v2 = vld [vmem:[%s3982_s20 + $0x10] sm:$0xff] }
   0x9   :  { %v2696_v3 = vpack.c.bf16 %v68_v1, %v67_v0  ;;  %v70_v4 = vld [vmem:[%s3982_s20 + $0x18] sm:$0xff]  ;;  %v71_v6 = vld [vmem:[%s3982_s20 + $0x20] sm:$0xff]  ;;  %v72_v7 = vld [vmem:[%s3982_s20 + $0x28] sm:$0xff] }
   0xa   :  { %v2701_v5 = vpack.c.bf16 %v70_v4, %v69_v2  ;;  %v2714_v8 = vpack.c.bf16 %v72_v7, %v71_v6  ;;  %v2719_v9 = vld [vmem:[%s3986_s1] sm:$0xff]  ;;  %v73_v10 = vld [vmem:[%s3982_s20 + $0x30] sm:$0xff]  ;;  %v74_v11 = vld [vmem:[%s3982_s20 + $0x38] sm:$0xff] }
   0xb   :  { %3983 = vst [vmem:[#allocation2_spill] sm:$0xff] %v2696_v3  ;;  %2324 = vmatprep.subr.bf16.mxu0 %v2696_v3  ;;  %2356 = vmatprep.subr.bf16.mxu1 %v2696_v3  ;;  %v2732_v12 = vpack.c.bf16 %v74_v11, %v73_v10  ;;  %v75_v13 = vld [vmem:[%s3982_s20 + $0x40] sm:$0xff]  ;;  %v76_v14 = vld [vmem:[%s3982_s20 + $0x48] sm:$0xff]  ;;  %v77_v16 = vld [vmem:[%s3982_s20 + $0x50] sm:$0xff] }
   0xc   :  { %3984 = vst [vmem:[#allocation3_spill] sm:$0xff] %v2701_v5  ;;  %2326 = vmatpush3.bf16.msra.mxu0 %v2696_v3  ;;  %2358 = vmatpush3.bf16.msra.mxu1 %v2696_v3  ;;  %3985 = vst [vmem:[#allocation4_spill] sm:$0xff] %v2714_v8  ;;  %v2744_v15 = vpack.c.bf16 %v76_v14, %v75_v13  ;;  %v78_v17 = vld [vmem:[%s3982_s20 + $0x58] sm:$0xff]  ;;  %v79_v19 = vld [vmem:[%s3982_s20 + $0x60] sm:$0xff] }
   0xd   :  { %2328 = vmatprep.subr.bf16.mxu0 %v2701_v5  ;;  %2360 = vmatprep.subr.bf16.mxu1 %v2701_v5  ;;  %3987 = vst [vmem:[#allocation5_spill] sm:$0xff] %v2732_v12  ;;  %v2756_v18 = vpack.c.bf16 %v78_v17, %v77_v16  ;;  %v80_v20 = vld [vmem:[%s3982_s20 + $0x68] sm:$0xff]  ;;  %v81_v22 = vld [vmem:[%s3982_s20 + $0x70] sm:$0xff]  ;;  %v82_v23 = vld [vmem:[%s3982_s20 + $0x78] sm:$0xff]  ;;  %s3993_s20 = sld [smem:[#allocation56_spill]] }
   0xe   :  { %2143 = vmatprep.mubr.f32.mxu0 %v2719_v9  ;;  %3988 = vst [vmem:[#allocation6_spill] sm:$0xff] %v2744_v15  ;;  %v2768_v21 = vpack.c.bf16 %v80_v20, %v79_v19  ;;  %v2780_v24 = vpack.c.bf16 %v82_v23, %v81_v22  ;;  %v64_v25 = vld [vmem:[%s3986_s1 + $0x8] sm:$0xff]  ;;  %v65_v26 = vld [vmem:[%s3986_s1 + $0x10] sm:$0xff]  ;;  %v66_v27 = vld [vmem:[%s3986_s1 + $0x18] sm:$0xff] }
   0xf   :  { %3989 = vst [vmem:[#allocation7_spill] sm:$0xff] %v2756_v18  ;;  %v2455_v28 = vld [vmem:[%s3992_s21] ss:$8 sps:$4 sm:$0xff]   ;;  %v2457_v29 = vld [vmem:[%s3992_s21 + $0x4] ss:$8 sps:$4 sm:$0xff]  }
  0x10   :  { %2330 = vmatpush3.bf16.msra.mxu0 %v2701_v5  ;;  %2362 = vmatpush3.bf16.msra.mxu1 %v2701_v5  ;;  %3990 = vst [vmem:[#allocation8_spill] sm:$0xff] %v2768_v21  ;;  %3991 = vst [vmem:[#allocation9_spill] sm:$0xff] %v2780_v24  ;;  %v2460_v30 = vld [vmem:[%s3992_s21 + $0x14] ss:$8 sps:$4 sm:$0xff]   ;;  %v2458_v31 = vld [vmem:[%s3992_s21 + $0x10] ss:$8 sps:$4 sm:$0xff]  }
  0x11   :  { %2332 = vmatprep.subr.bf16.mxu0 %v2714_v8  ;;  %2364 = vmatprep.subr.bf16.mxu1 %v2714_v8  ;;  %v2463_v32 = vld [vmem:[%s3992_s21 + $0x24] ss:$8 sps:$4 sm:$0xff]   ;;  %v2461_v33 = vld [vmem:[%s3992_s21 + $0x20] ss:$8 sps:$4 sm:$0xff]   ;;  %v2466_v46 = vld [vmem:[%s3992_s21 + $0x34] ss:$8 sps:$4 sm:$0xff]  }
  0x12   :  { %v2464_v47 = vld [vmem:[%s3992_s21 + $0x30] ss:$8 sps:$4 sm:$0xff]   ;;  %v2469_v48 = vld [vmem:[%s3992_s21 + $0x44] ss:$8 sps:$4 sm:$0xff]   ;;  %v2467_v49 = vld [vmem:[%s3992_s21 + $0x40] ss:$8 sps:$4 sm:$0xff]  }
  0x13   :  { %v2472_v50 = vld [vmem:[%s3992_s21 + $0x54] ss:$8 sps:$4 sm:$0xff]   ;;  %v2470_v51 = vld [vmem:[%s3992_s21 + $0x50] ss:$8 sps:$4 sm:$0xff]   ;;  %v2475_v52 = vld [vmem:[%s3992_s21 + $0x64] ss:$8 sps:$4 sm:$0xff]  }
  0x14   :  { %2334 = vmatpush3.bf16.msra.mxu0 %v2714_v8  ;;  %2366 = vmatpush3.bf16.msra.mxu1 %v2714_v8  ;;  %v2473_v53 = vld [vmem:[%s3992_s21 + $0x60] ss:$8 sps:$4 sm:$0xff]   ;;  %v2476_v54 = vld [vmem:[%s3992_s21 + $0x70] ss:$8 sps:$4 sm:$0xff]   ;;  %v2478_v55 = vld [vmem:[%s3992_s21 + $0x74] ss:$8 sps:$4 sm:$0xff]  }
  0x15   :  { %2336 = vmatprep.subr.bf16.mxu0 %v2732_v12  ;;  %2368 = vmatprep.subr.bf16.mxu1 %v2732_v12  ;;  %v1929_v2 = vld [vmem:[%s3993_s20] ss:$0 sm:$0xff] }
  0x18   :  { %2338 = vmatpush3.bf16.msra.mxu0 %v2732_v12  ;;  %2370 = vmatpush3.bf16.msra.mxu1 %v2732_v12 }
  0x19   :  { %2340 = vmatprep.subr.bf16.mxu0 %v2744_v15  ;;  %2372 = vmatprep.subr.bf16.mxu1 %v2744_v15 }
  0x1c   :  { %2342 = vmatpush3.bf16.msra.mxu0 %v2744_v15  ;;  %2374 = vmatpush3.bf16.msra.mxu1 %v2744_v15 }
  0x1d   :  { %2344 = vmatprep.subr.bf16.mxu0 %v2756_v18  ;;  %2376 = vmatprep.subr.bf16.mxu1 %v2756_v18 }
  0x20   :  { %2346 = vmatpush3.bf16.msra.mxu0 %v2756_v18  ;;  %2378 = vmatpush3.bf16.msra.mxu1 %v2756_v18 }
  0x21   :  { %2348 = vmatprep.subr.bf16.mxu0 %v2768_v21  ;;  %2380 = vmatprep.subr.bf16.mxu1 %v2768_v21 }
  0x24   :  { %2350 = vmatpush3.bf16.msra.mxu0 %v2768_v21  ;;  %2382 = vmatpush3.bf16.msra.mxu1 %v2768_v21 }
  0x25   :  { %2352 = vmatprep.subr.bf16.mxu0 %v2780_v24  ;;  %2384 = vmatprep.subr.bf16.mxu1 %v2780_v24 }
  0x28   :  { %2354 = vmatpush3.bf16.msra.mxu0 %v2780_v24  ;;  %2386 = vmatpush3.bf16.msra.mxu1 %v2780_v24 }
  0x29   :  { %401 = vmatprep.subr.bf16.mxu0 %v2457_v29  ;;  %v2584_v29 = vmov 0.0  }
  0x2a   :  { %2187 = vmatprep.subr.bf16.mxu1 %v2584_v29 }
  0x2b   :  { %2144 = vmatmul.mubr.f32.vlgmr.msra.gmra.mrb[0].mxu0 %v64_v25 }
  0x2c   :  { %2146 = vmatprep.mubr.f32.mxu0 %v65_v26  ;;  %402 = vmatpush1.bf16.msra.mxu0 %v2455_v28 }
  0x2d   :  { %403 = vmatprep.subr.bf16.mxu0 %v2460_v30  ;;  %v2479_v30 = vld [vmem:[%s3916_s8] sm:$0xff]  }
  0x2f   :  { %2147 = vmatmul.mubr.f32.gmra.mrb[2].mxu0 %v66_v27 }
  0x30   :  { %404 = vmatpush1.bf16.msra.mxu0 %v2458_v31  ;;  %433 = vmatprep.mubr.bf16.mxu0 %v3934_v56  ;;  %v2480_v31 = vld [vmem:[%s3916_s8 + $0x8] sm:$0xff]  }
  0x31   :  { %405 = vmatprep.subr.bf16.mxu0 %v2463_v32  ;;  %v2481_v32 = vld [vmem:[%s3916_s8 + $0x10] sm:$0xff]  }
  0x34   :  { %406 = vmatpush1.bf16.msra.mxu0 %v2461_v33  ;;  %v2482_v33 = vld [vmem:[%s3916_s8 + $0x18] sm:$0xff]  }
  0x35   :  { %407 = vmatprep.subr.bf16.mxu0 %v2466_v46 }
  0x38   :  { %408 = vmatpush1.bf16.msra.mxu0 %v2464_v47 }
  0x39   :  { %409 = vmatprep.subr.bf16.mxu0 %v2469_v48 }
  0x3c   :  { %410 = vmatpush1.bf16.msra.mxu0 %v2467_v49  ;;  %v461_v49 = vld [vmem:[%s3919_s7] sm:$0x3] }
  0x3d   :  { %411 = vmatprep.subr.bf16.mxu0 %v2472_v50 }
  0x40   :  { %412 = vmatpush1.bf16.msra.mxu0 %v2470_v51 }
  0x41   :  { %413 = vmatprep.subr.bf16.mxu0 %v2475_v52 }
  0x44   :  { %414 = vmatpush1.bf16.msra.mxu0 %v2473_v53 }
  0x45   :  { %415 = vmatprep.subr.bf16.mxu0 %v2478_v55 }
  0x48   :  { %416 = vmatpush1.bf16.msra.mxu0 %v2476_v54 }
  0xfe   :  { %v2145_v34 = vpop.f32.mrb[0].mxu0 }
  0xff   :  { %v169_v35 = vsub.f32 %v64_v25, %v2145_v34  ;;  %v149_v36 = vpop.f32.mrb[1].mxu0  ;;  %v2483_v34 = vld [vmem:[%s3916_s8 + $0x20] sm:$0xff]  }
 0x100   :  { %v168_v37 = vsub.f32 %v2719_v9, %v149_v36  ;;  %v1930_v9 = vld [vmem:[%s3915_s3] ss:$0 sm:$0xff]  ;;  %v2485_v36 = vld [vmem:[%s3916_s8 + $0x30] sm:$0xff]  }
 0x101   :  { %v173_v40 = vmul.f32 %v169_v35, %v169_v35 }
 0x102   :  { %v2148_v38 = vpop.f32.mrb[2].mxu0  ;;  %v172_v39 = vmul.f32 %v168_v37, %v168_v37 }
 0x103   :  { %v171_v41 = vsub.f32 %v66_v27, %v2148_v38  ;;  %v159_v42 = vpop.f32.mrb[3].mxu0  ;;  %v311_v38 = vlaneseq }
 0x104   :  { %v170_v43 = vsub.f32 %v65_v26, %v159_v42  ;;  %2181 = vmatprep.mubr.f32.mxu1 %v172_v39 }
 0x105   :  { %v175_v44 = vmul.f32 %v171_v41, %v171_v41  ;;  %2182 = vmatmul.mubr.f32.vlgmr.msra.gmra.mrb[0].mxu1 %v173_v40  ;;  %v2880_v39 = vshrl.u32 %v311_v38, 7 }
 0x106   :  { %v174_v45 = vmul.f32 %v170_v43, %v170_v43  ;;  %2188 = vmatpush3.bf16.msra.mxu1 %v2479_v30 }
 0x107   :  { %2189 = vmatprep.subr.bf16.mxu1 %v2584_v29  ;;  %v2883_v40 = vsub.s32 0, %v2880_v39  ;;  %v2887_v42 = vsub.s32 1, %v2880_v39  ;;  %v689_v46 = vsub.s32 3, %v2880_v39  ;;  %v748_v47 = vsub.s32 4, %v2880_v39 }
 0x108   :  { %2184 = vmatprep.mubr.f32.mxu1 %v174_v45  ;;  %v455_v45 = vld [vmem:[%s3918_s6 + $0x8] sm:$0xff]  ;;  %v831_v48 = vsub.s32 6, %v2880_v39  ;;  %v890_v50 = vsub.s32 7, %v2880_v39  ;;  %v2916_v55 = vadd.s32 8, %v2880_v39  ;;  %vm660_vm1 = vcmp.lt.s32.totalorder %v2880_v39, 2 }
 0x109   :  { %2185 = vmatmul.mubr.f32.gmra.mrb[2].mxu1 %v175_v44  ;;  %3994 = vst [vmem:[#allocation10_spill] sm:$0xff] %v2883_v40  ;;  %3995 = vst [vmem:[#allocation11_spill] sm:$0xff] %v2887_v42  ;;  %v454_v44 = vld [vmem:[%s3918_s6] sm:$0xff]  ;;  %vm669_vm2 = vcmp.ge.s32.totalorder %v2880_v39, 2  ;;  %vm719_vm3 = vcmp.lt.s32.totalorder %v2880_v39, 1  ;;  %vm728_vm4 = vcmp.ge.s32.totalorder %v2880_v39, 1 }
 0x10a   :  { %2203 = vmatprep.mubr.msk.bf16.mxu1 %vm2585_vm0, %v2584_v29  ;;  %2190 = vmatpush3.bf16.msra.mxu1 %v2480_v31  ;;  %vm802_vm5 = vcmp.lt.s32.totalorder %v2880_v39, 7  ;;  %vm861_vm6 = vcmp.lt.s32.totalorder %v2880_v39, 6  ;;  %vm814_vm7 = vcmp.lt.s32.totalorder %v2916_v55, 15  ;;  %vm483_vm8 = vcmp.lt.s32.totalorder %v2880_v39, 5 }
 0x10b   :  { %2191 = vmatprep.subr.bf16.mxu1 %v2584_v29  ;;  %vm492_vm9 = vcmp.ge.s32.totalorder %v2880_v39, 5  ;;  %vm873_vm10 = vcmp.lt.s32.totalorder %v2916_v55, 14  ;;  %vm542_vm11 = vcmp.lt.s32.totalorder %v2880_v39, 4  ;;  %vm551_vm12 = vcmp.ge.s32.totalorder %v2880_v39, 4 }
 0x10c   :  { %vm601_vm13 = vcmp.lt.s32.totalorder %v2880_v39, 3  ;;  %vm610_vm14 = vcmp.ge.s32.totalorder %v2880_v39, 3  ;;  %vm915_vm15 = vcmp.lt.s32.totalorder %v2916_v55, 13  ;;  %vm957_vm0 = vcmp.lt.s32.totalorder %v2916_v55, 12 }
 0x10e   :  { %2192 = vmatpush3.bf16.msra.mxu1 %v2481_v32 }
 0x10f   :  { %2193 = vmatprep.subr.bf16.mxu1 %v2584_v29 }
 0x112   :  { %2194 = vmatpush3.bf16.msra.mxu1 %v2482_v33 }
 0x113   :  { %2195 = vmatprep.subr.bf16.mxu1 %v2584_v29 }
 0x116   :  { %2196 = vmatpush3.bf16.msra.mxu1 %v2483_v34 }
 0x117   :  { %2197 = vmatprep.subr.bf16.mxu1 %v2584_v29 }
 0x1d8   :  { %v2183_v57 = vpop.f32.mrb[0].mxu1 }
 0x1d9   :  { %v248_v58 = vadd.f32 1e-05, %v2183_v57  ;;  %v242_v59 = vpop.f32.mrb[1].mxu1  ;;  %v2918_v57 = vrot.slane %v454_v44, %v689_v46 }
 0x1da   :  { %v243_v60 = vadd.f32 1e-05, %v242_v59  ;;  %v630_v59 = vsub.s32 2, %v2880_v39 }
 0x1db   :  { %2527 = vrsqrt.f32 %v248_v58  ;;  %v2920_v58 = vrot.slane %v454_v44, %v748_v47 }
 0x1dc   :  { %2529 = vrsqrt.f32 %v243_v60  ;;  %v2186_v61 = vpop.f32.mrb[2].mxu1  ;;  %v2923_v60 = vrot.slane %v454_v44, %v831_v48 }
 0x1dd   :  { %v258_v62 = vadd.f32 1e-05, %v2186_v61  ;;  %v252_v63 = vpop.f32.mrb[3].mxu1  ;;  %v2926_v61 = vrot.slane %v461_v49, %v2887_v42 }
 0x1de   :  { %v253_v0 = vadd.f32 1e-05, %v252_v63  ;;  %v2931_v63 = vrot.slane %v455_v45, %v689_v46 }
 0x1df   :  { %2531 = vrsqrt.f32 %v258_v62  ;;  %v2929_v62 = vrot.slane %v455_v45, %v2883_v40 }
 0x1e0   :  { %2533 = vrsqrt.f32 %v253_v0 }
 0x1e5   :  { %v2528_v1 = vpop.eup %2527 }
 0x1e6   :  { %v2530_v4 = vpop.eup %2529  ;;  %v266_v6 = vmul.f32 %v2528_v1, %v169_v35  ;;  %v2484_v35 = vld [vmem:[%s3916_s8 + $0x28] sm:$0xff]   ;;  %v2934_v1 = vrot.slane %v455_v45, %v748_v47 }
 0x1e7   :  { %v265_v7 = vmul.f32 %v2530_v4, %v168_v37  ;;  %2198 = vmatpush3.bf16.msra.mxu1 %v2484_v35  ;;  %v2486_v37 = vld [vmem:[%s3916_s8 + $0x38] sm:$0xff]   ;;  %v2938_v4 = vrot.slane %v455_v45, %v890_v50 }
 0x1e8   :  { %v277_v10 = vmul.f32 %v1929_v2, %v266_v6  ;;  %2199 = vmatprep.subr.bf16.mxu1 %v2584_v29  ;;  %v456_v6 = vld [vmem:[%s3918_s6 + $0x10] sm:$0x7] }
 0x1e9   :  { %v2532_v11 = vpop.eup %2531  ;;  %v276_v13 = vmul.f32 %v1929_v2, %v265_v7  ;;  %3996 = vst [vmem:[#allocation12_spill] sm:$0xff] %v2938_v4  ;;  %v457_v7 = vld [vmem:[%s3918_s6 + $0x18] sm:$0x7]  ;;  %v2991_v32 = vrot.slane %v456_v6, %v630_v59 }
 0x1ea   :  { %v2534_v14 = vpop.eup %2533  ;;  %v288_v16 = vadd.f32 %v1930_v9, %v277_v10  ;;  %v268_v17 = vmul.f32 %v2532_v11, %v171_v41  ;;  %v772_v41 = vsub.s32 5, %v2880_v39  ;;  %v2993_v33 = vrot.slane %v457_v7, %v630_v59 }
 0x1eb   :  { %v287_v19 = vadd.f32 %v1930_v9, %v276_v13  ;;  %v267_v20 = vmul.f32 %v2534_v14, %v170_v43  ;;  %2200 = vmatpush3.bf16.msra.mxu1 %v2485_v36  ;;  %v309_v43 = vld [vmem:[%s3917_s5] sm:$0x3]  ;;  %v2955_v13 = vrot.slane %v454_v44, %v2883_v40  ;;  %v2958_v14 = vrot.slane %v454_v44, %v2887_v42 }
 0x1ec   :  { %v279_v22 = vmul.f32 %v1929_v2, %v268_v17  ;;  %2201 = vmatprep.subr.bf16.mxu1 %v2584_v29  ;;  %v2906_v51 = vrot.slane %v309_v43, %v2883_v40  ;;  %v2908_v52 = vrot.slane %v454_v44, %v772_v41  ;;  %v2911_v53 = vrot.slane %v309_v43, %v2887_v42 }
 0x1ed   :  { %v291_v23 = vpack.c.bf16 %v288_v16, %v287_v19  ;;  %v278_v25 = vmul.f32 %v1929_v2, %v267_v20  ;;  %v2913_v54 = vrot.slane %v455_v45, %v772_v41  ;;  %v2936_v2 = vrot.slane %v455_v45, %v831_v48  ;;  %4002 = vst [vmem:[#allocation18_spill] sm:$0xff] %v2991_v32 }
 0x1ee   :  { %v290_v26 = vadd.f32 %v1930_v9, %v279_v22  ;;  %v2961_v16 = vrot.slane %v455_v45, %v2887_v42  ;;  %v2968_v20 = vrot.slane %v454_v44, %v630_v59  ;;  %v2970_v22 = vrot.slane %v455_v45, %v630_v59  ;;  %4003 = vst [vmem:[#allocation19_spill] sm:$0xff] %v2993_v33 }
 0x1ef   :  { %434 = vmatmul.mubr.bf16.vlgmr.msra.gmra.mrb[4].mxu0 %v291_v23  ;;  %v289_v27 = vadd.f32 %v1930_v9, %v278_v25  ;;  %2202 = vmatpush3.bf16.msra.mxu1 %v2486_v37  ;;  %v2947_v9 = vrot.slane %v461_v49, %v2883_v40  ;;  %v2972_v23 = vrot.slane %v454_v44, %v890_v50 }
 0x1f0   :  { %443 = vmatprep.mubr.bf16.mxu0 %v3934_v56  ;;  %2388 = vmatprep.subr.bf16.mxu1 %v2696_v3  ;;  %v2985_v29 = vrot.slane %v457_v7, %v2887_v42 }
 0x1f1   :  { %v292_v28 = vpack.c.bf16 %v290_v26, %v289_v27  ;;  %3997 = vst [vmem:[#allocation13_spill] sm:$0xff] %v2972_v23  ;;  %v2976_v26 = vrot.slane %v456_v6, %v2883_v40  ;;  %v2979_v27 = vrot.slane %v457_v7, %v2883_v40 }
 0x1f2   :  { %4001 = vst [vmem:[#allocation17_spill] sm:$0xff] %v2985_v29 }
 0x1f3   :  { %3998 = vst [vmem:[#allocation14_spill] sm:$0xff] %v2976_v26  ;;  %3999 = vst [vmem:[#allocation15_spill] sm:$0xff] %v2979_v27 }
 0x1f7   :  { %444 = vmatmul.mubr.bf16.gmra.mrb[8].mxu0 %v292_v28  ;;  %v2982_v28 = vrot.slane %v456_v6, %v2887_v42 }
 0x1f9   :  { %4000 = vst [vmem:[#allocation16_spill] sm:$0xff] %v2982_v28 }
 0x2c2   :  { %v435_v0 = vpop.f32.mrb[4].mxu0 }
 0x2c3   :  { %v2950_v10 = vadd.f32 %v435_v0, %v2906_v51  ;;  %v437_v11 = vpop.f32.mrb[5].mxu0 }
 0x2c4   :  { %v2964_v17 = vadd.f32 %v437_v11, %v2911_v53  ;;  %v439_v19 = vpop.f32.mrb[6].mxu0 }
 0x2c5   :  { %v441_v25 = vpop.f32.mrb[7].mxu0  ;;  %v652_v35 = vrot.slane %v2950_v10, 6  ;;  %v711_v36 = vrot.slane %v2950_v10, 7  ;;  %v3000_v37 = vmul.f32 %v2908_v52, %v2950_v10  ;;  %v794_v38 = vrot.slane %v2950_v10, 1 }
 0x2c6   :  { %v853_v41 = vrot.slane %v2950_v10, 2  ;;  %v476_v43 = vrot.slane %v2964_v17, 3  ;;  %v653_v46 = vrot.slane %v2964_v17, 6  ;;  %v3010_v47 = vadd.f32 %v439_v19, %v2906_v51 }
 0x2c7   :  { %v3013_v48 = vadd.f32 %v441_v25, %v2911_v53  ;;  %v712_v49 = vrot.slane %v2964_v17, 7  ;;  %v3018_v50 = vmul.f32 %v2913_v54, %v2964_v17  ;;  %v795_v59 = vrot.slane %v2964_v17, 1 }
 0x2c8   :  { %v854_v0 = vrot.slane %v2964_v17, 2  ;;  %v656_v25 = vrot.slane %v3010_v47, 6  ;;  %v715_v45 = vrot.slane %v3010_v47, 7  ;;  %v3031_v34 = vmul.f32 %v2908_v52, %v3010_v47 }
 0x2c9   :  { %v798_v44 = vrot.slane %v3010_v47, 1  ;;  %v857_v31 = vrot.slane %v3010_v47, 2  ;;  %v480_v11 = vrot.slane %v3013_v48, 3  ;;  %v716_v12 = vrot.slane %v3013_v48, 7 }
 0x2ca   :  { %v3022_v6 = vpop.f32.mrb[8].mxu0  ;;  %v661_v7 = vsel %vm660_vm1, %v652_v35, %v656_v25  ;;  %v665_v19 = vsel %vm660_vm1, %v656_v25, %v652_v35  ;;  %v720_v18 = vsel %vm719_vm3, %v711_v36, %v715_v45  ;;  %v724_v15 = vsel %vm719_vm3, %v715_v45, %v711_v36 }
 0x2cb   :  { %v447_v56 = vpop.f32.mrb[9].mxu0  ;;  %v679_v24 = vsel %vm669_vm2, %v665_v19, 0.0  ;;  %v3044_v21 = vmul.f32 %v2918_v57, %v661_v7  ;;  %v738_v25 = vsel %vm728_vm4, %v724_v15, 0.0  ;;  %v3057_v42 = vmul.f32 %v2920_v58, %v720_v18 }
 0x2cc   :  { %v449_v30 = vpop.f32.mrb[10].mxu0  ;;  %v3052_v35 = vmul.f32 %v2918_v57, %v679_v24  ;;  %v803_v7 = vsel %vm802_vm5, %v794_v38, %v798_v44  ;;  %v3062_v19 = vmul.f32 %v2920_v58, %v738_v25  ;;  %v807_v36 = vsel %vm802_vm5, %v798_v44, %v794_v38 }
 0x2cd   :  { %v451_v40 = vpop.f32.mrb[11].mxu0  ;;  %v3067_v45 = vmul.f32 %v2923_v60, %v803_v7  ;;  %v3071_v24 = vsel %vm861_vm6, %v853_v41, %v857_v31  ;;  %v3075_v15 = vsel %vm814_vm7, %v807_v36, 0.0  ;;  %v3079_v18 = vsel %vm861_vm6, %v857_v31, %v853_v41 }
 0x2ce   :  { %4005 = vst [vmem:[#allocation21_spill] sm:$0xff] %v3071_v24  ;;  %4006 = vst [vmem:[#allocation22_spill] sm:$0xff] %v3075_v15  ;;  %v3083_v25 = vsel %vm483_vm8, %v476_v43, %v480_v11  ;;  %v3087_v38 = vsel %vm483_vm8, %v480_v11, %v476_v43  ;;  %v657_v31 = vrot.slane %v3013_v48, 6  ;;  %v3100_v8 = vmul.f32 %v2913_v54, %v3013_v48 }
 0x2cf   :  { %4004 = vst [vmem:[#allocation20_spill] sm:$0xff] %v3067_v45  ;;  %4007 = vst [vmem:[#allocation23_spill] sm:$0xff] %v3079_v18  ;;  %v503_v44 = vsel %vm492_vm9, %v3087_v38, 0.0  ;;  %v521_v7 = vmul.f32 %v2929_v62, %v3083_v25  ;;  %v799_v43 = vrot.slane %v3013_v48, 1  ;;  %v858_v3 = vrot.slane %v3013_v48, 2 }
 0x2d0   :  { %4008 = vst [vmem:[#allocation24_spill] sm:$0xff] %v3083_v25  ;;  %4009 = vst [vmem:[#allocation25_spill] sm:$0xff] %v3087_v38  ;;  %v519_v41 = vmul.f32 %v2929_v62, %v503_v44  ;;  %v662_v5 = vsel %vm660_vm1, %v653_v46, %v657_v31  ;;  %v666_v36 = vsel %vm660_vm1, %v657_v31, %v653_v46 }
 0x2d1   :  { %v3104_v11 = vadd.f32 %v521_v7, %v2926_v61  ;;  %v680_v33 = vsel %vm669_vm2, %v666_v36, 0.0  ;;  %v3117_v32 = vmul.f32 %v2931_v63, %v662_v5  ;;  %v721_v7 = vsel %vm719_vm3, %v712_v49, %v716_v12 }
 0x2d2   :  { %v3112_v44 = vadd.f32 %v519_v41, %v2926_v61  ;;  %v3122_v29 = vmul.f32 %v2931_v63, %v680_v33  ;;  %v725_v46 = vsel %vm719_vm3, %v716_v12, %v712_v49  ;;  %v3127_v31 = vmul.f32 %v2934_v1, %v721_v7 }
 0x2d3   :  { %v804_v41 = vsel %vm802_vm5, %v795_v59, %v799_v43  ;;  %v739_v36 = vsel %vm728_vm4, %v725_v46, 0.0  ;;  %v808_v5 = vsel %vm802_vm5, %v799_v43, %v795_v59  ;;  %v863_v33 = vsel %vm861_vm6, %v854_v0, %v858_v3 }
 0x2d4   :  { %v3136_v28 = vmul.f32 %v2936_v2, %v804_v41  ;;  %v3141_v12 = vmul.f32 %v2934_v1, %v739_v36  ;;  %v824_v49 = vsel %vm814_vm7, %v808_v5, 0.0  ;;  %v867_v7 = vsel %vm861_vm6, %v858_v3, %v854_v0 }
 0x2d5   :  { %v3148_v46 = vmul.f32 %v2938_v4, %v863_v33  ;;  %v3151_v59 = vmul.f32 %v2936_v2, %v824_v49  ;;  %v3155_v43 = vsel %vm873_vm10, %v867_v7, 0.0  ;;  %v3159_v41 = vadd.f32 %v3022_v6, %v2906_v51 }
 0x2d6   :  { %4010 = vst [vmem:[#allocation26_spill] sm:$0xff] %v3136_v28  ;;  %4013 = vst [vmem:[#allocation29_spill] sm:$0xff] %v3155_v43  ;;  %v3162_v36 = vadd.f32 %v447_v56, %v2911_v53  ;;  %v3165_v5 = vadd.f32 %v449_v30, %v2906_v51  ;;  %v3168_v3 = vadd.f32 %v451_v40, %v2911_v53  ;;  %v4014_v0 = vrot.slane %v3010_v47, 3 }
 0x2d7   :  { %4011 = vst [vmem:[#allocation27_spill] sm:$0xff] %v3148_v46  ;;  %4012 = vst [vmem:[#allocation28_spill] sm:$0xff] %v3151_v59  ;;  %v4015_v33 = vrot.slane %v2950_v10, 3  ;;  %v654_v30 = vrot.slane %v3159_v41, 6  ;;  %v713_v27 = vrot.slane %v3159_v41, 7  ;;  %v855_v25 = vrot.slane %v3159_v41, 2 }
 0x2d8   :  { %v4018_v7 = vmov %v4014_v0  ;;  %v655_v53 = vrot.slane %v3162_v36, 6  ;;  %v714_v51 = vrot.slane %v3162_v36, 7  ;;  %v3204_v26 = vmul.f32 %v2913_v54, %v3162_v36 }
 0x2d9   :  { %v3176_v49 = vsel %vm483_vm8, %v4015_v33, %v4014_v0  ;;  %v4017_v6 = vmov %v4015_v33  ;;  %v3193_v0 = vmul.f32 %v2908_v52, %v3159_v41  ;;  %v796_v33 = vrot.slane %v3159_v41, 1 }
 0x2da   :  { %4016 = vst [vmem:[#allocation30_spill] sm:$0xff] %v3176_v49  ;;  %v3184_v56 = vsel %vm483_vm8, %v4018_v7, %v4017_v6  ;;  %v478_v6 = vrot.slane %v3162_v36, 3  ;;  %4021 = vst [vmem:[#allocation33_spill] sm:$0xff] %v3204_v26  ;;  %v797_v38 = vrot.slane %v3162_v36, 1  ;;  %v856_v46 = vrot.slane %v3162_v36, 2 }
 0x2db   :  { %4019 = vst [vmem:[#allocation31_spill] sm:$0xff] %v3184_v56  ;;  %4020 = vst [vmem:[#allocation32_spill] sm:$0xff] %v3193_v0  ;;  %v658_v40 = vrot.slane %v3165_v5, 6  ;;  %v717_v24 = vrot.slane %v3165_v5, 7  ;;  %v3215_v18 = vmul.f32 %v2908_v52, %v3165_v5  ;;  %v800_v59 = vrot.slane %v3165_v5, 1 }
 0x2dc   :  { %v859_v28 = vrot.slane %v3165_v5, 2  ;;  %v482_v7 = vrot.slane %v3168_v3, 3 }
 0x2dd   :  { %4022 = vst [vmem:[#allocation34_spill] sm:$0xff] %v3215_v18  ;;  %v663_v45 = vsel %vm660_vm1, %v654_v30, %v658_v40  ;;  %v667_v23 = vsel %vm660_vm1, %v658_v40, %v654_v30  ;;  %v722_v18 = vsel %vm719_vm3, %v713_v27, %v717_v24  ;;  %v726_v26 = vsel %vm719_vm3, %v717_v24, %v713_v27 }
 0x2de   :  { %v683_v15 = vsel %vm669_vm2, %v667_v23, 0.0  ;;  %v3228_v52 = vmul.f32 %v2918_v57, %v663_v45  ;;  %v742_v40 = vsel %vm728_vm4, %v726_v26, 0.0  ;;  %v3240_v30 = vmul.f32 %v2920_v58, %v722_v18 }
 0x2df   :  { %v3235_v0 = vmul.f32 %v2918_v57, %v683_v15  ;;  %v805_v23 = vsel %vm802_vm5, %v796_v33, %v800_v59  ;;  %v3245_v45 = vmul.f32 %v2920_v58, %v742_v40  ;;  %v809_v43 = vsel %vm802_vm5, %v800_v59, %v796_v33 }
 0x2e0   :  { %v3250_v27 = vmul.f32 %v2923_v60, %v805_v23  ;;  %v3254_v57 = vsel %vm861_vm6, %v855_v25, %v859_v28  ;;  %v3259_v26 = vsel %vm814_vm7, %v809_v43, 0.0  ;;  %v3263_v58 = vsel %vm861_vm6, %v859_v28, %v855_v25 }
 0x2e1   :  { %4024 = vst [vmem:[#allocation36_spill] sm:$0xff] %v3254_v57  ;;  %4025 = vst [vmem:[#allocation37_spill] sm:$0xff] %v3259_v26  ;;  %v3267_v24 = vsel %vm483_vm8, %v478_v6, %v482_v7  ;;  %v3271_v15 = vsel %vm483_vm8, %v482_v7, %v478_v6  ;;  %v659_v28 = vrot.slane %v3168_v3, 6  ;;  %v718_v33 = vrot.slane %v3168_v3, 7 }
 0x2e2   :  { %4023 = vst [vmem:[#allocation35_spill] sm:$0xff] %v3250_v27  ;;  %4026 = vst [vmem:[#allocation38_spill] sm:$0xff] %v3263_v58  ;;  %v507_v18 = vsel %vm492_vm9, %v3271_v15, 0.0  ;;  %v525_v59 = vmul.f32 %v2929_v62, %v3267_v24  ;;  %v3284_v40 = vmul.f32 %v2913_v54, %v3168_v3  ;;  %v801_v6 = vrot.slane %v3168_v3, 1 }
 0x2e3   :  { %4027 = vst [vmem:[#allocation39_spill] sm:$0xff] %v3267_v24  ;;  %4028 = vst [vmem:[#allocation40_spill] sm:$0xff] %v3271_v15  ;;  %v523_v25 = vmul.f32 %v2929_v62, %v507_v18  ;;  %v664_v23 = vsel %vm660_vm1, %v655_v53, %v659_v28  ;;  %v668_v43 = vsel %vm660_vm1, %v659_v28, %v655_v53  ;;  %v860_v62 = vrot.slane %v3168_v3, 2 }
 0x2e4   :  { %v3289_v7 = vadd.f32 %v525_v59, %v2926_v61  ;;  %v684_v54 = vsel %vm669_vm2, %v668_v43, 0.0  ;;  %v3300_v24 = vmul.f32 %v2931_v63, %v664_v23  ;;  %v723_v59 = vsel %vm719_vm3, %v714_v51, %v718_v33 }
 0x2e5   :  { %v531_v18 = vadd.f32 %v523_v25, %v2926_v61  ;;  %v3305_v15 = vmul.f32 %v2931_v63, %v684_v54  ;;  %v727_v57 = vsel %vm719_vm3, %v718_v33, %v714_v51  ;;  %v3310_v53 = vmul.f32 %v2934_v1, %v723_v59 }
 0x2e6   :  { %v806_v61 = vsel %vm802_vm5, %v797_v38, %v801_v6  ;;  %v743_v43 = vsel %vm728_vm4, %v727_v57, 0.0  ;;  %v810_v28 = vsel %vm802_vm5, %v801_v6, %v797_v38  ;;  %v865_v63 = vsel %vm861_vm6, %v856_v46, %v860_v62 }
 0x2e7   :  { %v3319_v25 = vmul.f32 %v2936_v2, %v806_v61  ;;  %v3324_v51 = vmul.f32 %v2934_v1, %v743_v43  ;;  %v828_v33 = vsel %vm814_vm7, %v810_v28, 0.0  ;;  %v869_v23 = vsel %vm861_vm6, %v860_v62, %v856_v46 }
 0x2e8   :  { %v3331_v57 = vmul.f32 %v2938_v4, %v865_v63  ;;  %v3335_v38 = vmul.f32 %v2936_v2, %v828_v33  ;;  %v3339_v6 = vsel %vm873_vm10, %v869_v23, 0.0  ;;  %v4033_v1 = vrot.slane %v3165_v5, 3 }
 0x2e9   :  { %4029 = vst [vmem:[#allocation41_spill] sm:$0xff] %v3319_v25  ;;  %4032 = vst [vmem:[#allocation44_spill] sm:$0xff] %v3339_v6  ;;  %v4034_v54 = vrot.slane %v3159_v41, 3  ;;  %v502_v61 = vsel %vm492_vm9, %v3184_v56, 0.0  ;;  %v520_v28 = vmul.f32 %v2955_v13, %v3176_v49  ;;  %v4043_v49 = vrot.slane %v2964_v17, 4 }
 0x2ea   :  { %4030 = vst [vmem:[#allocation42_spill] sm:$0xff] %v3331_v57  ;;  %4031 = vst [vmem:[#allocation43_spill] sm:$0xff] %v3335_v38  ;;  %v4037_v62 = vmov %v4033_v1  ;;  %v518_v33 = vmul.f32 %v2955_v13, %v502_v61  ;;  %v4048_v56 = vrot.slane %v3162_v36, 4  ;;  %v4050_v57 = vrot.slane %v3010_v47, 4 }
 0x2eb   :  { %v3347_v59 = vsel %vm483_vm8, %v4034_v54, %v4033_v1  ;;  %v4036_v46 = vmov %v4034_v54  ;;  %v4039_v1 = vrot.slane %v3010_v47, 4  ;;  %v4040_v54 = vrot.slane %v2950_v10, 4 }
 0x2ec   :  { %4035 = vst [vmem:[#allocation45_spill] sm:$0xff] %v3347_v59  ;;  %v3355_v2 = vsel %vm483_vm8, %v4037_v62, %v4036_v46  ;;  %v524_v63 = vmul.f32 %v2955_v13, %v3347_v59  ;;  %v4042_v62 = vrot.slane %v3013_v48, 4  ;;  %v528_v61 = vadd.f32 %v520_v28, %v2947_v9 }
 0x2ed   :  { %4038 = vst [vmem:[#allocation46_spill] sm:$0xff] %v3355_v2  ;;  %v506_v43 = vsel %vm492_vm9, %v3355_v2, 0.0  ;;  %v3376_v46 = vsel %vm542_vm11, %v4040_v54, %v4039_v1  ;;  %v4046_v2 = vrot.slane %v3159_v41, 4  ;;  %v4047_v54 = vrot.slane %v3168_v3, 4 }
 0x2ee   :  { %v522_v23 = vmul.f32 %v2955_v13, %v506_v43  ;;  %4041 = vst [vmem:[#allocation47_spill] sm:$0xff] %v3376_v46  ;;  %v3384_v59 = vsel %vm542_vm11, %v4043_v49, %v4042_v62  ;;  %v532_v13 = vadd.f32 %v524_v63, %v2947_v9  ;;  %v4045_v43 = vrot.slane %v3165_v5, 4 }
 0x2ef   :  { %4044 = vst [vmem:[#allocation48_spill] sm:$0xff] %v3384_v59  ;;  %v3402_v49 = vsel %vm542_vm11, %v4048_v56, %v4047_v54  ;;  %v526_v28 = vadd.f32 %v518_v33, %v2947_v9  ;;  %v4049_v62 = vrot.slane %v2950_v10, 4  ;;  %v4053_v6 = vrot.slane %v3013_v48, 4 }
 0x2f0   :  { %v3394_v1 = vsel %vm542_vm11, %v4046_v2, %v4045_v43  ;;  %v530_v63 = vadd.f32 %v522_v23, %v2947_v9  ;;  %v4052_v43 = vrot.slane %v2964_v17, 4  ;;  %v4055_v33 = vrot.slane %v3159_v41, 4 }
 0x2f1   :  { %v3412_v2 = vsel %vm542_vm11, %v4050_v57, %v4049_v62  ;;  %v4056_v9 = vrot.slane %v3165_v5, 4  ;;  %v4058_v54 = vrot.slane %v3162_v36, 4  ;;  %v4059_v57 = vrot.slane %v3168_v3, 4 }
 0x2f2   :  { %4051 = vst [vmem:[#allocation49_spill] sm:$0xff] %v3412_v2  ;;  %v3420_v56 = vsel %vm542_vm11, %v4053_v6, %v4052_v43  ;;  %v561_v6 = vsel %vm551_vm12, %v3412_v2, 0.0  ;;  %v580_v2 = vmul.f32 %v2961_v16, %v3384_v59  ;;  %vm999_vm1 = vcmp.lt.s32.totalorder %v2916_v55, 11 }
 0x2f3   :  { %4054 = vst [vmem:[#allocation50_spill] sm:$0xff] %v3420_v56  ;;  %v3428_v23 = vsel %vm542_vm11, %v4056_v9, %v4055_v33  ;;  %v3436_v62 = vsel %vm542_vm11, %v4059_v57, %v4058_v54  ;;  %v562_v43 = vsel %vm551_vm12, %v3420_v56, 0.0  ;;  %v577_v4 = vmul.f32 %v2958_v14, %v561_v6 }
 0x2f4   :  { %4057 = vst [vmem:[#allocation51_spill] sm:$0xff] %v3428_v23  ;;  %4060 = vst [vmem:[#allocation52_spill] sm:$0xff] %v3436_v62  ;;  %v565_v33 = vsel %vm551_vm12, %v3428_v23, 0.0  ;;  %v566_v9 = vsel %vm551_vm12, %v3436_v62, 0.0  ;;  %v578_v54 = vmul.f32 %v2961_v16, %v562_v43  ;;  %v579_v57 = vmul.f32 %v2958_v14, %v3376_v46 }
 0x2f5   :  { %v581_v56 = vmul.f32 %v2958_v14, %v565_v33  ;;  %v582_v58 = vmul.f32 %v2961_v16, %v566_v9  ;;  %v583_v23 = vmul.f32 %v2958_v14, %v3394_v1  ;;  %v584_v62 = vmul.f32 %v2961_v16, %v3402_v49 }
 0x2f6   :  { %v585_v38 = vadd.f32 %v577_v4, %v526_v28  ;;  %v586_v6 = vadd.f32 %v578_v54, %v3112_v44  ;;  %v587_v43 = vadd.f32 %v579_v57, %v528_v61  ;;  %v588_v25 = vadd.f32 %v580_v2, %v3104_v11 }
 0x2f7   :  { %v589_v46 = vadd.f32 %v581_v56, %v530_v63  ;;  %v590_v27 = vadd.f32 %v582_v58, %v531_v18  ;;  %v591_v26 = vadd.f32 %v583_v23, %v532_v13  ;;  %v592_v59 = vadd.f32 %v584_v62, %v3289_v7 }
 0x2f8   :  { %v4061_v33 = vrot.slane %v3010_v47, 5  ;;  %v4062_v9 = vrot.slane %v2950_v10, 5  ;;  %v4063_v4 = vrot.slane %v3013_v48, 5  ;;  %v4064_v16 = vrot.slane %v2964_v17, 5 }
 0x2f9   :  { %v4065_v44 = vrot.slane %v3165_v5, 5  ;;  %v4066_v58 = vrot.slane %v3159_v41, 5  ;;  %v4067_v18 = vrot.slane %v3168_v3, 5  ;;  %v4068_v61 = vrot.slane %v3162_v36, 5 }
 0x2fa   :  { %v3471_v14 = vsel %vm601_vm13, %v4062_v9, %v4061_v33  ;;  %v3479_v11 = vsel %vm601_vm13, %v4064_v16, %v4063_v4  ;;  %v4069_v28 = vmov %v4062_v9  ;;  %v4070_v63 = vmov %v4061_v33 }
 0x2fb   :  { %v3487_v7 = vsel %vm601_vm13, %v4066_v58, %v4065_v44  ;;  %v3495_v13 = vsel %vm601_vm13, %v4068_v61, %v4067_v18  ;;  %v3503_v2 = vsel %vm601_vm13, %v4070_v63, %v4069_v28  ;;  %v4071_v56 = vmov %v4064_v16 }
 0x2fc   :  { %v4072_v23 = vmov %v4063_v4  ;;  %v4073_v54 = vmov %v4066_v58  ;;  %v4074_v57 = vmov %v4065_v44  ;;  %v4075_v47 = vmov %v4068_v61 }
 0x2fd   :  { %v3511_v62 = vsel %vm601_vm13, %v4072_v23, %v4071_v56  ;;  %v3519_v10 = vsel %vm601_vm13, %v4074_v57, %v4073_v54  ;;  %v4076_v33 = vmov %v4067_v18  ;;  %v620_v48 = vsel %vm610_vm14, %v3503_v2, 0.0 }
 0x2fe   :  { %v3527_v17 = vsel %vm601_vm13, %v4076_v33, %v4075_v47  ;;  %v621_v41 = vsel %vm610_vm14, %v3511_v62, 0.0  ;;  %v624_v5 = vsel %vm610_vm14, %v3519_v10, 0.0  ;;  %v636_v3 = vmul.f32 %v2968_v20, %v620_v48 }
 0x2ff   :  { %v625_v36 = vsel %vm610_vm14, %v3527_v17, 0.0  ;;  %v637_v9 = vmul.f32 %v2970_v22, %v621_v41  ;;  %v638_v4 = vmul.f32 %v2968_v20, %v3471_v14  ;;  %v639_v16 = vmul.f32 %v2970_v22, %v3479_v11 }
 0x300   :  { %v640_v44 = vmul.f32 %v2968_v20, %v624_v5  ;;  %v641_v58 = vmul.f32 %v2970_v22, %v625_v36  ;;  %v642_v18 = vmul.f32 %v2968_v20, %v3487_v7  ;;  %v643_v61 = vmul.f32 %v2970_v22, %v3495_v13 }
 0x301   :  { %v644_v28 = vadd.f32 %v636_v3, %v585_v38  ;;  %v645_v63 = vadd.f32 %v637_v9, %v586_v6  ;;  %v646_v56 = vadd.f32 %v638_v4, %v587_v43  ;;  %v647_v23 = vadd.f32 %v639_v16, %v588_v25  ;;  %v4079_v6 = vld [vmem:[#allocation34_spill] sm:$0xff]  ;;  %v4082_v3 = vld [vmem:[#allocation20_spill] sm:$0xff]  ;;  %v4085_v16 = vld [vmem:[#allocation35_spill] sm:$0xff] }
 0x302   :  { %v648_v54 = vadd.f32 %v640_v44, %v589_v46  ;;  %v649_v57 = vadd.f32 %v641_v58, %v590_v27  ;;  %v650_v47 = vadd.f32 %v642_v18, %v591_v26  ;;  %v651_v33 = vadd.f32 %v643_v61, %v592_v59  ;;  %v4077_v59 = vld [vmem:[#allocation32_spill] sm:$0xff]  ;;  %v4078_v46 = vld [vmem:[#allocation33_spill] sm:$0xff]  ;;  %v4080_v43 = vld [vmem:[#allocation22_spill] sm:$0xff] }
 0x303   :  { %v703_v48 = vadd.f32 %v3052_v35, %v644_v28  ;;  %v704_v41 = vadd.f32 %v3122_v29, %v645_v63  ;;  %v705_v5 = vadd.f32 %v3044_v21, %v646_v56  ;;  %v706_v36 = vadd.f32 %v3117_v32, %v647_v23  ;;  %v4083_v9 = vld [vmem:[#allocation26_spill] sm:$0xff]  ;;  %v4084_v4 = vld [vmem:[#allocation28_spill] sm:$0xff]  ;;  %v4086_v18 = vld [vmem:[#allocation41_spill] sm:$0xff] }
 0x304   :  { %v707_v20 = vadd.f32 %v3235_v0, %v648_v54  ;;  %v708_v22 = vadd.f32 %v3305_v15, %v649_v57  ;;  %v709_v38 = vadd.f32 %v3228_v52, %v650_v47  ;;  %v710_v25 = vadd.f32 %v3300_v24, %v651_v33  ;;  %v4087_v28 = vld [vmem:[#allocation43_spill] sm:$0xff]  ;;  %v4089_v23 = vld [vmem:[#allocation38_spill] sm:$0xff]  ;;  %v4090_v57 = vld [vmem:[#allocation21_spill] sm:$0xff] }
 0x305   :  { %v762_v27 = vadd.f32 %v3062_v19, %v703_v48  ;;  %v763_v26 = vadd.f32 %v3141_v12, %v704_v41  ;;  %v764_v29 = vadd.f32 %v3057_v42, %v705_v5  ;;  %v765_v21 = vadd.f32 %v3127_v31, %v706_v36  ;;  %v4088_v56 = vld [vmem:[#allocation23_spill] sm:$0xff]  ;;  %v4091_v47 = vld [vmem:[#allocation13_spill] sm:$0xff]  ;;  %v4093_v41 = vld [vmem:[#allocation12_spill] sm:$0xff] }
 0x306   :  { %v766_v32 = vadd.f32 %v3245_v45, %v707_v20  ;;  %v767_v35 = vadd.f32 %v3324_v51, %v708_v22  ;;  %v768_v0 = vadd.f32 %v3240_v30, %v709_v38  ;;  %v769_v52 = vadd.f32 %v3310_v53, %v710_v25  ;;  %v4081_v53 = vld [vmem:[#allocation37_spill] sm:$0xff]  ;;  %v4094_v20 = vld [vmem:[#allocation36_spill] sm:$0xff] }
 0x307   :  { %v786_v24 = vadd.f32 %v3000_v37, %v762_v27  ;;  %v787_v19 = vadd.f32 %v3018_v50, %v763_v26  ;;  %v788_v12 = vadd.f32 %v3031_v34, %v764_v29  ;;  %v789_v15 = vadd.f32 %v3100_v8, %v765_v21  ;;  %v4092_v48 = vld [vmem:[#allocation29_spill] sm:$0xff]  ;;  %v4095_v25 = vld [vmem:[#allocation44_spill] sm:$0xff]  ;;  %v4096_v29 = vld [vmem:[#allocation27_spill] sm:$0xff] }
 0x308   :  { %v790_v42 = vadd.f32 %v4077_v59, %v766_v32  ;;  %v791_v31 = vadd.f32 %v4078_v46, %v767_v35  ;;  %v792_v45 = vadd.f32 %v4079_v6, %v768_v0  ;;  %v793_v51 = vadd.f32 %v3284_v40, %v769_v52  ;;  %v4097_v35 = vld [vmem:[#allocation42_spill] sm:$0xff] }
 0x309   :  { %v839_v30 = vmul.f32 %v2923_v60, %v4080_v43  ;;  %v843_v37 = vmul.f32 %v2923_v60, %v4081_v53  ;;  %v845_v50 = vadd.f32 %v4082_v3, %v786_v24  ;;  %v846_v34 = vadd.f32 %v4083_v9, %v787_v19  ;;  %v4102_v43 = vld [vmem:[#allocation30_spill] sm:$0xff]  ;;  %v4105_v3 = vld [vmem:[#allocation15_spill] sm:$0xff] }
 0x30a   :  { %v848_v8 = vadd.f32 %v4084_v4, %v789_v15  ;;  %v849_v44 = vadd.f32 %v4085_v16, %v790_v42  ;;  %v850_v61 = vadd.f32 %v4086_v18, %v791_v31  ;;  %v852_v63 = vadd.f32 %v4087_v28, %v793_v51  ;;  %v4098_v15 = vld [vmem:[#allocation31_spill] sm:$0xff]  ;;  %v4099_v42 = vld [vmem:[#allocation25_spill] sm:$0xff]  ;;  %v4100_v31 = vld [vmem:[#allocation46_spill] sm:$0xff] }
 0x30b   :  { %v847_v58 = vadd.f32 %v839_v30, %v788_v12  ;;  %v851_v40 = vadd.f32 %v843_v37, %v792_v45  ;;  %v882_v60 = vsel %vm873_vm10, %v4088_v56, 0.0  ;;  %v886_v54 = vsel %vm873_vm10, %v4089_v23, 0.0  ;;  %v4101_v45 = vld [vmem:[#allocation40_spill] sm:$0xff]  ;;  %v4103_v30 = vld [vmem:[#allocation14_spill] sm:$0xff]  ;;  %v4106_v4 = vld [vmem:[#allocation45_spill] sm:$0xff] }
 0x30c   :  { %v896_v33 = vmul.f32 %v4091_v47, %v4090_v57  ;;  %v899_v5 = vmul.f32 %v4093_v41, %v4092_v48  ;;  %v898_v36 = vmul.f32 %v4091_v47, %v882_v60  ;;  %v900_v22 = vmul.f32 %v4091_v47, %v4094_v20  ;;  %v4104_v37 = vld [vmem:[#allocation24_spill] sm:$0xff]  ;;  %v4107_v16 = vld [vmem:[#allocation39_spill] sm:$0xff]  ;;  %v4108_v57 = vld [vmem:[#allocation49_spill] sm:$0xff] }
 0x30d   :  { %v902_v38 = vmul.f32 %v4091_v47, %v886_v54  ;;  %v903_v27 = vmul.f32 %v4093_v41, %v4095_v25  ;;  %v905_v21 = vadd.f32 %v4096_v29, %v846_v34  ;;  %v909_v0 = vadd.f32 %v4097_v35, %v850_v61  ;;  %v4110_v41 = vld [vmem:[#allocation51_spill] sm:$0xff] }
 0x30e   :  { %v904_v26 = vadd.f32 %v896_v33, %v845_v50  ;;  %v907_v32 = vadd.f32 %v899_v5, %v848_v8  ;;  %v906_v52 = vadd.f32 %v898_v36, %v847_v58  ;;  %v908_v24 = vadd.f32 %v900_v22, %v849_v44  ;;  %v4109_v33 = vld [vmem:[#allocation50_spill] sm:$0xff]  ;;  %v4111_v36 = vld [vmem:[#allocation52_spill] sm:$0xff]  ;;  %v4112_v22 = vld [vmem:[#allocation47_spill] sm:$0xff] }
 0x30f   :  { %v910_v19 = vadd.f32 %v902_v38, %v851_v40  ;;  %v911_v12 = vadd.f32 %v903_v27, %v852_v63  ;;  %v924_v59 = vsel %vm915_vm15, %v4098_v15, 0.0  ;;  %v925_v46 = vsel %vm915_vm15, %v4099_v42, 0.0  ;;  %v4113_v38 = vld [vmem:[#allocation16_spill] sm:$0xff] }
 0x310   :  { %v928_v6 = vsel %vm915_vm15, %v4100_v31, 0.0  ;;  %v929_v51 = vsel %vm915_vm15, %v4101_v45, 0.0  ;;  %v938_v53 = vmul.f32 %v4103_v30, %v4102_v43  ;;  %v939_v50 = vmul.f32 %v4105_v3, %v4104_v37  ;;  %v4114_v27 = vld [vmem:[#allocation48_spill] sm:$0xff]  ;;  %v4116_v43 = vld [vmem:[#allocation18_spill] sm:$0xff] }
 0x311   :  { %v940_v9 = vmul.f32 %v4103_v30, %v924_v59  ;;  %v941_v34 = vmul.f32 %v4105_v3, %v925_v46  ;;  %v942_v8 = vmul.f32 %v4103_v30, %v4106_v4  ;;  %v943_v44 = vmul.f32 %v4105_v3, %v4107_v16 }
 0x312   :  { %v944_v58 = vmul.f32 %v4103_v30, %v928_v6  ;;  %v945_v18 = vmul.f32 %v4105_v3, %v929_v51  ;;  %v946_v61 = vadd.f32 %v938_v53, %v904_v26  ;;  %v947_v40 = vadd.f32 %v939_v50, %v905_v21  ;;  %v4115_v26 = vld [vmem:[#allocation17_spill] sm:$0xff]  ;;  %v4117_v53 = vld [vmem:[#allocation19_spill] sm:$0xff] }
 0x313   :  { %v948_v28 = vadd.f32 %v940_v9, %v906_v52  ;;  %v949_v63 = vadd.f32 %v941_v34, %v907_v32  ;;  %v950_v56 = vadd.f32 %v942_v8, %v908_v24  ;;  %v951_v60 = vadd.f32 %v943_v44, %v909_v0 }
 0x314   :  { %v952_v23 = vadd.f32 %v944_v58, %v910_v19  ;;  %v953_v54 = vadd.f32 %v945_v18, %v911_v12  ;;  %v966_v47 = vsel %vm957_vm0, %v4108_v57, 0.0  ;;  %v967_v48 = vsel %vm957_vm0, %v4109_v33, 0.0 }
 0x315   :  { %v970_v5 = vsel %vm957_vm0, %v4110_v41, 0.0  ;;  %v971_v20 = vsel %vm957_vm0, %v4111_v36, 0.0  ;;  %v980_v25 = vmul.f32 %v4113_v38, %v4112_v22  ;;  %v981_v29 = vmul.f32 %v4115_v26, %v4114_v27 }
 0x316   :  { %v982_v21 = vmul.f32 %v4113_v38, %v966_v47  ;;  %v983_v32 = vmul.f32 %v4115_v26, %v967_v48  ;;  %v984_v35 = vmul.f32 %v4113_v38, %v3394_v1  ;;  %v985_v0 = vmul.f32 %v4115_v26, %v3402_v49 }
 0x317   :  { %v986_v52 = vmul.f32 %v4113_v38, %v970_v5  ;;  %v987_v24 = vmul.f32 %v4115_v26, %v971_v20  ;;  %v988_v19 = vadd.f32 %v980_v25, %v946_v61  ;;  %v989_v12 = vadd.f32 %v981_v29, %v947_v40 }
 0x318   :  { %v990_v15 = vadd.f32 %v982_v21, %v948_v28  ;;  %v991_v59 = vadd.f32 %v983_v32, %v949_v63  ;;  %v992_v42 = vadd.f32 %v984_v35, %v950_v56  ;;  %v993_v46 = vadd.f32 %v985_v0, %v951_v60 }
 0x319   :  { %v994_v31 = vadd.f32 %v986_v52, %v952_v23  ;;  %v995_v6 = vadd.f32 %v987_v24, %v953_v54  ;;  %v1008_v45 = vsel %vm999_vm1, %v3503_v2, 0.0  ;;  %v1009_v1 = vsel %vm999_vm1, %v3511_v62, 0.0 }
 0x31a   :  { %v1012_v49 = vsel %vm999_vm1, %v3519_v10, 0.0  ;;  %v1013_v51 = vsel %vm999_vm1, %v3527_v17, 0.0  ;;  %v1022_v30 = vmul.f32 %v4116_v43, %v3471_v14  ;;  %v1023_v37 = vmul.f32 %v4117_v53, %v3479_v11 }
 0x31b   :  { %v1024_v2 = vmul.f32 %v4116_v43, %v1008_v45  ;;  %v1025_v3 = vmul.f32 %v4117_v53, %v1009_v1  ;;  %v1026_v62 = vmul.f32 %v4116_v43, %v3487_v7  ;;  %v1027_v10 = vmul.f32 %v4117_v53, %v3495_v13 }
 0x31c   :  { %v1028_v50 = vmul.f32 %v4116_v43, %v1012_v49  ;;  %v1029_v55 = vmul.f32 %v4117_v53, %v1013_v51  ;;  %v1030_v17 = vadd.f32 %v1022_v30, %v988_v19  ;;  %v1031_v9 = vadd.f32 %v1023_v37, %v989_v12  ;;  %v4118_v30 = vld [vmem:[#allocation2_spill] sm:$0xff]  ;;  %v4119_v53 = vld [vmem:[#allocation3_spill] sm:$0xff]  ;;  %v4120_v37 = vld [vmem:[#allocation4_spill] sm:$0xff] }
 0x31d   :  { %v1032_v14 = vadd.f32 %v1024_v2, %v990_v15  ;;  %v1033_v34 = vadd.f32 %v1025_v3, %v991_v59  ;;  %v1034_v4 = vadd.f32 %v1026_v62, %v992_v42  ;;  %v1035_v11 = vadd.f32 %v1027_v10, %v993_v46  ;;  %v4121_v2 = vld [vmem:[#allocation5_spill] sm:$0xff]  ;;  %v4122_v3 = vld [vmem:[#allocation6_spill] sm:$0xff]  ;;  %v4123_v62 = vld [vmem:[#allocation7_spill] sm:$0xff] }
 0x31e   :  { %v1036_v8 = vadd.f32 %v1028_v50, %v994_v31  ;;  %v1037_v16 = vadd.f32 %v1029_v55, %v995_v6  ;;  %v1947_v44 = vmul.f32 -1.442695, %v1031_v9  ;;  %vm1116_vm2 = vcmask 1041409   ;;  %v4124_v10 = vld [vmem:[#allocation8_spill] sm:$0xff]  ;;  %v4125_v50 = vld [vmem:[#allocation9_spill] sm:$0xff]  ;;  %v2487_v55 = vld [vmem:[%s3920_s10] sm:$0xff]  }
 0x31f   :  { %v1948_v58 = vmul.f32 -1.442695, %v1033_v34  ;;  %v1949_v18 = vmul.f32 -1.442695, %v1035_v11  ;;  %2207 = vmatprep.subr.bf16.mxu0 %v2487_v55 }
 0x320   :  { %v1950_v61 = vmul.f32 -1.442695, %v1037_v16  ;;  %2535 = vpow2.f32 %v1947_v44  ;;  %2208 = vmatpush3.bf16.msra.mxu0 %v2487_v55 }
 0x321   :  { %2537 = vpow2.f32 %v1948_v58 }
 0x322   :  { %2539 = vpow2.f32 %v1949_v18 }
 0x323   :  { %2541 = vpow2.f32 %v1950_v61 }
 0x32a   :  { %v2536_v7 = vpop.eup %2535 }
 0x32b   :  { %v2538_v13 = vpop.eup %2537  ;;  %v1050_v40 = vadd.f32 1.0, %v2536_v7 }
 0x32c   :  { %v2540_v28 = vpop.eup %2539  ;;  %v1051_v63 = vadd.f32 1.0, %v2538_v13 }
 0x32d   :  { %v2542_v56 = vpop.eup %2541  ;;  %v1052_v60 = vadd.f32 1.0, %v2540_v28  ;;  %2543 = vrcp.f32 %v1050_v40 }
 0x32e   :  { %v1053_v23 = vadd.f32 1.0, %v2542_v56  ;;  %2545 = vrcp.f32 %v1051_v63  ;;  %v2586_v63 = vmov 1966171168  }
 0x32f   :  { %2547 = vrcp.f32 %v1052_v60  ;;  %v1216_v56 = vunpack.c.l.s4 %v2586_v63 }
 0x330   :  { %2549 = vrcp.f32 %v1053_v23 }
 0x331   :  { %v1217_v60 = vunpack.c.0.s8 %v1216_v56 }
 0x333   :  { %v1220_v23 = vsub.s32 %v1217_v60, %v2880_v39 }
 0x337   :  { %v2544_v54 = vpop.eup %2543 }
 0x338   :  { %v2546_v57 = vpop.eup %2545  ;;  %v1062_v47 = vmul.f32 %v2544_v54, %v1031_v9  ;;  %v2489_v9 = vld [vmem:[%s3920_s10 + $0x10] sm:$0xff]  }
 0x339   :  { %v2548_v33 = vpop.eup %2547  ;;  %v1063_v48 = vmul.f32 %v2546_v57, %v1033_v34  ;;  %v2491_v34 = vld [vmem:[%s3920_s10 + $0x20] sm:$0xff]  }
 0x33a   :  { %v2550_v41 = vpop.eup %2549  ;;  %v1064_v5 = vmul.f32 %v2548_v33, %v1035_v11  ;;  %v3680_v36 = vmul.f32 %v1062_v47, %v1030_v17  ;;  %v2488_v17 = vld [vmem:[%s3920_s10 + $0x8] sm:$0xff]   ;;  %v2493_v11 = vld [vmem:[%s3920_s10 + $0x30] sm:$0xff]  }
 0x33b   :  { %v1065_v20 = vmul.f32 %v2550_v41, %v1037_v16  ;;  %v3682_v22 = vmul.f32 %v1063_v48, %v1032_v14  ;;  %2209 = vmatprep.subr.bf16.mxu0 %v2488_v17  ;;  %v2490_v14 = vld [vmem:[%s3920_s10 + $0x18] sm:$0xff]   ;;  %v1951_v16 = vld [vmem:[%s3921_s9] ss:$0 sm:$0xff] }
 0x33c   :  { %v3684_v38 = vmul.f32 %v1064_v5, %v1034_v4  ;;  %2210 = vmatpush3.bf16.msra.mxu0 %v2488_v17  ;;  %v2492_v4 = vld [vmem:[%s3920_s10 + $0x28] sm:$0xff]   ;;  %v4126_v41 = vld [vmem:[#allocation10_spill] sm:$0xff] }
 0x33d   :  { %v3686_v25 = vmul.f32 %v1065_v20, %v1036_v8  ;;  %v1070_v27 = vadd.f32 %v3682_v22, %v3680_v36  ;;  %2211 = vmatprep.subr.bf16.mxu0 %v2489_v9  ;;  %v2494_v8 = vld [vmem:[%s3920_s10 + $0x38] sm:$0xff]  }
 0x33f   :  { %v1071_v26 = vrot.slane %v1070_v27, 4  ;;  %v1077_v29 = vadd.f32 %v3686_v25, %v3684_v38 }
 0x340   :  { %2212 = vmatpush3.bf16.msra.mxu0 %v2489_v9 }
 0x341   :  { %v1072_v21 = vadd.f32 %v1071_v26, %v1070_v27  ;;  %v1078_v32 = vrot.slane %v1077_v29, 4  ;;  %2213 = vmatprep.subr.bf16.mxu0 %v2490_v14 }
 0x343   :  { %v1073_v35 = vrot.slane %v1072_v21, 2  ;;  %v1079_v0 = vadd.f32 %v1078_v32, %v1077_v29 }
 0x344   :  { %2214 = vmatpush3.bf16.msra.mxu0 %v2490_v14 }
 0x345   :  { %v1074_v52 = vadd.f32 %v1073_v35, %v1072_v21  ;;  %v1080_v24 = vrot.slane %v1079_v0, 2  ;;  %2215 = vmatprep.subr.bf16.mxu0 %v2491_v34 }
 0x347   :  { %v1075_v19 = vrot.slane %v1074_v52, 1  ;;  %v1081_v12 = vadd.f32 %v1080_v24, %v1079_v0  ;;  %v3763_v24 = vld [vmem:[%s3986_s1] sm:$0xff] }
 0x348   :  { %2216 = vmatpush3.bf16.msra.mxu0 %v2491_v34 }
 0x349   :  { %v1076_v15 = vadd.f32 %v1075_v19, %v1074_v52  ;;  %v1082_v59 = vrot.slane %v1081_v12, 1  ;;  %2217 = vmatprep.subr.bf16.mxu0 %v2492_v4 }
 0x34b   :  { %v1083_v42 = vadd.f32 %v1082_v59, %v1081_v12  ;;  %v1085_v46 = vmul.f32 0.0625, %v1076_v15  ;;  %v3771_v59 = vld [vmem:[%s3986_s1 + $0x8] sm:$0xff] }
 0x34c   :  { %2218 = vmatpush3.bf16.msra.mxu0 %v2492_v4 }
 0x34d   :  { %v1086_v31 = vmul.f32 0.0625, %v1083_v42  ;;  %v1087_v6 = vpack.c.bf16 %v1085_v46, %v1085_v46  ;;  %2219 = vmatprep.subr.bf16.mxu0 %v2493_v11  ;;  %v3780_v46 = vld [vmem:[%s3986_s1 + $0x10] sm:$0xff] }
 0x34f   :  { %v1088_v45 = vpack.c.bf16 %v1086_v31, %v1086_v31  ;;  %v1114_v1 = vunpack.c.l.b16 %v1087_v6  ;;  %v3790_v6 = vld [vmem:[%s3986_s1 + $0x18] sm:$0xff] }
 0x350   :  { %2220 = vmatpush3.bf16.msra.mxu0 %v2493_v11 }
 0x351   :  { %v1115_v49 = vunpack.c.l.b16 %v1088_v45  ;;  %2221 = vmatprep.subr.bf16.mxu0 %v2494_v8 }
 0x353   :  { %v1117_v51 = vsel %vm1116_vm2, %v1115_v49, %v1114_v1  ;;  %v4127_v1 = vmov 0   ;;  %v2495_v49 = vld [vmem:[%s3923_s14] ss:$8 sps:$4 sm:$0xff]  }
 0x354   :  { %v1118_v43 = vpack.c.b16 %v1117_v51, %v1117_v51  ;;  %2222 = vmatpush3.bf16.msra.mxu0 %v2494_v8  ;;  %v2497_v51 = vld [vmem:[%s3923_s14 + $0x4] ss:$8 sps:$4 sm:$0xff]   ;;  %v2504_v8 = vld [vmem:[%s3923_s14 + $0x30] ss:$8 sps:$4 sm:$0xff]  }
 0x355   :  { %2420 = vmatprep.subr.bf16.mxu0 %v4118_v30 }
 0x356   :  { %2204 = vmatmul.mubr.bf16.vlgmr.msra.gmra.mrb[4].mxu1 %v1118_v43  ;;  %v2500_v43 = vld [vmem:[%s3923_s14 + $0x14] ss:$8 sps:$4 sm:$0xff]  }
 0x357   :  { %2390 = vmatpush3.bf16.msra.mxu1 %v4118_v30 }
 0x358   :  { %2392 = vmatprep.subr.bf16.mxu1 %v4119_v53 }
 0x35b   :  { %2394 = vmatpush3.bf16.msra.mxu1 %v4119_v53 }
 0x35c   :  { %2396 = vmatprep.subr.bf16.mxu1 %v4120_v37 }
 0x35f   :  { %2398 = vmatpush3.bf16.msra.mxu1 %v4120_v37 }
 0x360   :  { %2400 = vmatprep.subr.bf16.mxu1 %v4121_v2 }
 0x363   :  { %2402 = vmatpush3.bf16.msra.mxu1 %v4121_v2 }
 0x364   :  { %2404 = vmatprep.subr.bf16.mxu1 %v4122_v3 }
 0x367   :  { %2406 = vmatpush3.bf16.msra.mxu1 %v4122_v3 }
 0x368   :  { %2408 = vmatprep.subr.bf16.mxu1 %v4123_v62 }
 0x36b   :  { %2410 = vmatpush3.bf16.msra.mxu1 %v4123_v62 }
 0x36c   :  { %2412 = vmatprep.subr.bf16.mxu1 %v4124_v10 }
 0x36f   :  { %2414 = vmatpush3.bf16.msra.mxu1 %v4124_v10 }
 0x370   :  { %2416 = vmatprep.subr.bf16.mxu1 %v4125_v50 }
 0x373   :  { %2418 = vmatpush3.bf16.msra.mxu1 %v4125_v50 }
 0x374   :  { %1695 = vmatprep.subr.bf16.mxu1 %v2497_v51 }
 0x429   :  { %v1202_v44 = vpop.f32.mrb[4].mxu1 }
 0x42a   :  { %v1203_v58 = vadd.f32 %v1951_v16, %v1202_v44  ;;  %v2205_v18 = vpop.f32.mrb[5].mxu1  ;;  %v2506_v16 = vld [vmem:[%s3923_s14 + $0x34] ss:$8 sps:$4 sm:$0xff]   ;;  %v2509_v44 = vld [vmem:[%s3923_s14 + $0x44] ss:$8 sps:$4 sm:$0xff]  }
 0x42b   :  { %v1205_v61 = vpop.f32.mrb[6].mxu1  ;;  %v2512_v18 = vld [vmem:[%s3923_s14 + $0x54] ss:$8 sps:$4 sm:$0xff]  }
 0x42c   :  { %v1960_v7 = vmul.f32 -1.442695, %v1203_v58  ;;  %v2206_v13 = vpop.f32.mrb[7].mxu1  ;;  %v2507_v58 = vld [vmem:[%s3923_s14 + $0x40] ss:$8 sps:$4 sm:$0xff]  }
 0x42d   :  { %v2510_v61 = vld [vmem:[%s3923_s14 + $0x50] ss:$8 sps:$4 sm:$0xff]   ;;  %v2513_v13 = vld [vmem:[%s3923_s14 + $0x60] ss:$8 sps:$4 sm:$0xff]  }
 0x42e   :  { %2551 = vpow2.f32 %v1960_v7  ;;  %v2515_v7 = vld [vmem:[%s3923_s14 + $0x64] ss:$8 sps:$4 sm:$0xff]  }
 0x438   :  { %v2552_v40 = vpop.eup %2551 }
 0x439   :  { %v1211_v28 = vadd.f32 1.0, %v2552_v40  ;;  %v2518_v40 = vld [vmem:[%s3923_s14 + $0x74] ss:$8 sps:$4 sm:$0xff]  }
 0x43b   :  { %2553 = vrcp.f32 %v1211_v28  ;;  %v2516_v28 = vld [vmem:[%s3923_s14 + $0x70] ss:$8 sps:$4 sm:$0xff]  }
 0x445   :  { %v2554_v54 = vpop.eup %2553 }
 0x446   :  { %v1221_v57 = vrot.slane %v2554_v54, %v1220_v23 }
 0x448   :  { %v1222_v47 = vcombine.high %v1221_v57, %v1221_v57  ;;  %v1229_v33 = vrot.slane %v1221_v57, %v1220_v23 }
 0x44a   :  { %v1236_v48 = vrot.slane %v1222_v47, %v1220_v23  ;;  %v1240_v5 = vrot.slane %v1229_v33, %v4126_v41 }
 0x44c   :  { %v1247_v20 = vmul.f32 %v1240_v5, %v3680_v36  ;;  %v1248_v27 = vmul.f32 %v1240_v5, %v3682_v22  ;;  %v1244_v26 = vrot.slane %v1236_v48, %v4126_v41  ;;  %v1961_v36 = vld [vmem:[%s3922_s11] ss:$0 sm:$0xff] }
 0x44d   :  { %v1970_v5 = vld [vmem:[%s3924_s12] ss:$0 sm:$0xff] }
 0x44e   :  { %v1251_v29 = vpack.c.bf16 %v1248_v27, %v1247_v20  ;;  %v1249_v21 = vmul.f32 %v1244_v26, %v3684_v38  ;;  %v1250_v32 = vmul.f32 %v1244_v26, %v3686_v25 }
 0x450   :  { %2223 = vmatprep.mubr.bf16.mxu0 %v1251_v29  ;;  %v1252_v39 = vpack.c.bf16 %v1250_v32, %v1249_v21  ;;  %v1971_v29 = vld [vmem:[%s3925_s13] ss:$0 sm:$0xff] }
 0x452   :  { %2224 = vmatmul.mubr.bf16.vlgmr.msra.gmra.mrb[12].mxu0 %v1252_v39 }
 0x453   :  { %2422 = vmatpush3.bf16.msra.mxu0 %v4118_v30  ;;  %v2498_v30 = vld [vmem:[%s3923_s14 + $0x10] ss:$8 sps:$4 sm:$0xff]  }
 0x454   :  { %2424 = vmatprep.subr.bf16.mxu0 %v4119_v53 }
 0x457   :  { %2426 = vmatpush3.bf16.msra.mxu0 %v4119_v53  ;;  %v2503_v53 = vld [vmem:[%s3923_s14 + $0x24] ss:$8 sps:$4 sm:$0xff]  }
 0x458   :  { %2428 = vmatprep.subr.bf16.mxu0 %v4120_v37 }
 0x45b   :  { %2430 = vmatpush3.bf16.msra.mxu0 %v4120_v37  ;;  %v2501_v37 = vld [vmem:[%s3923_s14 + $0x20] ss:$8 sps:$4 sm:$0xff]  }
 0x45c   :  { %2432 = vmatprep.subr.bf16.mxu0 %v4121_v2 }
 0x45f   :  { %2434 = vmatpush3.bf16.msra.mxu0 %v4121_v2 }
 0x460   :  { %2436 = vmatprep.subr.bf16.mxu0 %v4122_v3 }
 0x463   :  { %2438 = vmatpush3.bf16.msra.mxu0 %v4122_v3 }
 0x464   :  { %2440 = vmatprep.subr.bf16.mxu0 %v4123_v62 }
 0x467   :  { %2442 = vmatpush3.bf16.msra.mxu0 %v4123_v62 }
 0x468   :  { %2444 = vmatprep.subr.bf16.mxu0 %v4124_v10 }
 0x46b   :  { %2446 = vmatpush3.bf16.msra.mxu0 %v4124_v10 }
 0x46c   :  { %2448 = vmatprep.subr.bf16.mxu0 %v4125_v50 }
 0x46f   :  { %2450 = vmatpush3.bf16.msra.mxu0 %v4125_v50 }
 0x525   :  { %v2225_v22 = vpop.f32.mrb[12].mxu0 }
 0x526   :  { %v1358_v38 = vpop.f32.mrb[13].mxu0  ;;  %v1367_v0 = vadd.f32 %v2225_v22, %v1961_v36 }
 0x527   :  { %v1359_v25 = vadd.f32 %v1961_v36, %v1358_v38  ;;  %v2226_v35 = vpop.f32.mrb[14].mxu0 }
 0x528   :  { %v1361_v52 = vpop.f32.mrb[15].mxu0  ;;  %v1370_v15 = vadd.f32 %v2226_v35, %v1961_v36  ;;  %v3783_v31 = vadd.f32 %v3780_v46, %v1367_v0 }
 0x529   :  { %v3766_v19 = vadd.f32 %v3763_v24, %v1359_v25  ;;  %v1362_v12 = vadd.f32 %v1961_v36, %v1361_v52 }
 0x52a   :  { %v3793_v45 = vadd.f32 %v3790_v6, %v1370_v15 }
 0x52b   :  { %v3774_v42 = vadd.f32 %v3771_v59, %v1362_v12  ;;  %2259 = vmatprep.mubr.f32.mxu1 %v3766_v19 }
 0x52d   :  { %2260 = vmatmul.mubr.f32.vlgmr.msra.gmra.mrb[8].mxu1 %v3774_v42 }
 0x52e   :  { %2262 = vmatprep.mubr.f32.mxu1 %v3783_v31  ;;  %1696 = vmatpush1.bf16.msra.mxu1 %v2495_v49 }
 0x52f   :  { %1697 = vmatprep.subr.bf16.mxu1 %v2500_v43  ;;  %v2519_v43 = vld [vmem:[%s3926_s16] sm:$0xff]  }
 0x530   :  { %2303 = vmatprep.subr.bf16.mxu0 %v2519_v43 }
 0x531   :  { %2263 = vmatmul.mubr.f32.gmra.mrb[10].mxu1 %v3793_v45 }
 0x532   :  { %1727 = vmatprep.mubr.bf16.mxu1 %v4127_v1  ;;  %1698 = vmatpush1.bf16.msra.mxu1 %v2498_v30  ;;  %v2520_v30 = vld [vmem:[%s3926_s16 + $0x8] sm:$0xff]  }
 0x533   :  { %1699 = vmatprep.subr.bf16.mxu1 %v2503_v53  ;;  %v2521_v53 = vld [vmem:[%s3926_s16 + $0x10] sm:$0xff]  }
 0x536   :  { %1700 = vmatpush1.bf16.msra.mxu1 %v2501_v37  ;;  %v2523_v37 = vld [vmem:[%s3926_s16 + $0x20] sm:$0xff]  }
 0x537   :  { %1701 = vmatprep.subr.bf16.mxu1 %v2506_v16 }
 0x53a   :  { %1702 = vmatpush1.bf16.msra.mxu1 %v2504_v8 }
 0x53b   :  { %1703 = vmatprep.subr.bf16.mxu1 %v2509_v44 }
 0x53e   :  { %1704 = vmatpush1.bf16.msra.mxu1 %v2507_v58 }
 0x53f   :  { %1705 = vmatprep.subr.bf16.mxu1 %v2512_v18 }
 0x542   :  { %1706 = vmatpush1.bf16.msra.mxu1 %v2510_v61 }
 0x543   :  { %1707 = vmatprep.subr.bf16.mxu1 %v2515_v7 }
 0x546   :  { %1708 = vmatpush1.bf16.msra.mxu1 %v2513_v13 }
 0x547   :  { %1709 = vmatprep.subr.bf16.mxu1 %v2518_v40 }
 0x54a   :  { %1710 = vmatpush1.bf16.msra.mxu1 %v2516_v28 }
 0x600   :  { %v2261_v2 = vpop.f32.mrb[8].mxu1 }
 0x601   :  { %v1463_v3 = vsub.f32 %v3774_v42, %v2261_v2  ;;  %v1443_v62 = vpop.f32.mrb[9].mxu1  ;;  %v2524_v2 = vld [vmem:[%s3926_s16 + $0x28] sm:$0xff]  }
 0x602   :  { %v1462_v10 = vsub.f32 %v3766_v19, %v1443_v62  ;;  %v2526_v62 = vld [vmem:[%s3926_s16 + $0x38] sm:$0xff]  }
 0x603   :  { %v1467_v17 = vmul.f32 %v1463_v3, %v1463_v3 }
 0x604   :  { %v1466_v50 = vmul.f32 %v1462_v10, %v1462_v10  ;;  %v2264_v55 = vpop.f32.mrb[10].mxu1 }
 0x605   :  { %v1465_v9 = vsub.f32 %v3793_v45, %v2264_v55  ;;  %v1453_v14 = vpop.f32.mrb[11].mxu1 }
 0x606   :  { %v1464_v34 = vsub.f32 %v3783_v31, %v1453_v14  ;;  %2297 = vmatprep.mubr.f32.mxu0 %v1466_v50  ;;  %v4128_v50 = vld [vmem:[#allocation11_spill] sm:$0xff] }
 0x607   :  { %2298 = vmatmul.mubr.f32.vlgmr.msra.gmra.mrb[16].mxu0 %v1467_v17  ;;  %v1469_v11 = vmul.f32 %v1465_v9, %v1465_v9 }
 0x608   :  { %v1468_v4 = vmul.f32 %v1464_v34, %v1464_v34  ;;  %2304 = vmatpush3.bf16.msra.mxu0 %v2519_v43 }
 0x609   :  { %2305 = vmatprep.subr.bf16.mxu0 %v2520_v30 }
 0x60a   :  { %2300 = vmatprep.mubr.f32.mxu0 %v1468_v4 }
 0x60b   :  { %2301 = vmatmul.mubr.f32.gmra.mrb[18].mxu0 %v1469_v11 }
 0x60c   :  { %2306 = vmatpush3.bf16.msra.mxu0 %v2520_v30 }
 0x60d   :  { %2307 = vmatprep.subr.bf16.mxu0 %v2521_v53 }
 0x610   :  { %2308 = vmatpush3.bf16.msra.mxu0 %v2521_v53 }
 0x6da   :  { %v2299_v63 = vpop.f32.mrb[16].mxu0 }
 0x6db   :  { %v1542_v56 = vadd.f32 1e-05, %v2299_v63  ;;  %v1536_v60 = vpop.f32.mrb[17].mxu0 }
 0x6dc   :  { %v1537_v23 = vadd.f32 1e-05, %v1536_v60 }
 0x6dd   :  { %2555 = vrsqrt.f32 %v1542_v56 }
 0x6de   :  { %2557 = vrsqrt.f32 %v1537_v23  ;;  %v2302_v54 = vpop.f32.mrb[18].mxu0 }
 0x6df   :  { %v1552_v57 = vadd.f32 1e-05, %v2302_v54  ;;  %v1546_v47 = vpop.f32.mrb[19].mxu0 }
 0x6e0   :  { %v1547_v33 = vadd.f32 1e-05, %v1546_v47 }
 0x6e1   :  { %2559 = vrsqrt.f32 %v1552_v57 }
 0x6e2   :  { %2561 = vrsqrt.f32 %v1547_v33 }
 0x6e7   :  { %v2556_v48 = vpop.eup %2555 }
 0x6e8   :  { %v2558_v20 = vpop.eup %2557  ;;  %v1560_v27 = vmul.f32 %v2556_v48, %v1463_v3  ;;  %v2525_v3 = vld [vmem:[%s3926_s16 + $0x30] sm:$0xff]  }
 0x6e9   :  { %v1559_v26 = vmul.f32 %v2558_v20, %v1462_v10  ;;  %v1603_v10 = vld [vmem:[%s3927_s15] sm:$0x3] }
 0x6ea   :  { %v1571_v21 = vmul.f32 %v1970_v5, %v1560_v27  ;;  %v1612_v55 = vrot.slane %v1603_v10, %v4128_v50  ;;  %v1608_v33 = vrot.slane %v1603_v10, %v4126_v41 }
 0x6eb   :  { %v2560_v32 = vpop.eup %2559  ;;  %v1570_v39 = vmul.f32 %v1970_v5, %v1559_v26 }
 0x6ec   :  { %v2562_v36 = vpop.eup %2561  ;;  %v1582_v22 = vadd.f32 %v1971_v29, %v1571_v21  ;;  %v1562_v38 = vmul.f32 %v2560_v32, %v1465_v9 }
 0x6ed   :  { %v1581_v25 = vadd.f32 %v1971_v29, %v1570_v39  ;;  %v1561_v35 = vmul.f32 %v2562_v36, %v1464_v34 }
 0x6ee   :  { %v1573_v0 = vmul.f32 %v1970_v5, %v1562_v38 }
 0x6ef   :  { %v1585_v52 = vpack.c.bf16 %v1582_v22, %v1581_v25  ;;  %v1572_v12 = vmul.f32 %v1970_v5, %v1561_v35 }
 0x6f0   :  { %v1584_v15 = vadd.f32 %v1971_v29, %v1573_v0 }
 0x6f1   :  { %1728 = vmatmul.mubr.bf16.vlgmr.msra.gmra.mrb[12].mxu1 %v1585_v52  ;;  %v1583_v49 = vadd.f32 %v1971_v29, %v1572_v12 }
 0x6f2   :  { %1737 = vmatprep.mubr.bf16.mxu1 %v4127_v1  ;;  %v2522_v1 = vld [vmem:[%s3926_s16 + $0x18] sm:$0xff]  }
 0x6f3   :  { %v1586_v51 = vpack.c.bf16 %v1584_v15, %v1583_v49  ;;  %2309 = vmatprep.subr.bf16.mxu0 %v2522_v1  ;;  %v1992_v49 = vld [vmem:[%s3928_s17] ss:$0 sm:$0xff] }
 0x6f4   :  { %2310 = vmatpush3.bf16.msra.mxu0 %v2522_v1 }
 0x6f5   :  { %2311 = vmatprep.subr.bf16.mxu0 %v2523_v37 }
 0x6f8   :  { %2312 = vmatpush3.bf16.msra.mxu0 %v2523_v37 }
 0x6f9   :  { %1738 = vmatmul.mubr.bf16.gmra.mrb[16].mxu1 %v1586_v51  ;;  %2313 = vmatprep.subr.bf16.mxu0 %v2524_v2  ;;  %v2001_v51 = vld [vmem:[%s3929_s18] ss:$0 sm:$0xff] }
 0x6fa   :  { %v1915_v53 = vmul.f32 %v3780_v46, %v2001_v51  ;;  %v1916_v50 = vmul.f32 %v3790_v6, %v2001_v51 }
 0x6fc   :  { %2314 = vmatpush3.bf16.msra.mxu0 %v2524_v2  ;;  %v1913_v2 = vmul.f32 %v3763_v24, %v2001_v51 }
 0x6fd   :  { %2315 = vmatprep.subr.bf16.mxu0 %v2525_v3 }
 0x700   :  { %2316 = vmatpush3.bf16.msra.mxu0 %v2525_v3 }
 0x701   :  { %2317 = vmatprep.subr.bf16.mxu0 %v2526_v62 }
 0x704   :  { %2318 = vmatpush3.bf16.msra.mxu0 %v2526_v62 }
 0x7c4   :  { %v1729_v17 = vpop.f32.mrb[12].mxu1 }
 0x7c5   :  { %v1731_v9 = vpop.f32.mrb[13].mxu1  ;;  %v1730_v20 = vadd.f32 %v1729_v17, %v1608_v33 }
 0x7c6   :  { %v1732_v14 = vadd.f32 %v1731_v9, %v1612_v55  ;;  %v1733_v34 = vpop.f32.mrb[14].mxu1 }
 0x7c7   :  { %v1735_v4 = vpop.f32.mrb[15].mxu1  ;;  %v1734_v21 = vadd.f32 %v1733_v34, %v1608_v33 }
 0x7c8   :  { %v1988_v11 = vmul.f32 -1.442695, %v1732_v14  ;;  %v1736_v8 = vadd.f32 %v1735_v4, %v1612_v55 }
 0x7ca   :  { %2563 = vpow2.f32 %v1988_v11  ;;  %v1989_v16 = vmul.f32 -1.442695, %v1736_v8 }
 0x7cc   :  { %2565 = vpow2.f32 %v1989_v16  ;;  %v1739_v44 = vpop.f32.mrb[16].mxu1 }
 0x7cd   :  { %v1741_v58 = vpop.f32.mrb[17].mxu1  ;;  %v1740_v38 = vadd.f32 %v1739_v44, %v1608_v33 }
 0x7ce   :  { %v1742_v18 = vadd.f32 %v1741_v58, %v1612_v55  ;;  %v1743_v61 = vpop.f32.mrb[18].mxu1 }
 0x7cf   :  { %v1745_v7 = vpop.f32.mrb[19].mxu1  ;;  %v1744_v52 = vadd.f32 %v1743_v61, %v1608_v33 }
 0x7d0   :  { %v1990_v13 = vmul.f32 -1.442695, %v1742_v18  ;;  %v1746_v40 = vadd.f32 %v1745_v7, %v1612_v55 }
 0x7d2   :  { %2567 = vpow2.f32 %v1990_v13  ;;  %v1991_v28 = vmul.f32 -1.442695, %v1746_v40 }
 0x7d4   :  { %v2564_v63 = vpop.eup %2563  ;;  %2569 = vpow2.f32 %v1991_v28 }
 0x7d5   :  { %v1760_v56 = vadd.f32 1.0, %v2564_v63 }
 0x7d6   :  { %v2566_v60 = vpop.eup %2565 }
 0x7d7   :  { %2571 = vrcp.f32 %v1760_v56  ;;  %v1761_v23 = vadd.f32 1.0, %v2566_v60 }
 0x7d9   :  { %2573 = vrcp.f32 %v1761_v23 }
 0x7dc   :  { %v2568_v54 = vpop.eup %2567 }
 0x7dd   :  { %v1762_v57 = vadd.f32 1.0, %v2568_v54 }
 0x7de   :  { %v2570_v47 = vpop.eup %2569 }
 0x7df   :  { %2575 = vrcp.f32 %v1762_v57  ;;  %v1763_v48 = vadd.f32 1.0, %v2570_v47 }
 0x7e1   :  { %v2572_v5 = vpop.eup %2571  ;;  %2577 = vrcp.f32 %v1763_v48 }
 0x7e2   :  { %v1772_v27 = vmul.f32 %v2572_v5, %v1732_v14  ;;  %v1914_v14 = vmul.f32 %v3771_v59, %v2001_v51 }
 0x7e3   :  { %v2574_v26 = vpop.eup %2573 }
 0x7e4   :  { %v1776_v29 = vmul.f32 %v1772_v27, %v1730_v20  ;;  %v1773_v32 = vmul.f32 %v2574_v26, %v1736_v8 }
 0x7e6   :  { %v1777_v39 = vmul.f32 %v1773_v32, %v1734_v21 }
 0x7e8   :  { %v1780_v36 = vpack.c.bf16 %v1777_v39, %v1776_v29 }
 0x7e9   :  { %v2576_v22 = vpop.eup %2575 }
 0x7ea   :  { %v1774_v25 = vmul.f32 %v2576_v22, %v1742_v18  ;;  %2319 = vmatprep.mubr.bf16.mxu0 %v1780_v36 }
 0x7eb   :  { %v2578_v35 = vpop.eup %2577 }
 0x7ec   :  { %v1778_v0 = vmul.f32 %v1774_v25, %v1740_v38  ;;  %v1775_v41 = vmul.f32 %v2578_v35, %v1746_v40 }
 0x7ee   :  { %v1779_v12 = vmul.f32 %v1775_v41, %v1744_v52 }
 0x7f0   :  { %v1781_v15 = vpack.c.bf16 %v1779_v12, %v1778_v0 }
 0x7f2   :  { %2320 = vmatmul.mubr.bf16.vlgmr.msra.gmra.mrb[20].mxu0 %v1781_v15 }
 0x8c5   :  { %v2321_v43 = vpop.f32.mrb[20].mxu0 }
 0x8c6   :  { %v1896_v30 = vadd.f32 %v2321_v43, %v1992_v49  ;;  %v1887_v1 = vpop.f32.mrb[21].mxu0 }
 0x8c7   :  { %v1888_v37 = vadd.f32 %v1992_v49, %v1887_v1  ;;  %v2322_v3 = vpop.f32.mrb[22].mxu0 }
 0x8c8   :  { %v1904_v62 = vadd.f32 %v1896_v30, %v3783_v31  ;;  %v1899_v10 = vadd.f32 %v2322_v3, %v1992_v49  ;;  %v1890_v55 = vpop.f32.mrb[23].mxu0 }
 0x8c9   :  { %v1902_v17 = vadd.f32 %v1888_v37, %v3766_v19  ;;  %v1891_v9 = vadd.f32 %v1992_v49, %v1890_v55 }
 0x8ca   :  { %v1919_v34 = vadd.f32 %v1915_v53, %v1904_v62  ;;  %v1905_v4 = vadd.f32 %v1899_v10, %v3793_v45 }
 0x8cb   :  { %v1917_v46 = vadd.f32 %v1913_v2, %v1902_v17  ;;  %v1903_v11 = vadd.f32 %v1891_v9, %v3774_v42 }
 0x8cc   :  { %1923 = vst [vmem:[%s3930_s19 + $0x10] sm:$0xff] %v1919_v34  ;;  %v1920_v24 = vadd.f32 %v1916_v50, %v1905_v4 }
 0x8cd   :  { %1921 = vst [vmem:[%s3930_s19] sm:$0xff] %v1917_v46  ;;  %v1918_v31 = vadd.f32 %v1914_v14, %v1903_v11 }
 0x8ce   :  { %1924 = vst [vmem:[%s3930_s19 + $0x18] sm:$0xff] %v1920_v24 }
 0x8cf   :  { %1922 = vst [vmem:[%s3930_s19 + $0x8] sm:$0xff] %v1918_v31 }

// kernel: ts_tf_block.7
= control target key start
LH: loop header
LB: loop body
LE: loop exit
PB: predicated region body
PF: predicated region fallthrough
CT: control target
= control target key end

     0   :  { %v3676_v56 = vmov 0   ;;  %vm2505_vm0 = vmmov 0   ;;  %vm1020_vm11 = vcmask 1041409   ;;  %vm1022_vm12 = vcmask 1042434   ;;  %s3653_s1 = inlined_call_operand.vmem [shape: f32[128,128], index: 1, kind: input, shape index: {}]   ;;  %s3654_s0 = inlined_call_operand.vmem [shape: f32[4,8,128], index: 0, kind: input, shape index: {}]   ;;  %s3655_s4 = inlined_call_operand.vmem [shape: bf16[128,256], index: 4, kind: input, shape index: {}]   ;;  %s3656_s2 = inlined_call_operand.vmem [shape: f32[1,128], index: 2, kind: input, shape index: {}]   ;;  %s3657_s3 = inlined_call_operand.vmem [shape: f32[1,128], index: 3, kind: input, shape index: {}]   ;;  %s3658_s8 = inlined_call_operand.vmem [shape: bf16[128,128], index: 8, kind: input, shape index: {}]   ;;  %s3659_s5 = inlined_call_operand.vmem [shape: f32[1,256], index: 5, kind: input, shape index: {}]   ;;  %s3660_s6 = inlined_call_operand.vmem [shape: f32[11,256], index: 6, kind: input, shape index: {}]   ;;  %s3661_s7 = inlined_call_operand.vmem [shape: f32[1,256], index: 7, kind: input, shape index: {}]   ;;  %s3662_s10 = inlined_call_operand.vmem [shape: bf16[128,128], index: 10, kind: input, shape index: {}]   ;;  %s3663_s9 = inlined_call_operand.vmem [shape: f32[1,128], index: 9, kind: input, shape index: {}]   ;;  %s3664_s11 = inlined_call_operand.vmem [shape: f32[1,128], index: 11, kind: input, shape index: {}]   ;;  %s3665_s14 = inlined_call_operand.vmem [shape: bf16[128,256], index: 14, kind: input, shape index: {}]   ;;  %s3666_s12 = inlined_call_operand.vmem [shape: f32[1,128], index: 12, kind: input, shape index: {}]   ;;  %s3667_s13 = inlined_call_operand.vmem [shape: f32[1,128], index: 13, kind: input, shape index: {}]   ;;  %s3668_s16 = inlined_call_operand.vmem [shape: bf16[128,128], index: 16, kind: input, shape index: {}]   ;;  %s3669_s15 = inlined_call_operand.vmem [shape: f32[1,256], index: 15, kind: input, shape index: {}]   ;;  %s3670_s17 = inlined_call_operand.vmem [shape: f32[1,128], index: 17, kind: input, shape index: {}]   ;;  %s3671_s18 = inlined_call_operand.vmem [shape: f32[1,128], index: 18, kind: input, shape index: {}]   ;;  %s3672_s19 = inlined_call_operand.vmem [shape: f32[4,8,128], index: 19, kind: output, shape index: {}]  }
   0x1   :  { %3718 = sst [smem:[#allocation19_spill]] %s3653_s1  ;;  %vm1024_vm13 = vcmask 1043459  }
   0x2   :  { %3719 = sst [smem:[#allocation20_spill]] %s3654_s0  ;;  %s3722_s20 = sld [smem:[#allocation19_spill]] }
   0x3   :  { %3720 = sst [smem:[#allocation21_spill]] %s3655_s4  ;;  %s3726_s1 = sld [smem:[#allocation20_spill]] }
   0x4   :  { %3721 = sst [smem:[#allocation22_spill]] %s3656_s2  ;;  %s3732_s21 = sld [smem:[#allocation21_spill]] }
   0x8   :  { %v67_v0 = vld [vmem:[%s3722_s20] sm:$0xff]  ;;  %v68_v1 = vld [vmem:[%s3722_s20 + $0x8] sm:$0xff]  ;;  %v69_v2 = vld [vmem:[%s3722_s20 + $0x10] sm:$0xff] }
   0x9   :  { %v2616_v3 = vpack.c.bf16 %v68_v1, %v67_v0  ;;  %v70_v4 = vld [vmem:[%s3722_s20 + $0x18] sm:$0xff]  ;;  %v71_v6 = vld [vmem:[%s3722_s20 + $0x20] sm:$0xff]  ;;  %v72_v7 = vld [vmem:[%s3722_s20 + $0x28] sm:$0xff] }
   0xa   :  { %v2621_v5 = vpack.c.bf16 %v70_v4, %v69_v2  ;;  %v2634_v8 = vpack.c.bf16 %v72_v7, %v71_v6  ;;  %v2639_v9 = vld [vmem:[%s3726_s1] sm:$0xff]  ;;  %v73_v10 = vld [vmem:[%s3722_s20 + $0x30] sm:$0xff]  ;;  %v74_v11 = vld [vmem:[%s3722_s20 + $0x38] sm:$0xff] }
   0xb   :  { %3723 = vst [vmem:[#allocation2_spill] sm:$0xff] %v2616_v3  ;;  %2244 = vmatprep.subr.bf16.mxu0 %v2616_v3  ;;  %2276 = vmatprep.subr.bf16.mxu1 %v2616_v3  ;;  %v2652_v12 = vpack.c.bf16 %v74_v11, %v73_v10  ;;  %v75_v13 = vld [vmem:[%s3722_s20 + $0x40] sm:$0xff]  ;;  %v76_v14 = vld [vmem:[%s3722_s20 + $0x48] sm:$0xff]  ;;  %v77_v16 = vld [vmem:[%s3722_s20 + $0x50] sm:$0xff] }
   0xc   :  { %3724 = vst [vmem:[#allocation3_spill] sm:$0xff] %v2621_v5  ;;  %2246 = vmatpush3.bf16.msra.mxu0 %v2616_v3  ;;  %2278 = vmatpush3.bf16.msra.mxu1 %v2616_v3  ;;  %3725 = vst [vmem:[#allocation4_spill] sm:$0xff] %v2634_v8  ;;  %v2664_v15 = vpack.c.bf16 %v76_v14, %v75_v13  ;;  %v78_v17 = vld [vmem:[%s3722_s20 + $0x58] sm:$0xff]  ;;  %v79_v19 = vld [vmem:[%s3722_s20 + $0x60] sm:$0xff] }
   0xd   :  { %2248 = vmatprep.subr.bf16.mxu0 %v2621_v5  ;;  %2280 = vmatprep.subr.bf16.mxu1 %v2621_v5  ;;  %3727 = vst [vmem:[#allocation5_spill] sm:$0xff] %v2652_v12  ;;  %v2676_v18 = vpack.c.bf16 %v78_v17, %v77_v16  ;;  %v80_v20 = vld [vmem:[%s3722_s20 + $0x68] sm:$0xff]  ;;  %v81_v22 = vld [vmem:[%s3722_s20 + $0x70] sm:$0xff]  ;;  %v82_v23 = vld [vmem:[%s3722_s20 + $0x78] sm:$0xff]  ;;  %s3733_s20 = sld [smem:[#allocation22_spill]] }
   0xe   :  { %2063 = vmatprep.mubr.f32.mxu0 %v2639_v9  ;;  %3728 = vst [vmem:[#allocation6_spill] sm:$0xff] %v2664_v15  ;;  %v2688_v21 = vpack.c.bf16 %v80_v20, %v79_v19  ;;  %v2700_v24 = vpack.c.bf16 %v82_v23, %v81_v22  ;;  %v64_v25 = vld [vmem:[%s3726_s1 + $0x8] sm:$0xff]  ;;  %v65_v26 = vld [vmem:[%s3726_s1 + $0x10] sm:$0xff]  ;;  %v66_v27 = vld [vmem:[%s3726_s1 + $0x18] sm:$0xff] }
   0xf   :  { %3729 = vst [vmem:[#allocation7_spill] sm:$0xff] %v2676_v18  ;;  %v2375_v28 = vld [vmem:[%s3732_s21] ss:$8 sps:$4 sm:$0xff]   ;;  %v2377_v29 = vld [vmem:[%s3732_s21 + $0x4] ss:$8 sps:$4 sm:$0xff]  }
  0x10   :  { %2250 = vmatpush3.bf16.msra.mxu0 %v2621_v5  ;;  %2282 = vmatpush3.bf16.msra.mxu1 %v2621_v5  ;;  %3730 = vst [vmem:[#allocation8_spill] sm:$0xff] %v2688_v21  ;;  %3731 = vst [vmem:[#allocation9_spill] sm:$0xff] %v2700_v24  ;;  %v2380_v30 = vld [vmem:[%s3732_s21 + $0x14] ss:$8 sps:$4 sm:$0xff]   ;;  %v2378_v31 = vld [vmem:[%s3732_s21 + $0x10] ss:$8 sps:$4 sm:$0xff]  }
  0x11   :  { %2252 = vmatprep.subr.bf16.mxu0 %v2634_v8  ;;  %2284 = vmatprep.subr.bf16.mxu1 %v2634_v8  ;;  %v2383_v32 = vld [vmem:[%s3732_s21 + $0x24] ss:$8 sps:$4 sm:$0xff]   ;;  %v2381_v33 = vld [vmem:[%s3732_s21 + $0x20] ss:$8 sps:$4 sm:$0xff]   ;;  %v2386_v46 = vld [vmem:[%s3732_s21 + $0x34] ss:$8 sps:$4 sm:$0xff]  }
  0x12   :  { %v2384_v47 = vld [vmem:[%s3732_s21 + $0x30] ss:$8 sps:$4 sm:$0xff]   ;;  %v2389_v48 = vld [vmem:[%s3732_s21 + $0x44] ss:$8 sps:$4 sm:$0xff]   ;;  %v2387_v49 = vld [vmem:[%s3732_s21 + $0x40] ss:$8 sps:$4 sm:$0xff]  }
  0x13   :  { %v2392_v50 = vld [vmem:[%s3732_s21 + $0x54] ss:$8 sps:$4 sm:$0xff]   ;;  %v2390_v51 = vld [vmem:[%s3732_s21 + $0x50] ss:$8 sps:$4 sm:$0xff]   ;;  %v2395_v52 = vld [vmem:[%s3732_s21 + $0x64] ss:$8 sps:$4 sm:$0xff]  }
  0x14   :  { %2254 = vmatpush3.bf16.msra.mxu0 %v2634_v8  ;;  %2286 = vmatpush3.bf16.msra.mxu1 %v2634_v8  ;;  %v2393_v53 = vld [vmem:[%s3732_s21 + $0x60] ss:$8 sps:$4 sm:$0xff]   ;;  %v2396_v54 = vld [vmem:[%s3732_s21 + $0x70] ss:$8 sps:$4 sm:$0xff]   ;;  %v2398_v55 = vld [vmem:[%s3732_s21 + $0x74] ss:$8 sps:$4 sm:$0xff]  }
  0x15   :  { %2256 = vmatprep.subr.bf16.mxu0 %v2652_v12  ;;  %2288 = vmatprep.subr.bf16.mxu1 %v2652_v12  ;;  %v1849_v2 = vld [vmem:[%s3733_s20] ss:$0 sm:$0xff] }
  0x18   :  { %2258 = vmatpush3.bf16.msra.mxu0 %v2652_v12  ;;  %2290 = vmatpush3.bf16.msra.mxu1 %v2652_v12 }
  0x19   :  { %2260 = vmatprep.subr.bf16.mxu0 %v2664_v15  ;;  %2292 = vmatprep.subr.bf16.mxu1 %v2664_v15 }
  0x1c   :  { %2262 = vmatpush3.bf16.msra.mxu0 %v2664_v15  ;;  %2294 = vmatpush3.bf16.msra.mxu1 %v2664_v15 }
  0x1d   :  { %2264 = vmatprep.subr.bf16.mxu0 %v2676_v18  ;;  %2296 = vmatprep.subr.bf16.mxu1 %v2676_v18 }
  0x20   :  { %2266 = vmatpush3.bf16.msra.mxu0 %v2676_v18  ;;  %2298 = vmatpush3.bf16.msra.mxu1 %v2676_v18 }
  0x21   :  { %2268 = vmatprep.subr.bf16.mxu0 %v2688_v21  ;;  %2300 = vmatprep.subr.bf16.mxu1 %v2688_v21 }
  0x24   :  { %2270 = vmatpush3.bf16.msra.mxu0 %v2688_v21  ;;  %2302 = vmatpush3.bf16.msra.mxu1 %v2688_v21 }
  0x25   :  { %2272 = vmatprep.subr.bf16.mxu0 %v2700_v24  ;;  %2304 = vmatprep.subr.bf16.mxu1 %v2700_v24 }
  0x28   :  { %2274 = vmatpush3.bf16.msra.mxu0 %v2700_v24  ;;  %2306 = vmatpush3.bf16.msra.mxu1 %v2700_v24 }
  0x29   :  { %401 = vmatprep.subr.bf16.mxu0 %v2377_v29  ;;  %v2504_v29 = vmov 0.0  }
  0x2a   :  { %2107 = vmatprep.subr.bf16.mxu1 %v2504_v29 }
  0x2b   :  { %2064 = vmatmul.mubr.f32.vlgmr.msra.gmra.mrb[0].mxu0 %v64_v25 }
  0x2c   :  { %2066 = vmatprep.mubr.f32.mxu0 %v65_v26  ;;  %402 = vmatpush1.bf16.msra.mxu0 %v2375_v28 }
  0x2d   :  { %403 = vmatprep.subr.bf16.mxu0 %v2380_v30  ;;  %v2399_v30 = vld [vmem:[%s3658_s8] sm:$0xff]  }
  0x2f   :  { %2067 = vmatmul.mubr.f32.gmra.mrb[2].mxu0 %v66_v27 }
  0x30   :  { %404 = vmatpush1.bf16.msra.mxu0 %v2378_v31  ;;  %433 = vmatprep.mubr.bf16.mxu0 %v3676_v56  ;;  %v2400_v31 = vld [vmem:[%s3658_s8 + $0x8] sm:$0xff]  }
  0x31   :  { %405 = vmatprep.subr.bf16.mxu0 %v2383_v32  ;;  %v2401_v32 = vld [vmem:[%s3658_s8 + $0x10] sm:$0xff]  }
  0x34   :  { %406 = vmatpush1.bf16.msra.mxu0 %v2381_v33  ;;  %v2402_v33 = vld [vmem:[%s3658_s8 + $0x18] sm:$0xff]  }
  0x35   :  { %407 = vmatprep.subr.bf16.mxu0 %v2386_v46 }
  0x38   :  { %408 = vmatpush1.bf16.msra.mxu0 %v2384_v47 }
  0x39   :  { %409 = vmatprep.subr.bf16.mxu0 %v2389_v48 }
  0x3c   :  { %410 = vmatpush1.bf16.msra.mxu0 %v2387_v49 }
  0x3d   :  { %411 = vmatprep.subr.bf16.mxu0 %v2392_v50  ;;  %v455_v50 = vld [vmem:[%s3660_s6 + $0x8] sm:$0xff] }
  0x40   :  { %412 = vmatpush1.bf16.msra.mxu0 %v2390_v51 }
  0x41   :  { %413 = vmatprep.subr.bf16.mxu0 %v2395_v52 }
  0x44   :  { %414 = vmatpush1.bf16.msra.mxu0 %v2393_v53 }
  0x45   :  { %415 = vmatprep.subr.bf16.mxu0 %v2398_v55  ;;  %v460_v55 = vld [vmem:[%s3661_s7] sm:$0x3] }
  0x48   :  { %416 = vmatpush1.bf16.msra.mxu0 %v2396_v54 }
  0xfe   :  { %v2065_v34 = vpop.f32.mrb[0].mxu0 }
  0xff   :  { %v169_v35 = vsub.f32 %v64_v25, %v2065_v34  ;;  %v149_v36 = vpop.f32.mrb[1].mxu0  ;;  %v2403_v34 = vld [vmem:[%s3658_s8 + $0x20] sm:$0xff]  }
 0x100   :  { %v168_v37 = vsub.f32 %v2639_v9, %v149_v36  ;;  %v1850_v9 = vld [vmem:[%s3657_s3] ss:$0 sm:$0xff]  ;;  %v2405_v36 = vld [vmem:[%s3658_s8 + $0x30] sm:$0xff]  }
 0x101   :  { %v173_v40 = vmul.f32 %v169_v35, %v169_v35 }
 0x102   :  { %v2068_v38 = vpop.f32.mrb[2].mxu0  ;;  %v172_v39 = vmul.f32 %v168_v37, %v168_v37 }
 0x103   :  { %v171_v41 = vsub.f32 %v66_v27, %v2068_v38  ;;  %v159_v42 = vpop.f32.mrb[3].mxu0  ;;  %v311_v38 = vlaneseq }
 0x104   :  { %v170_v43 = vsub.f32 %v65_v26, %v159_v42  ;;  %2101 = vmatprep.mubr.f32.mxu1 %v172_v39 }
 0x105   :  { %v175_v44 = vmul.f32 %v171_v41, %v171_v41  ;;  %2102 = vmatmul.mubr.f32.vlgmr.msra.gmra.mrb[0].mxu1 %v173_v40  ;;  %v2800_v39 = vshrl.u32 %v311_v38, 7 }
 0x106   :  { %v174_v45 = vmul.f32 %v170_v43, %v170_v43  ;;  %2108 = vmatpush3.bf16.msra.mxu1 %v2399_v30 }
 0x107   :  { %2109 = vmatprep.subr.bf16.mxu1 %v2504_v29  ;;  %v2803_v40 = vsub.s32 1, %v2800_v39  ;;  %v2815_v48 = vsub.s32 0, %v2800_v39  ;;  %vm482_vm1 = vcmp.ge.s32.totalorder %v2800_v39, 5  ;;  %vm527_vm2 = vcmp.ge.s32.totalorder %v2800_v39, 4 }
 0x108   :  { %2104 = vmatprep.mubr.f32.mxu1 %v174_v45  ;;  %vm572_vm3 = vcmp.ge.s32.totalorder %v2800_v39, 3  ;;  %vm617_vm4 = vcmp.ge.s32.totalorder %v2800_v39, 2  ;;  %vm662_vm5 = vcmp.ge.s32.totalorder %v2800_v39, 1  ;;  %vm732_vm6 = vcmp.lt.s32.totalorder %v2800_v39, 7 }
 0x109   :  { %2105 = vmatmul.mubr.f32.gmra.mrb[2].mxu1 %v175_v44  ;;  %3734 = vst [vmem:[#allocation10_spill] sm:$0xff] %v2803_v40  ;;  %3735 = vst [vmem:[#allocation11_spill] sm:$0xff] %v2815_v48  ;;  %v2827_v53 = vrot.slane %v455_v50, %v2815_v48  ;;  %vm777_vm7 = vcmp.lt.s32.totalorder %v2800_v39, 6  ;;  %vm814_vm8 = vcmp.lt.s32.totalorder %v2800_v39, 5  ;;  %vm851_vm9 = vcmp.lt.s32.totalorder %v2800_v39, 4 }
 0x10a   :  { %2123 = vmatprep.mubr.msk.bf16.mxu1 %vm2505_vm0, %v2504_v29  ;;  %2110 = vmatpush3.bf16.msra.mxu1 %v2400_v31  ;;  %v457_v31 = vld [vmem:[%s3660_s6 + $0x18] sm:$0x7]  ;;  %vm888_vm10 = vcmp.lt.s32.totalorder %v2800_v39, 3 }
 0x10b   :  { %2111 = vmatprep.subr.bf16.mxu1 %v2504_v29 }
 0x10e   :  { %2112 = vmatpush3.bf16.msra.mxu1 %v2401_v32 }
 0x10f   :  { %2113 = vmatprep.subr.bf16.mxu1 %v2504_v29 }
 0x112   :  { %2114 = vmatpush3.bf16.msra.mxu1 %v2402_v33 }
 0x113   :  { %2115 = vmatprep.subr.bf16.mxu1 %v2504_v29 }
 0x116   :  { %2116 = vmatpush3.bf16.msra.mxu1 %v2403_v34 }
 0x117   :  { %2117 = vmatprep.subr.bf16.mxu1 %v2504_v29 }
 0x1d8   :  { %v2103_v57 = vpop.f32.mrb[0].mxu1 }
 0x1d9   :  { %v248_v58 = vadd.f32 1e-05, %v2103_v57  ;;  %v242_v59 = vpop.f32.mrb[1].mxu1 }
 0x1da   :  { %v243_v60 = vadd.f32 1e-05, %v242_v59 }
 0x1db   :  { %2447 = vrsqrt.f32 %v248_v58 }
 0x1dc   :  { %2449 = vrsqrt.f32 %v243_v60  ;;  %v2106_v61 = vpop.f32.mrb[2].mxu1  ;;  %v2843_v60 = vrot.slane %v460_v55, %v2803_v40 }
 0x1dd   :  { %v258_v62 = vadd.f32 1e-05, %v2106_v61  ;;  %v252_v63 = vpop.f32.mrb[3].mxu1 }
 0x1de   :  { %v253_v0 = vadd.f32 1e-05, %v252_v63  ;;  %v701_v63 = vsub.s32 5, %v2800_v39 }
 0x1df   :  { %2451 = vrsqrt.f32 %v258_v62  ;;  %v2847_v62 = vsub.s32 2, %v2800_v39 }
 0x1e0   :  { %2453 = vrsqrt.f32 %v253_v0  ;;  %v2919_v34 = vrot.slane %v455_v50, %v701_v63 }
 0x1e1   :  { %3736 = vst [vmem:[#allocation12_spill] sm:$0xff] %v2847_v62 }
 0x1e5   :  { %v2448_v1 = vpop.eup %2447 }
 0x1e6   :  { %v2450_v4 = vpop.eup %2449  ;;  %v266_v6 = vmul.f32 %v2448_v1, %v169_v35  ;;  %v2404_v35 = vld [vmem:[%s3658_s8 + $0x28] sm:$0xff]   ;;  %v2856_v1 = vld [vmem:[%s3660_s6] sm:$0xff] }
 0x1e7   :  { %v265_v7 = vmul.f32 %v2450_v4, %v168_v37  ;;  %2118 = vmatpush3.bf16.msra.mxu1 %v2404_v35  ;;  %v2406_v37 = vld [vmem:[%s3658_s8 + $0x38] sm:$0xff]   ;;  %3737 = vst [vmem:[#allocation13_spill] sm:$0xff] %v2856_v1  ;;  %v2860_v4 = vrot.slane %v455_v50, %v2803_v40 }
 0x1e8   :  { %v277_v10 = vmul.f32 %v1849_v2, %v266_v6  ;;  %2119 = vmatprep.subr.bf16.mxu1 %v2504_v29  ;;  %v677_v6 = vsub.s32 4, %v2800_v39 }
 0x1e9   :  { %v2452_v11 = vpop.eup %2451  ;;  %v276_v13 = vmul.f32 %v1849_v2, %v265_v7 }
 0x1ea   :  { %v2454_v14 = vpop.eup %2453  ;;  %v288_v16 = vadd.f32 %v1850_v9, %v277_v10  ;;  %v268_v17 = vmul.f32 %v2452_v11, %v171_v41  ;;  %v309_v41 = vld [vmem:[%s3659_s5] sm:$0x3]  ;;  %v2869_v10 = vrot.slane %v460_v55, %v2815_v48  ;;  %v746_v11 = vsub.s32 6, %v2800_v39 }
 0x1eb   :  { %v287_v19 = vadd.f32 %v1850_v9, %v276_v13  ;;  %v267_v20 = vmul.f32 %v2454_v14, %v170_v43  ;;  %2120 = vmatpush3.bf16.msra.mxu1 %v2405_v36  ;;  %v2809_v43 = vrot.slane %v309_v41, %v2803_v40  ;;  %v2851_v0 = vrot.slane %v309_v41, %v2815_v48 }
 0x1ec   :  { %v279_v22 = vmul.f32 %v1849_v2, %v268_v17  ;;  %2121 = vmatprep.subr.bf16.mxu1 %v2504_v29  ;;  %v2876_v14 = vrot.slane %v2856_v1, %v2815_v48  ;;  %v2884_v17 = vrot.slane %v2856_v1, %v701_v63  ;;  %v3680_v29 = vsub.s32 7, %v2800_v39 }
 0x1ed   :  { %v291_v23 = vpack.c.bf16 %v288_v16, %v287_v19  ;;  %v278_v25 = vmul.f32 %v1849_v2, %v267_v20  ;;  %v632_v2 = vsub.s32 3, %v2800_v39  ;;  %v2880_v16 = vrot.slane %v2856_v1, %v2847_v62 }
 0x1ee   :  { %v290_v26 = vadd.f32 %v1850_v9, %v279_v22  ;;  %3738 = vst [vmem:[#allocation14_spill] sm:$0xff] %v2884_v17  ;;  %v2917_v33 = vrot.slane %v455_v50, %v677_v6  ;;  %v2936_v55 = vrot.slane %v455_v50, %v746_v11  ;;  %v2941_v63 = vrot.slane %v455_v50, %v3680_v29 }
 0x1ef   :  { %434 = vmatmul.mubr.bf16.vlgmr.msra.gmra.mrb[4].mxu0 %v291_v23  ;;  %v289_v27 = vadd.f32 %v1850_v9, %v278_v25  ;;  %2122 = vmatpush3.bf16.msra.mxu1 %v2406_v37  ;;  %v2890_v20 = vrot.slane %v2856_v1, %v632_v2  ;;  %v2894_v23 = vrot.slane %v455_v50, %v2847_v62 }
 0x1f0   :  { %443 = vmatprep.mubr.bf16.mxu0 %v3676_v56  ;;  %2308 = vmatprep.subr.bf16.mxu1 %v2616_v3  ;;  %v2898_v25 = vrot.slane %v2856_v1, %v677_v6  ;;  %v2915_v32 = vrot.slane %v455_v50, %v632_v2  ;;  %v2948_v6 = vrot.slane %v457_v31, %v2803_v40 }
 0x1f1   :  { %v292_v28 = vpack.c.bf16 %v290_v26, %v289_v27 }
 0x1f7   :  { %444 = vmatmul.mubr.bf16.gmra.mrb[8].mxu0 %v292_v28  ;;  %v2907_v28 = vrot.slane %v2856_v1, %v746_v11 }
 0x1f9   :  { %3739 = vst [vmem:[#allocation15_spill] sm:$0xff] %v2907_v28 }
 0x2c2   :  { %v435_v42 = vpop.f32.mrb[4].mxu0 }
 0x2c3   :  { %v437_v44 = vpop.f32.mrb[5].mxu0  ;;  %v2887_v19 = vadd.f32 %v435_v42, %v2851_v0 }
 0x2c4   :  { %v439_v45 = vpop.f32.mrb[6].mxu0  ;;  %v2812_v47 = vadd.f32 %v437_v44, %v2809_v43 }
 0x2c5   :  { %v441_v46 = vpop.f32.mrb[7].mxu0  ;;  %v3679_v36 = vrot.slane %v2887_v19, 3  ;;  %v3678_v37 = vrot.slane %v2887_v19, 5  ;;  %v2929_v41 = vadd.f32 %v439_v45, %v2851_v0  ;;  %v609_v42 = vrot.slane %v2887_v19, 6 }
 0x2c6   :  { %v475_v51 = vrot.slane %v2812_v47, 3  ;;  %v3684_v59 = vrot.slane %v2812_v47, 4  ;;  %v3682_v9 = vrot.slane %v2812_v47, 5  ;;  %v610_v27 = vrot.slane %v2812_v47, 6 }
 0x2c7   :  { %v2922_v35 = vadd.f32 %v441_v46, %v2809_v43  ;;  %v655_v46 = vrot.slane %v2812_v47, 7  ;;  %v2944_v45 = vrot.slane %v457_v31, %v2815_v48  ;;  %v3681_v2 = vrot.slane %v2887_v19, 4 }
 0x2c8   :  { %v488_v57 = vsel %vm482_vm1, %v475_v51, 0.0  ;;  %v533_v7 = vsel %vm527_vm2, %v3684_v59, 0.0  ;;  %v578_v26 = vsel %vm572_vm3, %v3682_v9, 0.0  ;;  %v623_v44 = vsel %vm617_vm4, %v610_v27, 0.0 }
 0x2c9   :  { %v504_v61 = vmul.f32 %v2827_v53, %v488_v57  ;;  %v549_v22 = vmul.f32 %v2860_v4, %v533_v7  ;;  %v594_v38 = vmul.f32 %v2894_v23, %v578_v26  ;;  %v654_v57 = vrot.slane %v2887_v19, 7 }
 0x2ca   :  { %v2818_v49 = vpop.f32.mrb[8].mxu0  ;;  %v2951_v7 = vrot.slane %v457_v31, %v2847_v62  ;;  %v3683_v11 = vrot.slane %v2922_v35, 3  ;;  %v577_v50 = vsel %vm572_vm3, %v3678_v37, 0.0  ;;  %v3685_v26 = vrot.slane %v2929_v41, 3 }
 0x2cb   :  { %v2824_v52 = vpop.f32.mrb[9].mxu0  ;;  %v512_v13 = vadd.f32 %v504_v61, %v2843_v60  ;;  %v622_v27 = vsel %vm617_vm4, %v609_v42, 0.0  ;;  %v724_v31 = vrot.slane %v2812_v47, 1  ;;  %v667_v56 = vsel %vm662_vm5, %v654_v57, 0.0 }
 0x2cc   :  { %v2829_v54 = vpop.f32.mrb[10].mxu0  ;;  %v2974_v37 = vmul.f32 %v2884_v17, %v2887_v19  ;;  %v490_v57 = vsel %vm482_vm1, %v3683_v11, 0.0  ;;  %v3002_v29 = vmul.f32 %v2898_v25, %v667_v56  ;;  %v3742_v59 = vrot.slane %v2812_v47, 5 }
 0x2cd   :  { %v2838_v58 = vpop.f32.mrb[11].mxu0  ;;  %v557_v30 = vadd.f32 %v549_v22, %v512_v13  ;;  %v487_v13 = vsel %vm482_vm1, %v3679_v36, 0.0  ;;  %v639_v22 = vmul.f32 %v2915_v32, %v623_v44  ;;  %v2978_v36 = vrot.slane %v2856_v1, %v2803_v40 }
 0x2ce   :  { %3740 = vst [vmem:[#allocation16_spill] sm:$0xff] %v2974_v37  ;;  %v503_v42 = vmul.f32 %v2876_v14, %v487_v13  ;;  %v737_v9 = vsel %vm732_vm6, %v724_v31, 0.0  ;;  %v708_v31 = vmul.f32 %v2919_v34, %v2812_v47  ;;  %v611_v21 = vrot.slane %v2929_v41, 6 }
 0x2cf   :  { %v602_v61 = vadd.f32 %v594_v38, %v557_v30  ;;  %v668_v30 = vsel %vm662_vm5, %v655_v46, 0.0  ;;  %v769_v38 = vrot.slane %v2812_v47, 2  ;;  %v532_v46 = vsel %vm527_vm2, %v3681_v2, 0.0 }
 0x2d0   :  { %v684_v13 = vmul.f32 %v2917_v33, %v668_v30  ;;  %v489_v2 = vsel %vm482_vm1, %v3685_v26, 0.0  ;;  %v819_v30 = vsel %vm814_vm8, %v475_v51, 0.0  ;;  %v506_v26 = vmul.f32 %v2827_v53, %v490_v57 }
 0x2d1   :  { %v647_v44 = vadd.f32 %v639_v22, %v602_v61  ;;  %v2991_v61 = vmul.f32 %v2880_v16, %v577_v50  ;;  %v2994_v22 = vmul.f32 %v2890_v20, %v622_v27  ;;  %v782_v50 = vsel %vm777_vm7, %v769_v38, 0.0 }
 0x2d2   :  { %v3016_v56 = vadd.f32 %v503_v42, %v2869_v10  ;;  %v3741_v38 = vrot.slane %v2812_v47, 4  ;;  %v753_v11 = vmul.f32 %v2936_v55, %v737_v9  ;;  %v798_v51 = vmul.f32 %v2941_v63, %v782_v50 }
 0x2d3   :  { %v692_v27 = vadd.f32 %v684_v13, %v647_v44  ;;  %v505_v13 = vmul.f32 %v2876_v14, %v489_v2  ;;  %v893_v42 = vsel %vm888_vm10, %v3742_v59, 0.0  ;;  %v835_v24 = vmul.f32 %v2944_v45, %v819_v30 }
 0x2d4   :  { %v856_v44 = vsel %vm851_vm9, %v3741_v38, 0.0  ;;  %v3743_v18 = vrot.slane %v2922_v35, 4  ;;  %v3698_v9 = vrot.slane %v2922_v35, 5  ;;  %v3744_v47 = vrot.slane %v2929_v41, 4 }
 0x2d5   :  { %v716_v38 = vadd.f32 %v708_v31, %v692_v27  ;;  %v3040_v50 = vmul.f32 %v2948_v6, %v856_v44  ;;  %v514_v30 = vadd.f32 %v506_v26, %v2843_v60  ;;  %v3048_v57 = vmul.f32 %v2951_v7, %v893_v42 }
 0x2d6   :  { %v535_v2 = vsel %vm527_vm2, %v3743_v18, 0.0  ;;  %v534_v59 = vsel %vm527_vm2, %v3744_v47, 0.0  ;;  %v513_v15 = vadd.f32 %v505_v13, %v2869_v10  ;;  %v656_v18 = vrot.slane %v2929_v41, 7 }
 0x2d7   :  { %v3054_v27 = vadd.f32 %v2818_v49, %v2851_v0  ;;  %v3745_v31 = vrot.slane %v2929_v41, 5  ;;  %v551_v47 = vmul.f32 %v2860_v4, %v535_v2  ;;  %v3063_v26 = vadd.f32 %v2824_v52, %v2809_v43 }
 0x2d8   :  { %v3067_v13 = vadd.f32 %v2829_v54, %v2851_v0  ;;  %v550_v42 = vmul.f32 %v2978_v36, %v534_v59  ;;  %v624_v49 = vsel %vm617_vm4, %v611_v21, 0.0  ;;  %v612_v2 = vrot.slane %v2922_v35, 6 }
 0x2d9   :  { %v579_v44 = vsel %vm572_vm3, %v3745_v31, 0.0  ;;  %v580_v31 = vsel %vm572_vm3, %v3698_v9, 0.0  ;;  %v761_v12 = vadd.f32 %v753_v11, %v716_v38  ;;  %v725_v52 = vrot.slane %v2929_v41, 1 }
 0x2da   :  { %v559_v8 = vadd.f32 %v551_v47, %v514_v30  ;;  %v3080_v54 = vadd.f32 %v2838_v58, %v2809_v43  ;;  %v558_v0 = vadd.f32 %v550_v42, %v513_v15  ;;  %v669_v59 = vsel %vm662_vm5, %v656_v18, 0.0 }
 0x2db   :  { %v3086_v21 = vmul.f32 %v2884_v17, %v2929_v41  ;;  %v3089_v9 = vmul.f32 %v2978_v36, %v532_v46  ;;  %v595_v11 = vmul.f32 %v2880_v16, %v579_v44  ;;  %v640_v38 = vmul.f32 %v2890_v20, %v624_v49 }
 0x2dc   :  { %v596_v30 = vmul.f32 %v2894_v23, %v580_v31  ;;  %v657_v43 = vrot.slane %v2922_v35, 7  ;;  %v625_v15 = vsel %vm617_vm4, %v612_v2, 0.0  ;;  %v3700_v58 = vrot.slane %v3063_v26, 3 }
 0x2dd   :  { %3746 = vst [vmem:[#allocation17_spill] sm:$0xff] %v3086_v21  ;;  %v3699_v18 = vrot.slane %v3063_v26, 4  ;;  %v806_v42 = vadd.f32 %v798_v51, %v761_v12  ;;  %v3101_v46 = vmul.f32 %v2898_v25, %v669_v59  ;;  %v3105_v44 = vsel %vm732_vm6, %v725_v52, 0.0 }
 0x2de   :  { %3747 = vst [vmem:[#allocation18_spill] sm:$0xff] %v3105_v44  ;;  %v604_v49 = vadd.f32 %v596_v30, %v559_v8  ;;  %v603_v31 = vadd.f32 %v595_v11, %v558_v0  ;;  %v492_v2 = vsel %vm482_vm1, %v3700_v58, 0.0  ;;  %v614_v12 = vrot.slane %v3063_v26, 6 }
 0x2df   :  { %v537_v47 = vsel %vm527_vm2, %v3699_v18, 0.0  ;;  %v641_v51 = vmul.f32 %v2915_v32, %v625_v15  ;;  %v670_v52 = vsel %vm662_vm5, %v657_v43, 0.0  ;;  %v726_v8 = vrot.slane %v2922_v35, 1 }
 0x2e0   :  { %v508_v0 = vmul.f32 %v2827_v53, %v492_v2  ;;  %v710_v59 = vmul.f32 %v2919_v34, %v2922_v35  ;;  %v771_v11 = vrot.slane %v2922_v35, 2  ;;  %v3748_v30 = vrot.slane %v3063_v26, 5 }
 0x2e1   :  { %v659_v58 = vrot.slane %v3063_v26, 7  ;;  %v649_v15 = vadd.f32 %v641_v51, %v604_v49  ;;  %v3710_v5 = vrot.slane %v3054_v27, 3  ;;  %v553_v3 = vmul.f32 %v2860_v4, %v537_v47 }
 0x2e2   :  { %v582_v18 = vsel %vm572_vm3, %v3748_v30, 0.0  ;;  %v516_v43 = vadd.f32 %v508_v0, %v2843_v60  ;;  %v3132_v2 = vadd.f32 %v835_v24, %v806_v42  ;;  %v3134_v62 = vadd.f32 %v640_v38, %v603_v31 }
 0x2e3   :  { %v686_v40 = vmul.f32 %v2917_v33, %v670_v52  ;;  %v627_v48 = vsel %vm617_vm4, %v614_v12, 0.0  ;;  %v739_v30 = vsel %vm732_vm6, %v726_v8, 0.0  ;;  %v3749_v49 = vrot.slane %v2922_v35, 3 }
 0x2e4   :  { %v561_v0 = vadd.f32 %v553_v3, %v516_v43  ;;  %v598_v47 = vmul.f32 %v2894_v23, %v582_v18  ;;  %v784_v24 = vsel %vm777_vm7, %v771_v11, 0.0  ;;  %v3750_v38 = vrot.slane %v2922_v35, 4 }
 0x2e5   :  { %v821_v51 = vsel %vm814_vm8, %v3749_v49, 0.0  ;;  %v3751_v31 = vrot.slane %v2922_v35, 5  ;;  %v672_v52 = vsel %vm662_vm5, %v659_v58, 0.0  ;;  %v694_v8 = vadd.f32 %v686_v40, %v649_v15 }
 0x2e6   :  { %v858_v42 = vsel %vm851_vm9, %v3750_v38, 0.0  ;;  %v491_v3 = vsel %vm482_vm1, %v3710_v5, 0.0  ;;  %v606_v18 = vadd.f32 %v598_v47, %v561_v0  ;;  %v643_v11 = vmul.f32 %v2915_v32, %v627_v48 }
 0x2e7   :  { %v895_v12 = vsel %vm888_vm10, %v3751_v31, 0.0  ;;  %v755_v43 = vmul.f32 %v2936_v55, %v739_v30  ;;  %v3165_v49 = vmul.f32 %v2944_v45, %v821_v51  ;;  %v728_v38 = vrot.slane %v3063_v26, 1 }
 0x2e8   :  { %v3170_v58 = vmul.f32 %v2948_v6, %v858_v42  ;;  %v3714_v40 = vrot.slane %v3054_v27, 5  ;;  %v651_v15 = vadd.f32 %v643_v11, %v606_v18  ;;  %v688_v31 = vmul.f32 %v2917_v33, %v672_v52 }
 0x2e9   :  { %v800_v0 = vmul.f32 %v2941_v63, %v784_v24  ;;  %v3176_v48 = vmul.f32 %v2951_v7, %v895_v12  ;;  %v507_v30 = vmul.f32 %v2876_v14, %v491_v3  ;;  %v613_v51 = vrot.slane %v3054_v27, 6 }
 0x2ea   :  { %v718_v47 = vadd.f32 %v710_v59, %v694_v8  ;;  %v658_v5 = vrot.slane %v3054_v27, 7  ;;  %v696_v35 = vadd.f32 %v688_v31, %v651_v15  ;;  %v712_v42 = vmul.f32 %v2919_v34, %v3063_v26 }
 0x2eb   :  { %v3752_v18 = vrot.slane %v3054_v27, 4  ;;  %v741_v24 = vsel %vm732_vm6, %v728_v38, 0.0  ;;  %v773_v12 = vrot.slane %v3063_v26, 2  ;;  %v481_v3 = vrot.slane %v3080_v54, 3 }
 0x2ec   :  { %v581_v59 = vsel %vm572_vm3, %v3714_v40, 0.0  ;;  %v720_v8 = vadd.f32 %v712_v42, %v696_v35  ;;  %v3715_v15 = vrot.slane %v3080_v54, 4  ;;  %v626_v31 = vsel %vm617_vm4, %v613_v51, 0.0 }
 0x2ed   :  { %v536_v52 = vsel %vm527_vm2, %v3752_v18, 0.0  ;;  %v494_v38 = vsel %vm482_vm1, %v481_v3, 0.0  ;;  %v3717_v18 = vrot.slane %v3080_v54, 5  ;;  %v616_v1 = vrot.slane %v3080_v54, 6 }
 0x2ee   :  { %v763_v37 = vadd.f32 %v755_v43, %v718_v47  ;;  %v515_v17 = vadd.f32 %v507_v30, %v2869_v10  ;;  %v757_v40 = vmul.f32 %v2936_v55, %v741_v24  ;;  %v510_v35 = vmul.f32 %v2827_v53, %v494_v38 }
 0x2ef   :  { %v786_v42 = vsel %vm777_vm7, %v773_v12, 0.0  ;;  %v539_v51 = vsel %vm527_vm2, %v3715_v15, 0.0  ;;  %v584_v11 = vsel %vm572_vm3, %v3717_v18, 0.0  ;;  %v661_v43 = vrot.slane %v3080_v54, 7 }
 0x2f0   :  { %v765_v30 = vadd.f32 %v757_v40, %v720_v8  ;;  %v3753_v47 = vrot.slane %v3067_v13, 3  ;;  %v518_v24 = vadd.f32 %v510_v35, %v2843_v60  ;;  %v555_v12 = vmul.f32 %v2860_v4, %v539_v51 }
 0x2f1   :  { %v552_v38 = vmul.f32 %v2978_v36, %v536_v52  ;;  %v597_v15 = vmul.f32 %v2880_v16, %v581_v59  ;;  %v3754_v28 = vrot.slane %v3063_v26, 3  ;;  %v629_v40 = vsel %vm617_vm4, %v616_v1, 0.0 }
 0x2f2   :  { %v493_v53 = vsel %vm482_vm1, %v3753_v47, 0.0  ;;  %v802_v8 = vmul.f32 %v2941_v63, %v786_v42  ;;  %v525_v47 = vrot.slane %v3067_v13, 4  ;;  %v563_v44 = vadd.f32 %v555_v12, %v518_v24 }
 0x2f3   :  { %v823_v18 = vsel %vm814_vm8, %v3754_v28, 0.0  ;;  %v600_v60 = vmul.f32 %v2894_v23, %v584_v11  ;;  %v642_v4 = vmul.f32 %v2890_v20, %v626_v31  ;;  %v509_v52 = vmul.f32 %v2876_v14, %v493_v53 }
 0x2f4   :  { %v674_v59 = vsel %vm662_vm5, %v661_v43, 0.0  ;;  %v730_v35 = vrot.slane %v3080_v54, 1  ;;  %v808_v28 = vadd.f32 %v800_v0, %v763_v37  ;;  %v810_v51 = vadd.f32 %v802_v8, %v765_v30 }
 0x2f5   :  { %v608_v21 = vadd.f32 %v600_v60, %v563_v44  ;;  %v645_v1 = vmul.f32 %v2915_v32, %v629_v40  ;;  %v671_v42 = vsel %vm662_vm5, %v658_v5, 0.0  ;;  %v839_v24 = vmul.f32 %v2944_v45, %v823_v18 }
 0x2f6   :  { %v3755_v23 = vrot.slane %v3063_v26, 4  ;;  %v775_v11 = vrot.slane %v3080_v54, 2  ;;  %v538_v37 = vsel %vm527_vm2, %v525_v47, 0.0  ;;  %v570_v44 = vrot.slane %v3067_v13, 5 }
 0x2f7   :  { %v653_v32 = vadd.f32 %v645_v1, %v608_v21  ;;  %v690_v0 = vmul.f32 %v2917_v33, %v674_v59  ;;  %v560_v5 = vadd.f32 %v552_v38, %v515_v17  ;;  %v517_v31 = vadd.f32 %v509_v52, %v2869_v10 }
 0x2f8   :  { %v860_v14 = vsel %vm851_vm9, %v3755_v23, 0.0  ;;  %v743_v18 = vsel %vm732_vm6, %v730_v35, 0.0  ;;  %v556_v43 = vadd.f32 %v3089_v9, %v3016_v56  ;;  %v845_v30 = vadd.f32 %v3165_v49, %v808_v28 }
 0x2f9   :  { %v698_v53 = vadd.f32 %v690_v0, %v653_v32  ;;  %v714_v12 = vmul.f32 %v2919_v34, %v3080_v54  ;;  %v847_v40 = vadd.f32 %v839_v24, %v810_v51  ;;  %v876_v21 = vmul.f32 %v2948_v6, %v860_v14 }
 0x2fa   :  { %v3756_v33 = vrot.slane %v3063_v26, 5  ;;  %v554_v17 = vmul.f32 %v2978_v36, %v538_v37  ;;  %v788_v38 = vsel %vm777_vm7, %v775_v11, 0.0  ;;  %v583_v56 = vsel %vm572_vm3, %v570_v44, 0.0 }
 0x2fb   :  { %v615_v34 = vrot.slane %v3067_v13, 6  ;;  %v722_v9 = vadd.f32 %v714_v12, %v698_v53  ;;  %v759_v49 = vmul.f32 %v2936_v55, %v743_v18  ;;  %v825_v26 = vsel %vm814_vm8, %v481_v3, 0.0 }
 0x2fc   :  { %v897_v10 = vsel %vm888_vm10, %v3756_v33, 0.0  ;;  %v562_v8 = vadd.f32 %v554_v17, %v517_v31  ;;  %v601_v60 = vadd.f32 %v2991_v61, %v556_v43  ;;  %v880_v36 = vadd.f32 %v3040_v50, %v3132_v2  ;;  %v3762_v17 = vld [vmem:[#allocation15_spill] sm:$0xff] }
 0x2fd   :  { %v767_v52 = vadd.f32 %v759_v49, %v722_v9  ;;  %v804_v59 = vmul.f32 %v2941_v63, %v788_v38  ;;  %v882_v35 = vadd.f32 %v3170_v58, %v845_v30  ;;  %v884_v28 = vadd.f32 %v876_v21, %v847_v40  ;;  %v3760_v40 = vld [vmem:[#allocation17_spill] sm:$0xff]  ;;  %v3764_v49 = vld [vmem:[#allocation16_spill] sm:$0xff] }
 0x2fe   :  { %v605_v51 = vadd.f32 %v597_v15, %v560_v5  ;;  %v599_v1 = vmul.f32 %v2880_v16, %v583_v56  ;;  %v660_v55 = vrot.slane %v3067_v13, 7  ;;  %v3757_v24 = vrot.slane %v3080_v54, 4  ;;  %v3763_v56 = vld [vmem:[#allocation14_spill] sm:$0xff] }
 0x2ff   :  { %v628_v61 = vsel %vm617_vm4, %v615_v34, 0.0  ;;  %v841_v50 = vmul.f32 %v2944_v45, %v825_v26  ;;  %v812_v2 = vadd.f32 %v804_v59, %v767_v52  ;;  %v913_v63 = vmul.f32 %v2951_v7, %v897_v10  ;;  %v3761_v10 = vld [vmem:[#allocation18_spill] sm:$0xff] }
 0x300   :  { %v862_v3 = vsel %vm851_vm9, %v3757_v24, 0.0  ;;  %v607_v58 = vadd.f32 %v599_v1, %v562_v8  ;;  %v646_v15 = vadd.f32 %v2994_v22, %v601_v60  ;;  %v3758_v16 = vrot.slane %v3080_v54, 5 }
 0x301   :  { %v3299_v14 = vadd.f32 %v3048_v57, %v880_v36  ;;  %v849_v11 = vadd.f32 %v841_v50, %v812_v2  ;;  %v878_v37 = vmul.f32 %v2948_v6, %v862_v3  ;;  %v3303_v32 = vadd.f32 %v3176_v48, %v882_v35  ;;  %v3766_v35 = vld [vmem:[#allocation13_spill] sm:$0xff] }
 0x302   :  { %v899_v23 = vsel %vm888_vm10, %v3758_v16, 0.0  ;;  %v3305_v45 = vadd.f32 %v913_v63, %v884_v28  ;;  %v693_v0 = vadd.f32 %v3101_v46, %v3134_v62  ;;  %v650_v22 = vadd.f32 %v642_v4, %v605_v51 }
 0x303   :  { %v644_v54 = vmul.f32 %v2890_v20, %v628_v61  ;;  %v1867_v5 = vmul.f32 -1.442695, %v3299_v14  ;;  %v886_v31 = vadd.f32 %v878_v37, %v849_v11  ;;  %v915_v57 = vmul.f32 %v2951_v7, %v899_v23 }
 0x304   :  { %v1868_v18 = vmul.f32 -1.442695, %v3303_v32  ;;  %v1869_v6 = vmul.f32 -1.442695, %v3305_v45  ;;  %v687_v48 = vmul.f32 %v2898_v25, %v671_v42  ;;  %v673_v43 = vsel %vm662_vm5, %v660_v55, 0.0 }
 0x305   :  { %v691_v30 = vadd.f32 %v3002_v29, %v646_v15  ;;  %2455 = vpow2.f32 %v1867_v5  ;;  %v727_v62 = vrot.slane %v3054_v27, 1  ;;  %v652_v20 = vadd.f32 %v644_v54, %v607_v58  ;;  %v3767_v58 = vld [vmem:[#allocation11_spill] sm:$0xff]  ;;  %v3769_v5 = vld [vmem:[#allocation10_spill] sm:$0xff] }
 0x306   :  { %v3319_v46 = vadd.f32 %v915_v57, %v886_v31  ;;  %2457 = vpow2.f32 %v1868_v18  ;;  %v768_v7 = vrot.slane %v2887_v19, 2  ;;  %v770_v4 = vrot.slane %v2929_v41, 2 }
 0x307   :  { %v695_v53 = vadd.f32 %v687_v48, %v650_v22  ;;  %2459 = vpow2.f32 %v1869_v6  ;;  %v3759_v42 = vrot.slane %v2887_v19, 1  ;;  %v717_v29 = vadd.f32 %v3760_v40, %v693_v0 }
 0x308   :  { %v689_v21 = vmul.f32 %v2898_v25, %v673_v43  ;;  %v1870_v33 = vmul.f32 -1.442695, %v3319_v46  ;;  %v754_v38 = vmul.f32 %v3762_v17, %v3761_v10  ;;  %v711_v34 = vmul.f32 %v3763_v56, %v3054_v27  ;;  %v456_v25 = vld [vmem:[%s3660_s6 + $0x10] sm:$0x7] }
 0x309   :  { %v736_v12 = vsel %vm732_vm6, %v3759_v42, 0.0  ;;  %v729_v9 = vrot.slane %v3067_v13, 1  ;;  %v715_v8 = vadd.f32 %v3764_v49, %v691_v30  ;;  %v740_v26 = vsel %vm732_vm6, %v727_v62, 0.0 }
 0x30a   :  { %v772_v60 = vrot.slane %v3054_v27, 2  ;;  %v697_v36 = vadd.f32 %v689_v21, %v652_v20  ;;  %2461 = vpow2.f32 %v1870_v33  ;;  %v752_v52 = vmul.f32 %v3762_v17, %v736_v12 }
 0x30b   :  { %v3765_v59 = vsub.s32 7, %v2800_v39  ;;  %v783_v51 = vsel %vm777_vm7, %v770_v4, 0.0  ;;  %v719_v1 = vadd.f32 %v711_v34, %v695_v53  ;;  %v781_v55 = vsel %vm777_vm7, %v768_v7, 0.0 }
 0x30c   :  { %v762_v24 = vadd.f32 %v754_v38, %v717_v29  ;;  %v713_v3 = vmul.f32 %v3763_v56, %v3067_v13  ;;  %v756_v61 = vmul.f32 %v3762_v17, %v740_v26  ;;  %v742_v50 = vsel %vm732_vm6, %v729_v9, 0.0 }
 0x30d   :  { %v792_v28 = vrot.slane %v3766_v35, %v3765_v59  ;;  %v774_v2 = vrot.slane %v3067_v13, 2  ;;  %v760_v63 = vadd.f32 %v752_v52, %v715_v8  ;;  %v829_v15 = vrot.slane %v456_v25, %v3767_v58 }
 0x30e   :  { %v785_v23 = vsel %vm777_vm7, %v772_v60, 0.0  ;;  %v721_v11 = vadd.f32 %v713_v3, %v697_v36  ;;  %v3768_v22 = vrot.slane %v2887_v19, 3  ;;  %v866_v31 = vrot.slane %v456_v25, %v3769_v5 }
 0x30f   :  { %v799_v16 = vmul.f32 %v792_v28, %v783_v51  ;;  %v2456_v37 = vpop.eup %2455  ;;  %v797_v0 = vmul.f32 %v792_v28, %v781_v55  ;;  %v764_v57 = vadd.f32 %v756_v61, %v719_v1  ;;  %v3770_v48 = vrot.slane %v2929_v41, 3  ;;  %v3776_v61 = vld [vmem:[#allocation12_spill] sm:$0xff] }
 0x310   :  { %v818_v54 = vsel %vm814_vm8, %v3768_v22, 0.0  ;;  %v2458_v18 = vpop.eup %2457  ;;  %v758_v30 = vmul.f32 %v3762_v17, %v742_v50  ;;  %v936_v62 = vadd.f32 1.0, %v2456_v37  ;;  %v801_v7 = vmul.f32 %v792_v28, %v785_v23 }
 0x311   :  { %v807_v6 = vadd.f32 %v799_v16, %v762_v24  ;;  %v820_v43 = vsel %vm814_vm8, %v3770_v48, 0.0  ;;  %v2460_v20 = vpop.eup %2459  ;;  %v787_v4 = vsel %vm777_vm7, %v774_v2, 0.0  ;;  %v805_v53 = vadd.f32 %v797_v0, %v760_v63 }
 0x312   :  { %v937_v42 = vadd.f32 1.0, %v2458_v18  ;;  %v3771_v12 = vrot.slane %v3054_v27, 3  ;;  %v766_v29 = vadd.f32 %v758_v30, %v721_v11  ;;  %v938_v21 = vadd.f32 1.0, %v2460_v20 }
 0x313   :  { %2463 = vrcp.f32 %v936_v62  ;;  %v834_v33 = vmul.f32 %v829_v15, %v818_v54  ;;  %v3772_v10 = vrot.slane %v2887_v19, 4  ;;  %v809_v38 = vadd.f32 %v801_v7, %v764_v57 }
 0x314   :  { %v822_v40 = vsel %vm814_vm8, %v3771_v12, 0.0  ;;  %2465 = vrcp.f32 %v937_v42  ;;  %v2462_v56 = vpop.eup %2461  ;;  %v836_v34 = vmul.f32 %v829_v15, %v820_v43  ;;  %v3773_v9 = vrot.slane %v2929_v41, 4 }
 0x315   :  { %v855_v17 = vsel %vm851_vm9, %v3772_v10, 0.0  ;;  %v803_v8 = vmul.f32 %v792_v28, %v787_v4  ;;  %2467 = vrcp.f32 %v938_v21  ;;  %v838_v26 = vmul.f32 %v829_v15, %v822_v40 }
 0x316   :  { %v857_v49 = vsel %vm851_vm9, %v3773_v9, 0.0  ;;  %v3774_v60 = vrot.slane %v3067_v13, 3  ;;  %v842_v52 = vadd.f32 %v834_v33, %v805_v53  ;;  %v939_v59 = vadd.f32 1.0, %v2462_v56 }
 0x317   :  { %v3775_v35 = vrot.slane %v3054_v27, 4  ;;  %v811_v1 = vadd.f32 %v803_v8, %v766_v29  ;;  %v844_v55 = vadd.f32 %v836_v34, %v807_v6  ;;  %v846_v24 = vadd.f32 %v838_v26, %v809_v38 }
 0x318   :  { %v824_v36 = vsel %vm814_vm8, %v3774_v60, 0.0  ;;  %v871_v3 = vmul.f32 %v866_v31, %v855_v17  ;;  %v903_v28 = vrot.slane %v456_v25, %v3776_v61  ;;  %2469 = vrcp.f32 %v939_v59 }
 0x319   :  { %v859_v51 = vsel %vm851_vm9, %v3775_v35, 0.0  ;;  %v3777_v50 = vrot.slane %v2887_v19, 5  ;;  %v873_v63 = vmul.f32 %v866_v31, %v857_v49  ;;  %v840_v16 = vmul.f32 %v829_v15, %v824_v36 }
 0x31a   :  { %v3778_v23 = vrot.slane %v2929_v41, 5  ;;  %v861_v37 = vsel %vm851_vm9, %v525_v47, 0.0  ;;  %v875_v0 = vmul.f32 %v866_v31, %v859_v51  ;;  %v879_v25 = vadd.f32 %v871_v3, %v842_v52 }
 0x31b   :  { %v892_v2 = vsel %vm888_vm10, %v3777_v50, 0.0  ;;  %v848_v22 = vadd.f32 %v840_v16, %v811_v1  ;;  %v881_v54 = vadd.f32 %v873_v63, %v844_v55  ;;  %v3779_v19 = vrot.slane %v3054_v27, 5 }
 0x31c   :  { %v894_v11 = vsel %vm888_vm10, %v3778_v23, 0.0  ;;  %v883_v15 = vadd.f32 %v875_v0, %v846_v24  ;;  %v908_v18 = vmul.f32 %v903_v28, %v892_v2  ;;  %v877_v6 = vmul.f32 %v866_v31, %v861_v37 }
 0x31d   :  { %v896_v57 = vsel %vm888_vm10, %v3779_v19, 0.0  ;;  %v2464_v41 = vpop.eup %2463  ;;  %v910_v48 = vmul.f32 %v903_v28, %v894_v11  ;;  %v898_v47 = vsel %vm888_vm10, %v570_v44, 0.0 }
 0x31e   :  { %v2466_v43 = vpop.eup %2465  ;;  %v912_v30 = vmul.f32 %v903_v28, %v896_v57  ;;  %v916_v62 = vadd.f32 %v908_v18, %v879_v25  ;;  %v948_v20 = vmul.f32 %v2464_v41, %v3299_v14  ;;  %v885_v27 = vadd.f32 %v877_v6, %v848_v22  ;;  %v3780_v6 = vld [vmem:[#allocation2_spill] sm:$0xff] }
 0x31f   :  { %v2468_v7 = vpop.eup %2467  ;;  %v918_v4 = vadd.f32 %v910_v48, %v881_v54  ;;  %v949_v53 = vmul.f32 %v2466_v43, %v3303_v32  ;;  %v914_v40 = vmul.f32 %v903_v28, %v898_v47  ;;  %v3781_v48 = vld [vmem:[#allocation3_spill] sm:$0xff]  ;;  %v3782_v43 = vld [vmem:[#allocation4_spill] sm:$0xff]  ;;  %v3783_v47 = vld [vmem:[#allocation5_spill] sm:$0xff] }
 0x320   :  { %v920_v42 = vadd.f32 %v912_v30, %v883_v15  ;;  %v950_v12 = vmul.f32 %v2468_v7, %v3305_v45  ;;  %v3415_v31 = vmul.f32 %v948_v20, %v916_v62  ;;  %v3784_v30 = vld [vmem:[#allocation6_spill] sm:$0xff]  ;;  %v3785_v62 = vld [vmem:[#allocation7_spill] sm:$0xff]  ;;  %v3786_v20 = vld [vmem:[#allocation8_spill] sm:$0xff] }
 0x321   :  { %v3417_v29 = vmul.f32 %v949_v53, %v918_v4  ;;  %v922_v33 = vadd.f32 %v914_v40, %v885_v27  ;;  %v3787_v7 = vld [vmem:[#allocation9_spill] sm:$0xff]  ;;  %v2407_v27 = vld [vmem:[%s3662_s10] sm:$0xff]   ;;  %v2408_v4 = vld [vmem:[%s3662_s10 + $0x8] sm:$0xff]  }
 0x322   :  { %v2470_v13 = vpop.eup %2469  ;;  %v3419_v21 = vmul.f32 %v950_v12, %v920_v42  ;;  %v956_v44 = vrot.slane %v3415_v31, 4  ;;  %2127 = vmatprep.subr.bf16.mxu0 %v2407_v27  ;;  %v2409_v53 = vld [vmem:[%s3662_s10 + $0x10] sm:$0xff]   ;;  %v2410_v42 = vld [vmem:[%s3662_s10 + $0x18] sm:$0xff]   ;;  %v2411_v12 = vld [vmem:[%s3662_s10 + $0x20] sm:$0xff]  }
 0x323   :  { %v951_v14 = vmul.f32 %v2470_v13, %v3319_v46  ;;  %v962_v10 = vrot.slane %v3417_v29, 4  ;;  %2128 = vmatpush3.bf16.msra.mxu0 %v2407_v27  ;;  %v2412_v40 = vld [vmem:[%s3662_s10 + $0x28] sm:$0xff]   ;;  %v2413_v13 = vld [vmem:[%s3662_s10 + $0x30] sm:$0xff]  }
 0x324   :  { %v957_v32 = vadd.f32 %v956_v44, %v3415_v31  ;;  %v968_v17 = vrot.slane %v3419_v21, 4  ;;  %2129 = vmatprep.subr.bf16.mxu0 %v2408_v4  ;;  %v2414_v44 = vld [vmem:[%s3662_s10 + $0x38] sm:$0xff]  }
 0x325   :  { %v3426_v45 = vmul.f32 %v951_v14, %v922_v33  ;;  %v963_v38 = vadd.f32 %v962_v10, %v3417_v29  ;;  %v1871_v33 = vld [vmem:[%s3663_s9] ss:$0 sm:$0xff] }
 0x326   :  { %v958_v56 = vrot.slane %v957_v32, 2  ;;  %v969_v34 = vadd.f32 %v968_v17, %v3419_v21 }
 0x327   :  { %v964_v9 = vrot.slane %v963_v38, 2  ;;  %v974_v49 = vrot.slane %v3426_v45, 4  ;;  %2130 = vmatpush3.bf16.msra.mxu0 %v2408_v4 }
 0x328   :  { %v959_v8 = vadd.f32 %v958_v56, %v957_v32  ;;  %v970_v26 = vrot.slane %v969_v34, 2  ;;  %2131 = vmatprep.subr.bf16.mxu0 %v2409_v53 }
 0x329   :  { %v965_v60 = vadd.f32 %v964_v9, %v963_v38  ;;  %v975_v46 = vadd.f32 %v974_v49, %v3426_v45  ;;  %v2506_v49 = vmov 1966171168  }
 0x32a   :  { %v960_v36 = vrot.slane %v959_v8, 1  ;;  %v971_v52 = vadd.f32 %v970_v26, %v969_v34 }
 0x32b   :  { %v966_v59 = vrot.slane %v965_v60, 1  ;;  %v976_v35 = vrot.slane %v975_v46, 2  ;;  %2132 = vmatpush3.bf16.msra.mxu0 %v2409_v53 }
 0x32c   :  { %v961_v51 = vadd.f32 %v960_v36, %v959_v8  ;;  %v972_v1 = vrot.slane %v971_v52, 1  ;;  %2133 = vmatprep.subr.bf16.mxu0 %v2410_v42  ;;  %v1124_v8 = vunpack.c.l.s4 %v2506_v49  ;;  %v2430_v49 = vld [vmem:[%s3665_s14 + $0x50] ss:$8 sps:$4 sm:$0xff]  }
 0x32d   :  { %v967_v55 = vadd.f32 %v966_v59, %v965_v60  ;;  %v977_v24 = vadd.f32 %v976_v35, %v975_v46 }
 0x32e   :  { %v973_v3 = vadd.f32 %v972_v1, %v971_v52  ;;  %v981_v61 = vmul.f32 0.125, %v961_v51  ;;  %v1125_v26 = vunpack.c.0.s8 %v1124_v8  ;;  %v2435_v8 = vld [vmem:[%s3665_s14 + $0x64] ss:$8 sps:$4 sm:$0xff]  }
 0x32f   :  { %v978_v28 = vrot.slane %v977_v24, 1  ;;  %v982_v50 = vmul.f32 0.125, %v967_v55  ;;  %2134 = vmatpush3.bf16.msra.mxu0 %v2410_v42 }
 0x330   :  { %v983_v2 = vmul.f32 0.125, %v973_v3  ;;  %v985_v63 = vpack.c.bf16 %v981_v61, %v981_v61  ;;  %2135 = vmatprep.subr.bf16.mxu0 %v2411_v12  ;;  %v1128_v60 = vsub.s32 %v1125_v26, %v2800_v39  ;;  %v2433_v26 = vld [vmem:[%s3665_s14 + $0x60] ss:$8 sps:$4 sm:$0xff]  }
 0x331   :  { %v979_v16 = vadd.f32 %v978_v28, %v977_v24  ;;  %v986_v23 = vpack.c.bf16 %v982_v50, %v982_v50 }
 0x332   :  { %v987_v11 = vpack.c.bf16 %v983_v2, %v983_v2  ;;  %v1016_v0 = vunpack.c.l.b16 %v985_v63 }
 0x333   :  { %v984_v37 = vmul.f32 0.125, %v979_v16  ;;  %v1017_v25 = vunpack.c.l.b16 %v986_v23  ;;  %2136 = vmatpush3.bf16.msra.mxu0 %v2411_v12 }
 0x334   :  { %v1018_v22 = vunpack.c.l.b16 %v987_v11  ;;  %2137 = vmatprep.subr.bf16.mxu0 %v2412_v40 }
 0x335   :  { %v988_v54 = vpack.c.bf16 %v984_v37, %v984_v37  ;;  %v1021_v19 = vsel %vm1020_vm11, %v1017_v25, %v1016_v0  ;;  %v3505_v0 = vld [vmem:[%s3726_s1] sm:$0xff] }
 0x336   :  { %v1023_v57 = vsel %vm1022_vm12, %v1018_v22, %v1021_v19  ;;  %v3513_v19 = vld [vmem:[%s3726_s1 + $0x8] sm:$0xff] }
 0x337   :  { %v1019_v15 = vunpack.c.l.b16 %v988_v54  ;;  %2138 = vmatpush3.bf16.msra.mxu0 %v2412_v40 }
 0x338   :  { %2139 = vmatprep.subr.bf16.mxu0 %v2413_v13 }
 0x339   :  { %v1025_v18 = vsel %vm1024_vm13, %v1019_v15, %v1023_v57  ;;  %v3522_v15 = vld [vmem:[%s3726_s1 + $0x10] sm:$0xff] }
 0x33a   :  { %v1026_v41 = vpack.c.b16 %v1025_v18, %v1025_v18 }
 0x33b   :  { %2140 = vmatpush3.bf16.msra.mxu0 %v2413_v13 }
 0x33c   :  { %2124 = vmatmul.mubr.bf16.vlgmr.msra.gmra.mrb[4].mxu1 %v1026_v41  ;;  %2141 = vmatprep.subr.bf16.mxu0 %v2414_v44  ;;  %v3532_v41 = vld [vmem:[%s3726_s1 + $0x18] sm:$0xff] }
 0x33d   :  { %2310 = vmatpush3.bf16.msra.mxu1 %v3780_v6 }
 0x33e   :  { %2312 = vmatprep.subr.bf16.mxu1 %v3781_v48 }
 0x33f   :  { %2142 = vmatpush3.bf16.msra.mxu0 %v2414_v44 }
 0x340   :  { %2340 = vmatprep.subr.bf16.mxu0 %v3780_v6 }
 0x341   :  { %2314 = vmatpush3.bf16.msra.mxu1 %v3781_v48 }
 0x342   :  { %2316 = vmatprep.subr.bf16.mxu1 %v3782_v43 }
 0x345   :  { %2318 = vmatpush3.bf16.msra.mxu1 %v3782_v43 }
 0x346   :  { %2320 = vmatprep.subr.bf16.mxu1 %v3783_v47 }
 0x349   :  { %2322 = vmatpush3.bf16.msra.mxu1 %v3783_v47 }
 0x34a   :  { %2324 = vmatprep.subr.bf16.mxu1 %v3784_v30 }
 0x34d   :  { %2326 = vmatpush3.bf16.msra.mxu1 %v3784_v30 }
 0x34e   :  { %2328 = vmatprep.subr.bf16.mxu1 %v3785_v62 }
 0x351   :  { %2330 = vmatpush3.bf16.msra.mxu1 %v3785_v62 }
 0x352   :  { %2332 = vmatprep.subr.bf16.mxu1 %v3786_v20 }
 0x355   :  { %2334 = vmatpush3.bf16.msra.mxu1 %v3786_v20 }
 0x356   :  { %2336 = vmatprep.subr.bf16.mxu1 %v3787_v7 }
 0x359   :  { %2338 = vmatpush3.bf16.msra.mxu1 %v3787_v7 }
 0x40f   :  { %v1110_v14 = vpop.f32.mrb[4].mxu1 }
 0x410   :  { %v1111_v10 = vadd.f32 %v1871_v33, %v1110_v14  ;;  %v2125_v32 = vpop.f32.mrb[5].mxu1 }
 0x411   :  { %v1113_v17 = vpop.f32.mrb[6].mxu1 }
 0x412   :  { %v1880_v38 = vmul.f32 -1.442695, %v1111_v10  ;;  %v2126_v56 = vpop.f32.mrb[7].mxu1  ;;  %v2424_v17 = vld [vmem:[%s3665_s14 + $0x30] ss:$8 sps:$4 sm:$0xff]  }
 0x413   :  { %v2429_v56 = vld [vmem:[%s3665_s14 + $0x44] ss:$8 sps:$4 sm:$0xff]  }
 0x414   :  { %2471 = vpow2.f32 %v1880_v38  ;;  %v2426_v38 = vld [vmem:[%s3665_s14 + $0x34] ss:$8 sps:$4 sm:$0xff]  }
 0x41e   :  { %v2472_v34 = vpop.eup %2471 }
 0x41f   :  { %v1119_v9 = vadd.f32 1.0, %v2472_v34  ;;  %v2427_v34 = vld [vmem:[%s3665_s14 + $0x40] ss:$8 sps:$4 sm:$0xff]  }
 0x421   :  { %2473 = vrcp.f32 %v1119_v9  ;;  %v2432_v9 = vld [vmem:[%s3665_s14 + $0x54] ss:$8 sps:$4 sm:$0xff]  }
 0x42b   :  { %v2474_v46 = vpop.eup %2473 }
 0x42c   :  { %v1129_v36 = vrot.slane %v2474_v46, %v1128_v60  ;;  %v2436_v46 = vld [vmem:[%s3665_s14 + $0x70] ss:$8 sps:$4 sm:$0xff]  }
 0x42e   :  { %v1130_v52 = vcombine.high %v1129_v36, %v1129_v36  ;;  %v1137_v59 = vrot.slane %v1129_v36, %v1128_v60 }
 0x430   :  { %v1144_v35 = vrot.slane %v1130_v52, %v1128_v60  ;;  %v1145_v51 = vcombine.high %v1137_v59, %v1137_v59  ;;  %v1150_v1 = vrot.slane %v1137_v59, %v3767_v58  ;;  %v2438_v60 = vld [vmem:[%s3665_s14 + $0x74] ss:$8 sps:$4 sm:$0xff]  }
 0x432   :  { %v1146_v55 = vcombine.high %v1144_v35, %v1144_v35  ;;  %v1154_v24 = vrot.slane %v1144_v35, %v3767_v58  ;;  %v1158_v3 = vrot.slane %v1145_v51, %v3767_v58  ;;  %v1167_v28 = vmul.f32 %v1150_v1, %v3415_v31  ;;  %v1881_v31 = vld [vmem:[%s3664_s11] ss:$0 sm:$0xff] }
 0x434   :  { %v1162_v61 = vrot.slane %v1146_v55, %v3767_v58  ;;  %v1168_v50 = vmul.f32 %v1154_v24, %v3417_v29  ;;  %v1169_v2 = vmul.f32 %v1158_v3, %v3419_v21 }
 0x436   :  { %v1171_v39 = vpack.c.bf16 %v1168_v50, %v1167_v28  ;;  %v1170_v63 = vmul.f32 %v1162_v61, %v3426_v45  ;;  %v1890_v61 = vld [vmem:[%s3666_s12] ss:$0 sm:$0xff] }
 0x438   :  { %2143 = vmatprep.mubr.bf16.mxu0 %v1171_v39  ;;  %v1172_v16 = vpack.c.bf16 %v1170_v63, %v1169_v2  ;;  %v1891_v2 = vld [vmem:[%s3667_s13] ss:$0 sm:$0xff] }
 0x43a   :  { %2144 = vmatmul.mubr.bf16.vlgmr.msra.gmra.mrb[12].mxu0 %v1172_v16 }
 0x43b   :  { %2342 = vmatpush3.bf16.msra.mxu0 %v3780_v6 }
 0x43c   :  { %2344 = vmatprep.subr.bf16.mxu0 %v3781_v48 }
 0x43f   :  { %2346 = vmatpush3.bf16.msra.mxu0 %v3781_v48  ;;  %v3788_v48 = vmov 0  }
 0x440   :  { %2348 = vmatprep.subr.bf16.mxu0 %v3782_v43 }
 0x443   :  { %2350 = vmatpush3.bf16.msra.mxu0 %v3782_v43  ;;  %v2415_v43 = vld [vmem:[%s3665_s14] ss:$8 sps:$4 sm:$0xff]  }
 0x444   :  { %2352 = vmatprep.subr.bf16.mxu0 %v3783_v47 }
 0x447   :  { %2354 = vmatpush3.bf16.msra.mxu0 %v3783_v47  ;;  %v2417_v47 = vld [vmem:[%s3665_s14 + $0x4] ss:$8 sps:$4 sm:$0xff]  }
 0x448   :  { %2356 = vmatprep.subr.bf16.mxu0 %v3784_v30  ;;  %1615 = vmatprep.subr.bf16.mxu1 %v2417_v47 }
 0x44b   :  { %2358 = vmatpush3.bf16.msra.mxu0 %v3784_v30  ;;  %v2420_v30 = vld [vmem:[%s3665_s14 + $0x14] ss:$8 sps:$4 sm:$0xff]  }
 0x44c   :  { %2360 = vmatprep.subr.bf16.mxu0 %v3785_v62 }
 0x44f   :  { %2362 = vmatpush3.bf16.msra.mxu0 %v3785_v62  ;;  %v2418_v62 = vld [vmem:[%s3665_s14 + $0x10] ss:$8 sps:$4 sm:$0xff]  }
 0x450   :  { %2364 = vmatprep.subr.bf16.mxu0 %v3786_v20 }
 0x453   :  { %2366 = vmatpush3.bf16.msra.mxu0 %v3786_v20  ;;  %v2423_v20 = vld [vmem:[%s3665_s14 + $0x24] ss:$8 sps:$4 sm:$0xff]  }
 0x454   :  { %2368 = vmatprep.subr.bf16.mxu0 %v3787_v7 }
 0x457   :  { %2370 = vmatpush3.bf16.msra.mxu0 %v3787_v7  ;;  %v2421_v7 = vld [vmem:[%s3665_s14 + $0x20] ss:$8 sps:$4 sm:$0xff]  }
 0x50d   :  { %v2145_v29 = vpop.f32.mrb[12].mxu0 }
 0x50e   :  { %v1278_v21 = vpop.f32.mrb[13].mxu0  ;;  %v1287_v11 = vadd.f32 %v2145_v29, %v1881_v31 }
 0x50f   :  { %v1279_v45 = vadd.f32 %v1881_v31, %v1278_v21  ;;  %v2146_v23 = vpop.f32.mrb[14].mxu0 }
 0x510   :  { %v1281_v37 = vpop.f32.mrb[15].mxu0  ;;  %v1290_v54 = vadd.f32 %v2146_v23, %v1881_v31  ;;  %v3525_v18 = vadd.f32 %v3522_v15, %v1287_v11 }
 0x511   :  { %v3508_v25 = vadd.f32 %v3505_v0, %v1279_v45  ;;  %v1282_v22 = vadd.f32 %v1881_v31, %v1281_v37 }
 0x512   :  { %v3535_v6 = vadd.f32 %v3532_v41, %v1290_v54 }
 0x513   :  { %v3516_v57 = vadd.f32 %v3513_v19, %v1282_v22  ;;  %2179 = vmatprep.mubr.f32.mxu1 %v3508_v25 }
 0x515   :  { %2180 = vmatmul.mubr.f32.vlgmr.msra.gmra.mrb[8].mxu1 %v3516_v57 }
 0x516   :  { %2182 = vmatprep.mubr.f32.mxu1 %v3525_v18  ;;  %1616 = vmatpush1.bf16.msra.mxu1 %v2415_v43 }
 0x517   :  { %1617 = vmatprep.subr.bf16.mxu1 %v2420_v30 }
 0x519   :  { %2183 = vmatmul.mubr.f32.gmra.mrb[10].mxu1 %v3535_v6 }
 0x51a   :  { %1647 = vmatprep.mubr.bf16.mxu1 %v3788_v48  ;;  %1618 = vmatpush1.bf16.msra.mxu1 %v2418_v62  ;;  %v2439_v62 = vld [vmem:[%s3668_s16] sm:$0xff]  }
 0x51b   :  { %1619 = vmatprep.subr.bf16.mxu1 %v2423_v20  ;;  %2223 = vmatprep.subr.bf16.mxu0 %v2439_v62  ;;  %v2440_v20 = vld [vmem:[%s3668_s16 + $0x8] sm:$0xff]  }
 0x51e   :  { %1620 = vmatpush1.bf16.msra.mxu1 %v2421_v7  ;;  %v2441_v7 = vld [vmem:[%s3668_s16 + $0x10] sm:$0xff]  }
 0x51f   :  { %1621 = vmatprep.subr.bf16.mxu1 %v2426_v38 }
 0x522   :  { %1622 = vmatpush1.bf16.msra.mxu1 %v2424_v17 }
 0x523   :  { %1623 = vmatprep.subr.bf16.mxu1 %v2429_v56 }
 0x526   :  { %1624 = vmatpush1.bf16.msra.mxu1 %v2427_v34 }
 0x527   :  { %1625 = vmatprep.subr.bf16.mxu1 %v2432_v9 }
 0x52a   :  { %1626 = vmatpush1.bf16.msra.mxu1 %v2430_v49 }
 0x52b   :  { %1627 = vmatprep.subr.bf16.mxu1 %v2435_v8 }
 0x52e   :  { %1628 = vmatpush1.bf16.msra.mxu1 %v2433_v26 }
 0x52f   :  { %1629 = vmatprep.subr.bf16.mxu1 %v2438_v60 }
 0x532   :  { %1630 = vmatpush1.bf16.msra.mxu1 %v2436_v46 }
 0x5e8   :  { %v2181_v27 = vpop.f32.mrb[8].mxu1 }
 0x5e9   :  { %v1383_v4 = vsub.f32 %v3516_v57, %v2181_v27  ;;  %v1363_v53 = vpop.f32.mrb[9].mxu1  ;;  %v2443_v27 = vld [vmem:[%s3668_s16 + $0x20] sm:$0xff]  }
 0x5ea   :  { %v1382_v42 = vsub.f32 %v3508_v25, %v1363_v53  ;;  %v2445_v53 = vld [vmem:[%s3668_s16 + $0x30] sm:$0xff]  }
 0x5eb   :  { %v1387_v13 = vmul.f32 %v1383_v4, %v1383_v4 }
 0x5ec   :  { %v1386_v12 = vmul.f32 %v1382_v42, %v1382_v42  ;;  %v2184_v40 = vpop.f32.mrb[10].mxu1 }
 0x5ed   :  { %v1385_v44 = vsub.f32 %v3535_v6, %v2184_v40  ;;  %v1373_v33 = vpop.f32.mrb[11].mxu1 }
 0x5ee   :  { %v1384_v14 = vsub.f32 %v3525_v18, %v1373_v33  ;;  %2217 = vmatprep.mubr.f32.mxu0 %v1386_v12  ;;  %v1523_v12 = vld [vmem:[%s3669_s15] sm:$0x3] }
 0x5ef   :  { %2218 = vmatmul.mubr.f32.vlgmr.msra.gmra.mrb[16].mxu0 %v1387_v13  ;;  %v1389_v32 = vmul.f32 %v1385_v44, %v1385_v44  ;;  %v1532_v40 = vrot.slane %v1523_v12, %v3769_v5 }
 0x5f0   :  { %v1388_v10 = vmul.f32 %v1384_v14, %v1384_v14  ;;  %2224 = vmatpush3.bf16.msra.mxu0 %v2439_v62 }
 0x5f1   :  { %2225 = vmatprep.subr.bf16.mxu0 %v2440_v20 }
 0x5f2   :  { %2220 = vmatprep.mubr.f32.mxu0 %v1388_v10 }
 0x5f3   :  { %2221 = vmatmul.mubr.f32.gmra.mrb[18].mxu0 %v1389_v32 }
 0x5f4   :  { %2226 = vmatpush3.bf16.msra.mxu0 %v2440_v20 }
 0x5f5   :  { %2227 = vmatprep.subr.bf16.mxu0 %v2441_v7 }
 0x5f8   :  { %2228 = vmatpush3.bf16.msra.mxu0 %v2441_v7 }
 0x6c2   :  { %v2219_v36 = vpop.f32.mrb[16].mxu0 }
 0x6c3   :  { %v1462_v52 = vadd.f32 1e-05, %v2219_v36  ;;  %v1456_v59 = vpop.f32.mrb[17].mxu0 }
 0x6c4   :  { %v1457_v35 = vadd.f32 1e-05, %v1456_v59 }
 0x6c5   :  { %2475 = vrsqrt.f32 %v1462_v52 }
 0x6c6   :  { %2477 = vrsqrt.f32 %v1457_v35  ;;  %v2222_v51 = vpop.f32.mrb[18].mxu0 }
 0x6c7   :  { %v1472_v1 = vadd.f32 1e-05, %v2222_v51  ;;  %v1466_v55 = vpop.f32.mrb[19].mxu0 }
 0x6c8   :  { %v1467_v24 = vadd.f32 1e-05, %v1466_v55  ;;  %v1528_v55 = vrot.slane %v1523_v12, %v3767_v58 }
 0x6c9   :  { %2479 = vrsqrt.f32 %v1472_v1 }
 0x6ca   :  { %2481 = vrsqrt.f32 %v1467_v24 }
 0x6cf   :  { %v2476_v3 = vpop.eup %2475 }
 0x6d0   :  { %v2478_v28 = vpop.eup %2477  ;;  %v1480_v50 = vmul.f32 %v2476_v3, %v1383_v4  ;;  %v2444_v4 = vld [vmem:[%s3668_s16 + $0x28] sm:$0xff]  }
 0x6d1   :  { %v1479_v39 = vmul.f32 %v2478_v28, %v1382_v42  ;;  %v2446_v42 = vld [vmem:[%s3668_s16 + $0x38] sm:$0xff]  }
 0x6d2   :  { %v1491_v63 = vmul.f32 %v1890_v61, %v1480_v50 }
 0x6d3   :  { %v2480_v16 = vpop.eup %2479  ;;  %v1490_v31 = vmul.f32 %v1890_v61, %v1479_v39 }
 0x6d4   :  { %v2482_v29 = vpop.eup %2481  ;;  %v1502_v21 = vadd.f32 %v1891_v2, %v1491_v63  ;;  %v1482_v45 = vmul.f32 %v2480_v16, %v1385_v44 }
 0x6d5   :  { %v1501_v23 = vadd.f32 %v1891_v2, %v1490_v31  ;;  %v1481_v11 = vmul.f32 %v2482_v29, %v1384_v14 }
 0x6d6   :  { %v1493_v37 = vmul.f32 %v1890_v61, %v1482_v45 }
 0x6d7   :  { %v1505_v22 = vpack.c.bf16 %v1502_v21, %v1501_v23  ;;  %v1492_v54 = vmul.f32 %v1890_v61, %v1481_v11 }
 0x6d8   :  { %v1504_v43 = vadd.f32 %v1891_v2, %v1493_v37 }
 0x6d9   :  { %1648 = vmatmul.mubr.bf16.vlgmr.msra.gmra.mrb[12].mxu1 %v1505_v22  ;;  %v1503_v47 = vadd.f32 %v1891_v2, %v1492_v54 }
 0x6da   :  { %1657 = vmatprep.mubr.bf16.mxu1 %v3788_v48  ;;  %v2442_v48 = vld [vmem:[%s3668_s16 + $0x18] sm:$0xff]  }
 0x6db   :  { %v1506_v30 = vpack.c.bf16 %v1504_v43, %v1503_v47  ;;  %2229 = vmatprep.subr.bf16.mxu0 %v2442_v48  ;;  %v1912_v43 = vld [vmem:[%s3670_s17] ss:$0 sm:$0xff] }
 0x6dc   :  { %2230 = vmatpush3.bf16.msra.mxu0 %v2442_v48  ;;  %v1921_v47 = vld [vmem:[%s3671_s18] ss:$0 sm:$0xff] }
 0x6dd   :  { %2231 = vmatprep.subr.bf16.mxu0 %v2443_v27  ;;  %v1835_v20 = vmul.f32 %v3522_v15, %v1921_v47  ;;  %v1836_v12 = vmul.f32 %v3532_v41, %v1921_v47 }
 0x6e0   :  { %2232 = vmatpush3.bf16.msra.mxu0 %v2443_v27  ;;  %v1833_v27 = vmul.f32 %v3505_v0, %v1921_v47 }
 0x6e1   :  { %1658 = vmatmul.mubr.bf16.gmra.mrb[16].mxu1 %v1506_v30  ;;  %2233 = vmatprep.subr.bf16.mxu0 %v2444_v4 }
 0x6e4   :  { %2234 = vmatpush3.bf16.msra.mxu0 %v2444_v4 }
 0x6e5   :  { %2235 = vmatprep.subr.bf16.mxu0 %v2445_v53 }
 0x6e8   :  { %2236 = vmatpush3.bf16.msra.mxu0 %v2445_v53 }
 0x6e9   :  { %2237 = vmatprep.subr.bf16.mxu0 %v2446_v42 }
 0x6ec   :  { %2238 = vmatpush3.bf16.msra.mxu0 %v2446_v42 }
 0x7ac   :  { %v1649_v13 = vpop.f32.mrb[12].mxu1 }
 0x7ad   :  { %v1651_v44 = vpop.f32.mrb[13].mxu1  ;;  %v1650_v61 = vadd.f32 %v1649_v13, %v1528_v55 }
 0x7ae   :  { %v1652_v33 = vadd.f32 %v1651_v44, %v1532_v40  ;;  %v1653_v14 = vpop.f32.mrb[14].mxu1 }
 0x7af   :  { %v1655_v10 = vpop.f32.mrb[15].mxu1  ;;  %v1654_v2 = vadd.f32 %v1653_v14, %v1528_v55 }
 0x7b0   :  { %v1908_v32 = vmul.f32 -1.442695, %v1652_v33  ;;  %v1656_v17 = vadd.f32 %v1655_v10, %v1532_v40 }
 0x7b2   :  { %2483 = vpow2.f32 %v1908_v32  ;;  %v1909_v38 = vmul.f32 -1.442695, %v1656_v17 }
 0x7b4   :  { %2485 = vpow2.f32 %v1909_v38  ;;  %v1659_v56 = vpop.f32.mrb[16].mxu1 }
 0x7b5   :  { %v1661_v34 = vpop.f32.mrb[17].mxu1  ;;  %v1660_v21 = vadd.f32 %v1659_v56, %v1528_v55 }
 0x7b6   :  { %v1662_v9 = vadd.f32 %v1661_v34, %v1532_v40  ;;  %v1663_v49 = vpop.f32.mrb[18].mxu1 }
 0x7b7   :  { %v1665_v8 = vpop.f32.mrb[19].mxu1  ;;  %v1664_v37 = vadd.f32 %v1663_v49, %v1528_v55 }
 0x7b8   :  { %v1910_v26 = vmul.f32 -1.442695, %v1662_v9  ;;  %v1666_v60 = vadd.f32 %v1665_v8, %v1532_v40 }
 0x7ba   :  { %2487 = vpow2.f32 %v1910_v26  ;;  %v1911_v46 = vmul.f32 -1.442695, %v1666_v60 }
 0x7bc   :  { %v2484_v5 = vpop.eup %2483  ;;  %2489 = vpow2.f32 %v1911_v46 }
 0x7bd   :  { %v1680_v36 = vadd.f32 1.0, %v2484_v5 }
 0x7be   :  { %v2486_v52 = vpop.eup %2485 }
 0x7bf   :  { %2491 = vrcp.f32 %v1680_v36  ;;  %v1681_v59 = vadd.f32 1.0, %v2486_v52 }
 0x7c1   :  { %2493 = vrcp.f32 %v1681_v59 }
 0x7c4   :  { %v2488_v35 = vpop.eup %2487 }
 0x7c5   :  { %v1682_v51 = vadd.f32 1.0, %v2488_v35 }
 0x7c6   :  { %v2490_v1 = vpop.eup %2489 }
 0x7c7   :  { %2495 = vrcp.f32 %v1682_v51  ;;  %v1683_v24 = vadd.f32 1.0, %v2490_v1 }
 0x7c9   :  { %v2492_v3 = vpop.eup %2491  ;;  %2497 = vrcp.f32 %v1683_v24 }
 0x7ca   :  { %v1692_v28 = vmul.f32 %v2492_v3, %v1652_v33  ;;  %v1834_v33 = vmul.f32 %v3513_v19, %v1921_v47 }
 0x7cb   :  { %v2494_v50 = vpop.eup %2493 }
 0x7cc   :  { %v1696_v39 = vmul.f32 %v1692_v28, %v1650_v61  ;;  %v1693_v63 = vmul.f32 %v2494_v50, %v1656_v17 }
 0x7ce   :  { %v1697_v16 = vmul.f32 %v1693_v63, %v1654_v2 }
 0x7d0   :  { %v1700_v31 = vpack.c.bf16 %v1697_v16, %v1696_v39 }
 0x7d1   :  { %v2496_v29 = vpop.eup %2495 }
 0x7d2   :  { %v1694_v45 = vmul.f32 %v2496_v29, %v1662_v9  ;;  %2239 = vmatprep.mubr.bf16.mxu0 %v1700_v31 }
 0x7d3   :  { %v2498_v23 = vpop.eup %2497 }
 0x7d4   :  { %v1698_v11 = vmul.f32 %v1694_v45, %v1660_v21  ;;  %v1695_v58 = vmul.f32 %v2498_v23, %v1666_v60 }
 0x7d6   :  { %v1699_v22 = vmul.f32 %v1695_v58, %v1664_v37 }
 0x7d8   :  { %v1701_v54 = vpack.c.bf16 %v1699_v22, %v1698_v11 }
 0x7da   :  { %2240 = vmatmul.mubr.bf16.vlgmr.msra.gmra.mrb[20].mxu0 %v1701_v54 }
 0x8ad   :  { %v2241_v30 = vpop.f32.mrb[20].mxu0 }
 0x8ae   :  { %v1816_v62 = vadd.f32 %v2241_v30, %v1912_v43  ;;  %v1807_v7 = vpop.f32.mrb[21].mxu0 }
 0x8af   :  { %v1808_v48 = vadd.f32 %v1912_v43, %v1807_v7  ;;  %v2242_v4 = vpop.f32.mrb[22].mxu0 }
 0x8b0   :  { %v1824_v53 = vadd.f32 %v1816_v62, %v3525_v18  ;;  %v1819_v42 = vadd.f32 %v2242_v4, %v1912_v43  ;;  %v1810_v40 = vpop.f32.mrb[23].mxu0 }
 0x8b1   :  { %v1822_v13 = vadd.f32 %v1808_v48, %v3508_v25  ;;  %v1811_v44 = vadd.f32 %v1912_v43, %v1810_v40 }
 0x8b2   :  { %v1839_v14 = vadd.f32 %v1835_v20, %v1824_v53  ;;  %v1825_v10 = vadd.f32 %v1819_v42, %v3535_v6 }
 0x8b3   :  { %v1837_v15 = vadd.f32 %v1833_v27, %v1822_v13  ;;  %v1823_v32 = vadd.f32 %v1811_v44, %v3516_v57 }
 0x8b4   :  { %1843 = vst [vmem:[%s3672_s19 + $0x10] sm:$0xff] %v1839_v14  ;;  %v1840_v0 = vadd.f32 %v1836_v12, %v1825_v10 }
 0x8b5   :  { %1841 = vst [vmem:[%s3672_s19] sm:$0xff] %v1837_v15  ;;  %v1838_v18 = vadd.f32 %v1834_v33, %v1823_v32 }
 0x8b6   :  { %1844 = vst [vmem:[%s3672_s19 + $0x18] sm:$0xff] %v1840_v0 }
 0x8b7   :  { %1842 = vst [vmem:[%s3672_s19 + $0x8] sm:$0xff] %v1838_v18 }

</bundles_post_ra>
